<compile_context>
chip_gen: v6e
topology: v6e:2x2x1
jax: 0.10.0
libtpu: 0.0.40
codegen_flags: <defaults>
</compile_context>

<pallas_src>
import math
import functools

import jax
import jax.numpy as jnp
from jax.experimental import pallas as pl
from jax.experimental.pallas import tpu as pltpu


# ---------------------------------------------------------------------------
# Kernels
# ---------------------------------------------------------------------------
def _nomask_nchw_kernel(consts_ref, out_ref, *, num_pos_feats, tile_h,
                        height, width, normalize, scale):
    """mask=None, NCHW output (W % 128 == 0): separable row/col slabs."""
    F = num_pos_feats
    i = pl.program_id(1)                               # H-tile index
    consts = consts_ref[...]                           # (2F, 2): [:,0]=1/dim_t [:,1]=phase
    inv_y, ph_y = consts[:F, 0:1], consts[:F, 1:2]     # (F, 1)
    inv_x, ph_x = consts[F:, 0:1], consts[F:, 1:2]     # (F, 1)

    y_norm = scale / (height + 1e-6) if normalize else 1.0
    x_norm = scale / (width + 1e-6) if normalize else 1.0

    row0 = (i * tile_h + 1).astype(jnp.float32)
    rows = (jax.lax.broadcasted_iota(jnp.int32, (F, tile_h), 1).astype(jnp.float32)
            + row0) * y_norm                           # (F, tile_h)
    cols = (jax.lax.broadcasted_iota(jnp.int32, (F, width), 1).astype(jnp.float32)
            + 1.0) * x_norm                            # (F, W)

    # cos(v) == sin(v + pi/2): one EUP pass, only on the slabs (separable).
    y_blk = jnp.sin(rows * inv_y + ph_y)               # (F, tile_h)
    x_blk = jnp.sin(cols * inv_x + ph_x)               # (F, W)

    y_full = jnp.broadcast_to(y_blk[:, :, None], (F, tile_h, width))
    x_full = jnp.broadcast_to(x_blk[:, None, :], (F, tile_h, width))
    out_ref[0] = jnp.concatenate([y_full, x_full], axis=0).astype(out_ref.dtype)


def _nomask_nhwc_kernel(consts_ref, out_ref, *, num_pos_feats, tile_h,
                        height, width, normalize, scale):
    """mask=None, NHWC output: separable slabs + one lane select per vreg."""
    F = num_pos_feats
    C = 2 * F
    i = pl.program_id(1)
    consts = consts_ref[...]                           # (2, C)
    inv = consts[0].reshape(1, 1, C)
    phase = consts[1].reshape(1, 1, C)

    y_norm = scale / (height + 1e-6) if normalize else 1.0
    x_norm = scale / (width + 1e-6) if normalize else 1.0

    row0 = (i * tile_h + 1).astype(jnp.float32)
    rows = (jax.lax.broadcasted_iota(jnp.int32, (tile_h, 1, C), 0).astype(jnp.float32)
            + row0) * y_norm                           # (tile_h, 1, C)
    cols = (jax.lax.broadcasted_iota(jnp.int32, (1, width, C), 1).astype(jnp.float32)
            + 1.0) * x_norm                            # (1, W, C)

    y_slab = jnp.sin(rows * inv + phase)               # (tile_h, 1, C)
    x_slab = jnp.sin(cols * inv + phase)               # (1, W, C)

    lane = jax.lax.broadcasted_iota(jnp.int32, (1, 1, C), 2)
    out = jnp.where(lane < F,
                    jnp.broadcast_to(y_slab, (tile_h, width, C)),
                    jnp.broadcast_to(x_slab, (tile_h, width, C)))
    out_ref[0] = out.astype(out_ref.dtype)


def _mask_nhwc_kernel(mask_ref, consts_ref, out_ref, *, num_pos_feats, tile_h,
                      normalize, scale):
    """Arbitrary mask: H-tiled cumsums on the MXU, NHWC output tile."""
    F = num_pos_feats
    C = 2 * F
    i = pl.program_id(1)

    nm_f32 = 1.0 - mask_ref[0].astype(jnp.float32)     # (H, W) not_mask
    H, W = nm_f32.shape
    nm_bf = nm_f32.astype(jnp.bfloat16)                # exact: values are 0/1

    g = jax.lax.broadcasted_iota(jnp.int32, (tile_h, H), 0) + i * tile_h
    h_idx = jax.lax.broadcasted_iota(jnp.int32, (tile_h, H), 1)
    tri_y = (h_idx <= g).astype(jnp.bfloat16)          # (tile_h, H) cumsum-over-H rows
    sel = (h_idx == g).astype(jnp.bfloat16)            # (tile_h, H) one-hot row gather
    wi = jax.lax.broadcasted_iota(jnp.int32, (W, W), 0)
    wj = jax.lax.broadcasted_iota(jnp.int32, (W, W), 1)
    tri_w = (wi <= wj).astype(jnp.bfloat16)            # (W, W) cumsum-over-W

    # f32 accumulation keeps 0/1 sums exact; rows of a partial last tile
    # (g >= H) produce harmless finite values that Pallas clips on the write.
    y_embed = jnp.dot(tri_y, nm_bf, preferred_element_type=jnp.float32)   # (tile_h, W)
    nm_rows = jnp.dot(sel, nm_bf, preferred_element_type=jnp.float32)     # (tile_h, W)
    x_embed = jnp.dot(nm_rows.astype(jnp.bfloat16), tri_w,
                      preferred_element_type=jnp.float32)                 # (tile_h, W)

    if normalize:
        eps = 1e-6
        col_tot = jnp.sum(nm_f32, axis=0, keepdims=True)    # (1, W)   == y_embed[-1:, :]
        row_tot = jnp.sum(nm_rows, axis=1, keepdims=True)   # (tile_h, 1) == x_embed[:, -1:]
        # Exact edge-only divides (review correctness note), still O(H + W).
        y_embed = y_embed * (scale / (col_tot + eps))
        x_embed = x_embed * (scale / (row_tot + eps))

    consts = consts_ref[...]                           # (2, C)
    inv = consts[0].reshape(1, 1, C)
    phase = consts[1].reshape(1, 1, C)
    lane = jax.lax.broadcasted_iota(jnp.int32, (1, 1, C), 2)
    emb = jnp.where(lane < F, y_embed[:, :, None], x_embed[:, :, None])
    out_ref[0] = jnp.sin(emb * inv + phase).astype(out_ref.dtype)


# ---------------------------------------------------------------------------
# Wrapper
# ---------------------------------------------------------------------------
def _tpu_block_cap():
    kind = ""
    try:
        kind = jax.devices()[0].device_kind.lower()
    except Exception:
        pass
    # v7x has half the VMEM (64 MiB phys / 32 MiB scoped default): keep output
    # blocks at ~2 MiB there; ~4 MiB elsewhere amortizes per-step overhead.
    if "v7" in kind or "tpu7" in kind:
        return 2 << 20
    return 4 << 20


def _tile_rows(H, row_bytes, cap):
    """Largest H tile (multiple of 8, or full H) with output block <= cap."""
    if H * row_bytes <= cap:
        return H
    t = (cap // max(row_bytes, 1)) // 8 * 8
    return min(max(t, 8), H)


def position_embedding_sine(x, mask=None, *, num_pos_feats=64, temperature=10000,
                            normalize=False, scale=None, channels_last=False,
                            out_dtype=jnp.float32, tile_h=None):
    """Pallas equivalent of PositionEmbeddingSine.forward(x, mask).

    `x` only contributes its shape (B, C_in, H, W).  Returns (B, 2F, H, W)
    unless channels_last=True (then (B, H, W, 2F), skipping the transpose).
    `tile_h` optionally overrides the H tile size (testing / tuning).
    """
    if scale is not None and normalize is False:
        raise ValueError("normalize should be True if scale is passed")
    if scale is None:
        scale = 2 * math.pi

    B, _, H, W = x.shape
    F = num_pos_feats
    C = 2 * F

    # Per-channel constants: 1/dim_t duplicated for [pos_y | pos_x], and the
    # phase folding cos into sin (pi/2 on odd channels).  num_pos_feats is
    # assumed even (the reference stack/flatten requires this too).
    idx = jnp.arange(F, dtype=jnp.float32)
    dim_t = temperature ** (2.0 * jnp.floor(idx / 2.0) / F)
    inv_dim_t = (1.0 / dim_t).astype(jnp.float32)
    inv_full = jnp.concatenate([inv_dim_t, inv_dim_t])                     # (C,)
    phase = jnp.where((jnp.arange(C) % 2) == 1,
                      jnp.float32(math.pi / 2.0), jnp.float32(0.0))        # (C,)

    itemsize = jnp.dtype(out_dtype).itemsize
    row_bytes = W * C * itemsize
    th = int(tile_h) if tile_h is not None else _tile_rows(H, row_bytes, _tpu_block_cap())
    n_h = pl.cdiv(H, th)
    cparams = pltpu.CompilerParams(
        dimension_semantics=("parallel", "parallel"),
        vmem_limit_bytes=32 << 20)   # v5e's scoped default is 16 MiB; raise it.

    if mask is None:
        if (not channels_last) and (W % 128 == 0):
            # Full-W last dim -> lane-dense stores: write NCHW directly.
            consts_col = jnp.stack([inv_full, phase], axis=1)              # (C, 2)
            kernel = functools.partial(
                _nomask_nchw_kernel, num_pos_feats=F, tile_h=th,
                height=H, width=W, normalize=normalize, scale=scale)
            return pl.pallas_call(
                kernel,
                out_shape=jax.ShapeDtypeStruct((B, C, H, W), out_dtype),
                grid_spec=pltpu.PrefetchScalarGridSpec(
                    num_scalar_prefetch=0, grid=(B, n_h),
                    in_specs=[pl.BlockSpec((C, 2), lambda b, h: (0, 0))],
                    out_specs=pl.BlockSpec((1, C, th, W),
                                           lambda b, h: (b, 0, h, 0))),
                compiler_params=cparams,
            )(consts_col)

        consts_row = jnp.stack([inv_full, phase], axis=0)                  # (2, C)
        kernel = functools.partial(
            _nomask_nhwc_kernel, num_pos_feats=F, tile_h=th,
            height=H, width=W, normalize=normalize, scale=scale)
        out_nhwc = pl.pallas_call(
            kernel,
            out_shape=jax.ShapeDtypeStruct((B, H, W, C), out_dtype),
            grid_spec=pltpu.PrefetchScalarGridSpec(
                num_scalar_prefetch=0, grid=(B, n_h),
                in_specs=[pl.BlockSpec((2, C), lambda b, h: (0, 0))],
                out_specs=pl.BlockSpec((1, th, W, C),
                                       lambda b, h: (b, h, 0, 0))),
            compiler_params=cparams,
        )(consts_row)
    else:
        consts_row = jnp.stack([inv_full, phase], axis=0)                  # (2, C)
        mask_i8 = mask.astype(jnp.int8)     # 1 byte/elem DMA; logical-not in-kernel
        kernel = functools.partial(
            _mask_nhwc_kernel, num_pos_feats=F, tile_h=th,
            normalize=normalize, scale=scale)
        out_nhwc = pl.pallas_call(
            kernel,
            out_shape=jax.ShapeDtypeStruct((B, H, W, C), out_dtype),
            grid_spec=pltpu.PrefetchScalarGridSpec(
                num_scalar_prefetch=0, grid=(B, n_h),
                in_specs=[pl.BlockSpec((1, H, W), lambda b, h: (b, 0, 0)),
                          pl.BlockSpec((2, C), lambda b, h: (0, 0))],
                out_specs=pl.BlockSpec((1, th, W, C),
                                       lambda b, h: (b, h, 0, 0))),
            compiler_params=cparams,
        )(mask_i8, consts_row)

    if channels_last:
        return out_nhwc
    # TODO(synk): masked / small-W outputs still pay one XLA transpose here;
    # consumers that accept NHWC should pass channels_last=True to skip it.
    return jnp.transpose(out_nhwc, (0, 3, 1, 2))


# ---------------------------------------------------------------------------
# Pure-JAX reference (transcription of the PyTorch forward) for verification
# ---------------------------------------------------------------------------
def _reference(x, mask=None, *, num_pos_feats=64, temperature=10000,
               normalize=False, scale=None):
    if scale is None:
        scale = 2 * math.pi
    B, _, H, W = x.shape
    if mask is None:
        mask = jnp.zeros((B, H, W), dtype=bool)
    not_mask = jnp.logical_not(mask)
    y_embed = jnp.cumsum(not_mask.astype(jnp.float32), axis=1)
    x_embed = jnp.cumsum(not_mask.astype(jnp.float32), axis=2)
    if normalize:
        eps = 1e-6
        y_embed = y_embed / (y_embed[:, -1:, :] + eps) * scale
        x_embed = x_embed / (x_embed[:, :, -1:] + eps) * scale
    i = jnp.arange(num_pos_feats, dtype=jnp.float32)
    dim_t = temperature ** (2.0 * jnp.floor(i / 2.0) / num_pos_feats)
    pos_x = x_embed[:, :, :, None] / dim_t
    pos_y = y_embed[:, :, :, None] / dim_t
    pos_x = jnp.stack((jnp.sin(pos_x[..., 0::2]), jnp.cos(pos_x[..., 1::2])),
                      axis=4).reshape(B, H, W, num_pos_feats)
    pos_y = jnp.stack((jnp.sin(pos_y[..., 0::2]), jnp.cos(pos_y[..., 1::2])),
                      axis=4).reshape(B, H, W, num_pos_feats)
    pos = jnp.concatenate((pos_y, pos_x), axis=3)
    return jnp.transpose(pos, (0, 3, 1, 2))


if __name__ == "__main__":
    key = jax.random.PRNGKey(0)
    # x only contributes its shape/device: (B, C_in, H, W).
    x = jax.random.normal(key, (2, 4, 16, 16), dtype=jnp.float32)

    # 1) Common path: mask=None, default config (NHWC kernel since W=16).
    out = jax.block_until_ready(position_embedding_sine(x, num_pos_feats=64))
    ref = _reference(x, num_pos_feats=64)
    assert out.shape == (2, 128, 16, 16), out.shape
    assert jnp.allclose(out, ref, atol=1e-4, rtol=1e-4), "mismatch (mask=None)"

    # 2) Partial last H tile (tile_h does not divide H).
    out_p = jax.block_until_ready(
        position_embedding_sine(x, num_pos_feats=64, tile_h=6))
    assert jnp.allclose(out_p, ref, atol=1e-4, rtol=1e-4), "mismatch (partial tile)"

    # 3) Direct-NCHW path (W multiple of 128), normalized.
    x2 = jax.random.normal(jax.random.PRNGKey(2), (1, 4, 8, 128), dtype=jnp.float32)
    out2 = jax.block_until_ready(
        position_embedding_sine(x2, num_pos_feats=64, normalize=True))
    ref2 = _reference(x2, num_pos_feats=64, normalize=True)
    assert out2.shape == (1, 128, 8, 128), out2.shape
    assert jnp.allclose(out2, ref2, atol=1e-4, rtol=1e-4), "mismatch (NCHW direct)"

    # 4) Masked + normalized path (MXU cumsums), including a partial H tile.
    mask = jax.random.bernoulli(jax.random.PRNGKey(1), 0.3, (2, 16, 16))
    ref_m = _reference(x, mask, num_pos_feats=64, normalize=True)
    out_m = jax.block_until_ready(
        position_embedding_sine(x, mask, num_pos_feats=64, normalize=True))
    assert jnp.allclose(out_m, ref_m, atol=2e-3, rtol=2e-3), "mismatch (masked)"
    out_mp = jax.block_until_ready(
        position_embedding_sine(x, mask, num_pos_feats=64, normalize=True, tile_h=6))
    assert jnp.allclose(out_mp, ref_m, atol=2e-3, rtol=2e-3), "mismatch (masked partial)"

    print("KERNEL_OK")
</pallas_src>

<mosaic_0001>
module attributes {stable_mosaic.version = 11 : i64} {
  func.func @_nomask_nhwc_kernel(%arg0: i32, %arg1: i32, %arg2: memref<2x128xf32, #tpu.memory_space<vmem>>, %arg3: memref<1x16x16x128xf32, #tpu.memory_space<vmem>>) attributes {dimension_semantics = [#tpu.dimension_semantics<parallel>, #tpu.dimension_semantics<parallel>], iteration_bounds = array<i64: 2, 1>, scalar_prefetch = 0 : i64, scratch_operands = 0 : i64, tpu.core_type = #tpu.core_type<tc>, window_params = [{pipeline_mode = #tpu.pipeline_mode<synchronous>, transform_indices = @transform_0, window_bounds = array<i64: 2, 128>}, {transform_indices = @transform_1, window_bounds = array<i64: 1, 16, 16, 128>}]} {
    %c0 = arith.constant 0 : index
    %c0_0 = arith.constant 0 : index
    %0 = vector.load %arg2[%c0, %c0_0] : memref<2x128xf32, #tpu.memory_space<vmem>>, vector<2x128xf32>
    %1 = vector.extract_strided_slice %0 {offsets = [0, 0], sizes = [1, 128], strides = [1, 1]} : vector<2x128xf32> to vector<1x128xf32>
    %2 = vector.shape_cast %1 : vector<1x128xf32> to vector<128xf32>
    %3 = vector.shape_cast %2 : vector<128xf32> to vector<1x1x128xf32>
    %4 = vector.extract_strided_slice %0 {offsets = [1, 0], sizes = [1, 128], strides = [1, 1]} : vector<2x128xf32> to vector<1x128xf32>
    %5 = vector.shape_cast %4 : vector<1x128xf32> to vector<128xf32>
    %6 = vector.shape_cast %5 : vector<128xf32> to vector<1x1x128xf32>
    %c16_i32 = arith.constant 16 : i32
    %7 = arith.muli %arg1, %c16_i32 : i32
    %c1_i32 = arith.constant 1 : i32
    %8 = arith.addi %7, %c1_i32 : i32
    %9 = arith.sitofp %8 : i32 to f32
    %10 = tpu.iota {dimensions = array<i32: 0>} : vector<16x1x128xi32>
    %11 = arith.sitofp %10 : vector<16x1x128xi32> to vector<16x1x128xf32>
    %12 = vector.broadcast %9 : f32 to vector<16x1x128xf32>
    %13 = arith.addf %11, %12 : vector<16x1x128xf32>
    %cst = arith.constant 1.000000e+00 : f32
    %14 = vector.broadcast %cst : f32 to vector<16x1x128xf32>
    %15 = arith.mulf %13, %14 : vector<16x1x128xf32>
    %16 = tpu.iota {dimensions = array<i32: 1>} : vector<1x16x128xi32>
    %17 = arith.sitofp %16 : vector<1x16x128xi32> to vector<1x16x128xf32>
    %cst_1 = arith.constant 1.000000e+00 : f32
    %18 = vector.broadcast %cst_1 : f32 to vector<1x16x128xf32>
    %19 = arith.addf %17, %18 : vector<1x16x128xf32>
    %cst_2 = arith.constant 1.000000e+00 : f32
    %20 = vector.broadcast %cst_2 : f32 to vector<1x16x128xf32>
    %21 = arith.mulf %19, %20 : vector<1x16x128xf32>
    %22 = vector.broadcast %3 : vector<1x1x128xf32> to vector<16x1x128xf32>
    %23 = arith.mulf %15, %22 : vector<16x1x128xf32>
    %24 = vector.broadcast %6 : vector<1x1x128xf32> to vector<16x1x128xf32>
    %25 = arith.addf %23, %24 : vector<16x1x128xf32>
    %26 = math.sin %25 : vector<16x1x128xf32>
    %27 = vector.broadcast %3 : vector<1x1x128xf32> to vector<1x16x128xf32>
    %28 = arith.mulf %21, %27 : vector<1x16x128xf32>
    %29 = vector.broadcast %6 : vector<1x1x128xf32> to vector<1x16x128xf32>
    %30 = arith.addf %28, %29 : vector<1x16x128xf32>
    %31 = math.sin %30 : vector<1x16x128xf32>
    %32 = tpu.iota {dimensions = array<i32: 2>} : vector<1x1x128xi32>
    %c64_i32 = arith.constant 64 : i32
    %33 = vector.broadcast %c64_i32 : i32 to vector<1x1x128xi32>
    %34 = arith.cmpi slt, %32, %33 : vector<1x1x128xi32>
    %35 = vector.shape_cast %26 : vector<16x1x128xf32> to vector<16x1x128xf32>
    %36 = vector.broadcast %35 : vector<16x1x128xf32> to vector<16x16x128xf32>
    %37 = vector.shape_cast %31 : vector<1x16x128xf32> to vector<1x16x128xf32>
    %38 = vector.broadcast %37 : vector<1x16x128xf32> to vector<16x16x128xf32>
    %39 = vector.shape_cast %34 : vector<1x1x128xi1> to vector<1x1x128xi1>
    %40 = vector.broadcast %39 : vector<1x1x128xi1> to vector<16x16x128xi1>
    %41 = arith.select %40, %36, %38 : vector<16x16x128xi1>, vector<16x16x128xf32>
    %c0_3 = arith.constant 0 : index
    %c0_4 = arith.constant 0 : index
    %c0_5 = arith.constant 0 : index
    %c0_6 = arith.constant 0 : index
    %42 = vector.load %arg3[%c0_3, %c0_4, %c0_5, %c0_6] : memref<1x16x16x128xf32, #tpu.memory_space<vmem>>, vector<1x16x16x128xf32>
    %43 = vector.shape_cast %42 : vector<1x16x16x128xf32> to vector<16x16x128xf32>
    %44 = vector.shape_cast %41 : vector<16x16x128xf32> to vector<1x16x16x128xf32>
    tpu.vector_store %arg3[%c0_3, %c0_4, %c0_5, %c0_6], %44 {strides = array<i32>} : memref<1x16x16x128xf32, #tpu.memory_space<vmem>>, vector<1x16x16x128xf32>,
    return
  }
  func.func @transform_0(%arg0: i32, %arg1: i32) -> (i32, i32) {
    %c0_i32 = arith.constant 0 : i32
    %c0_i32_0 = arith.constant 0 : i32
    %c0_i32_1 = arith.constant 0 : i32
    return %c0_i32, %c0_i32_0 : i32, i32
  }
  func.func @transform_1(%arg0: i32, %arg1: i32) -> (i32, i32, i32, i32) {
    %c0_i32 = arith.constant 0 : i32
    %c0_i32_0 = arith.constant 0 : i32
    %c0_i32_1 = arith.constant 0 : i32
    return %arg0, %arg1, %c0_i32, %c0_i32_0 : i32, i32, i32, i32
  }
}

</mosaic_0001>

<bundles_post_ra>
// kernel: tpu_custom_call.1
= control target key start
LH: loop header
LB: loop body
LE: loop exit
PB: predicated region body
PF: predicated region fallthrough
CT: control target
= control target key end

     0   :  { %6 = vsyncpa [#allocation3], 0  ;;  %s4484_s0 = inlined_call_operand.hbm [shape: f32[2,128], index: 0, kind: input, shape index: {}]   ;;  %s4485_s1 = inlined_call_operand.hbm [shape: f32[2,16,16,128], index: 1, kind: output, shape index: {}]  }
   0x1   :  { %7 = vsyncpa [#allocation4], 0 }
   0x2   :  { %9 = vsyncpa [#allocation4 + $0x1], 0  ;;  %s2743_s6 = smov 0   ;;  %s2745_s7 = smov 0  }
   0x3   :  { %s2747_s8 = smov 0   ;;  %s2749_s9 = smov 0  }
   0x4   :  { %s2751_s10 = smov 0   ;;  %s2753_s11 = smov 0  }
   0x5 LB: > { %s2309_s12 = sadd.s32 4294967295, %s2721_s11   ;;  %s2310_s13 = sadd.s32 4294967294, %s2721_s11   ;;  %s2721_s11 = sphi %s2753_s11, %s15_s11   ;;  %s2717_s10 = sphi %s2751_s10, %s4528_s10   ;;  %s2713_s9 = sphi %s2749_s9, %s4527_s9   ;;  %s2709_s8 = sphi %s2747_s8, %s4526_s8   ;;  %s2705_s7 = sphi %s2745_s7, %s4525_s7   ;;  %s2701_s6 = sphi %s2743_s6, %s4524_s6  }
   0x6   : > { %s27_s14 = sadd.s32 1, %s2717_s10  ;;  %s57_s15 = sadd.s32 1, %s2709_s8 }
   0x7   : > { %p29_p0 = scmp.ge.s32.totalorder %s27_s14, 2  ;;  %p67_p1 = scmp.ne.s32.totalorder %s2709_s8, %s2705_s7 }
   0x8   : > { %p68_p2 = scmp.eq.s32.totalorder %s2309_s12, 1  ;;  %p73_p3 = scmp.ne.s32.totalorder %s2705_s7, %s2701_s6 }
   0x9   : > { %s4530_s14 = smov (%p29_p0, %s27_s14), 0  ;;  %p74_p5 = scmp.eq.s32.totalorder %s2310_s13, 1 }
   0xa   : > { %p2783_p4 = por %p68_p2, %p67_p1  ;;  %s52_s17 = ssub.s32 %s2717_s10, %s4530_s14 }
   0xb   : > { %p2311_p6 = scmp.ge.s32.totalorder %s2721_s11, 1  ;;  %p55_p7 = scmp.eq.s32.totalorder %s52_s17, 0 }
   0xc   : > { %p2790_p8 = por %p74_p5, %p73_p3  ;;  %p81_p9 = scmp.lt.s32.totalorder %s2721_s11, 3 }
   0xd   : > { %s2796_s19 = scalar_select %p55_p7, %s2709_s8, %s57_s15  }
   0xe   : > { %p2798_p10 = pnand %p2311_p6, %p81_p9  ;;  %p2802_p11 = scmp.eq.s32.totalorder %s2309_s12, 0 }
   0xf   : > { %s2723_s22 = smov [#allocation2]  }
  0x10   : > { %p2472_p12 = pneg %p2798_p10  ;;  %s94_s23 = sshll.u32 %s2723_s22, 4  ;;  %s95_s23 = int_to_ptr.vmem [resolvable:$true] %s94_s23 }
  0x11   : > { %s2626_s24 = scalar_lea.vmem %s95_s23, 32  ;;  %p2634_p5 = scmp.lt.s32.totalorder %s95_s23, %s95_s23 }
  0x12   : > { %p2473_p13 = pnand %p2802_p11, %p2472_p12  ;;  %p2627_p1 = scmp.ne.s32.totalorder %s95_s23, %s2626_s24 }
  0x13   : > { %p2635_p6 = scmp.lt.s32.totalorder %s2626_s24, %s2626_s24 }
  0x14   : > { %p2617_p0 = pneg %p2473_p13 }
  0x15   : > { %p2636_p7 = por %p2635_p6, %p2634_p5 }
  0x16   : > { %p2629_p2 = pnand %p2627_p1, %p2617_p0 }
  0x18   : > { %p2630_p3 = pneg %p2629_p2 }
  0x1a   : > { %p2637_p9 = pnand %p2636_p7, %p2630_p3 }
  0x1c   : > { %2640 = shalt.err (!%p2637_p9)
}
  0x1d   : > { %2475 = dma.hbm_to_vmem [thread:$0]  (!%p2473_p13), %s4484_s0, 32, %s95_s23, [#allocation3]  }
  0x1e   : > { %107 = sbr.rel (%p2798_p10) target bundleno = 561 (0x231), region = 24 }
  0x23   : > { %2692 = dma.done.wait (%p2802_p11), [#allocation3], 32  }
  0x24   : > { %2694 = vsyncadd (%p2802_p11), [#allocation3], 4294967264  ;;  %v160_v0 = vlaneseq  ;;  %v2822_v8 = vld [vmem:[#allocation2] sm:$0x3]  ;;  %v2724_v46 = vmov 683565275  }
  0x25   : > { %v2825_v9 = vrot.slane %v2822_v8, 1  ;;  %v168_v29 = vmul.f32 2.0, %v2822_v8  ;;  %v2849_v36 = vmul.f32 3.0, %v2822_v8  ;;  %v2852_v37 = vmul.f32 4.0, %v2822_v8  ;;  %s119_s27 = sand.u32 1, %s2705_s7   ;;  %s2393_s30 = sshll.u32 %s2713_s9, 12 }
  0x26   : > { %v161_v1 = vshrl.u32 %v160_v0, 7  ;;  %v2725_v48 = vmov 2475754826   ;;  %v2726_v50 = vmov 2131351028   ;;  %s2315_s28 = sshll.u32 %s119_s27, 8  ;;  %s4425_s5 = scalar_lea.hbm %s4485_s1, %s2393_s30 }
  0x27   : > { %v2832_v13 = vadd.f32 %v2825_v9, %v2822_v8  ;;  %v2856_v41 = vadd.f32 %v2825_v9, %v168_v29  ;;  %v2727_v52 = vmov 2102212464   ;;  %v2728_v54 = vmov 920167782   ;;  %s3196_s29 = scalar_lea.vmem [#allocation5], %s2315_s28  ;;  %s4439_s9 = scalar_lea.sflag [#allocation4], %s119_s27 }
  0x28   : > { %v163_v2 = vcvt.s32.f32 %v161_v1  ;;  %v2820_v3 = vsub.s32 0, %v161_v1  ;;  %v162_v4 = vadd.s32 8, %v161_v1  ;;  %v1874_v5 = vsub.s32 1, %v161_v1  ;;  %s2236_s2 = sshll.u32 %s3196_s29, 4  ;;  %s2730_s13 = smov [#allocation5]   ;;  %s4427_s2 = int_to_ptr.vmem [resolvable:$true] %s2236_s2 }
  0x29   : > { %v202_v16 = vand.u32 2147483647, %v2832_v13  ;;  %v205_v17 = vand.u32 2139095040, %v2832_v13  ;;  %v2729_v61 = vmov 1326507024   ;;  %vm204_vm12 = vcmp.lt.s32.totalorder %v2832_v13, 0 }
  0x2a   : > { %v165_v6 = vadd.f32 1.0, %v163_v2  ;;  %v164_v7 = vcvt.s32.f32 %v162_v4  ;;  %v1869_v10 = vrot.slane %v2822_v8, %v2820_v3  ;;  %v1875_v12 = vrot.slane %v2822_v8, %v1874_v5  ;;  %s2641_s12 = scalar_lea.vmem %s4427_s2, 4096  ;;  %s2645_s15 = sshll.u32 %s2730_s13, 4  ;;  %s2646_s15 = int_to_ptr.vmem [resolvable:$false] %s2645_s15 }
  0x2b   : > { %v206_v20 = vshrl.u32 %v205_v17, 23  ;;  %v209_v21 = vand.u32 8388607, %v202_v16  ;;  %vm2952_vm14 = vcmp.le.f32.partialorder %v202_v16, 0.7853982  ;;  %p2642_p10 = scmp.ne.s32.totalorder %s4427_s2, %s2641_s12  ;;  %s2647_s17 = scalar_lea.vmem %s2646_s15, 8192 }
  0x2c   : > { %v166_v11 = vadd.f32 1.0, %v164_v7  ;;  %v1870_v14 = vmul.f32 %v1869_v10, %v165_v6  ;;  %p2648_p13 = scmp.lt.s32.totalorder %s4427_s2, %s2646_s15  ;;  %p2649_p0 = scmp.lt.s32.totalorder %s2647_s17, %s2641_s12 }
  0x2d   : > { %v2316_v24 = vadd.s32 4294967169, %v206_v20  ;;  %v210_v30 = vor.u32 8388608, %v209_v21  ;;  %p2643_p11 = pnand %p2642_p10, %p2783_p4 }
  0x2e   : > { %v1871_v15 = vmul.f32 %v1869_v10, %v166_v11  ;;  %v2836_v18 = vadd.f32 %v1875_v12, %v1870_v14  ;;  %p2650_p1 = por %p2649_p0, %p2648_p13 }
  0x2f   : > { %v212_v28 = vadd.s32 1, %v2316_v24  ;;  %v2858_v42 = vshll.u32 %v210_v30, 8  ;;  %p2644_p12 = pneg %p2643_p11 }
  0x30   : > { %v2838_v19 = vadd.f32 %v1875_v12, %v1871_v15  ;;  %v1878_v22 = vand.u32 2147483647, %v2836_v18  ;;  %v1881_v23 = vand.u32 2139095040, %v2836_v18 }
  0x31   : > { %vm213_vm0 = vcmp.gt.s32.totalorder %v212_v28, 0  ;;  %p2651_p2 = pnand %p2650_p1, %p2644_p12 }
  0x32   : > { %v1882_v25 = vshrl.u32 %v1881_v23, 23  ;;  %v1885_v26 = vand.u32 8388607, %v1878_v22  ;;  %v1985_v27 = vand.u32 2139095040, %v2838_v19  ;;  %v214_v34 = vsel %vm213_vm0, %v212_v28, 0 }
  0x33   : > { %v215_v38 = vshrl.u32 %v214_v34, 5  ;;  %v216_v39 = vand.u32 31, %v214_v34  ;;  %v1982_v40 = vand.u32 2147483647, %v2838_v19 }
  0x34   : > { %v2380_v31 = vadd.s32 4294967169, %v1882_v25  ;;  %v1886_v32 = vor.u32 8388608, %v1885_v26  ;;  %v1986_v33 = vshrl.u32 %v1985_v27, 23 }
  0x35   : > { %v217_v45 = vsub.s32 32, %v216_v39  ;;  %v219_v47 = vshll.u32 %v2724_v46, %v216_v39  ;;  %v222_v49 = vshll.u32 %v2725_v48, %v216_v39  ;;  %v225_v51 = vshll.u32 %v2726_v50, %v216_v39 }
  0x36   : > { %v1888_v35 = vadd.s32 1, %v2380_v31  ;;  %v2860_v43 = vshll.u32 %v1886_v32, 8  ;;  %v2862_v44 = vadd.s32 4294967169, %v1986_v33  ;;  %v228_v53 = vshll.u32 %v2727_v52, %v216_v39 }
  0x37   : > { %v231_v55 = vshll.u32 %v2728_v54, %v216_v39  ;;  %vm234_vm2 = vcmp.lt.s32.totalorder %v215_v38, 1  ;;  %vm235_vm3 = vcmp.lt.s32.totalorder %v215_v38, 2  ;;  %v218_v56 = vshrl.u32 %v2724_v46, %v217_v45 }
  0x38   : > { %vm1889_vm1 = vcmp.gt.s32.totalorder %v1888_v35, 0  ;;  %v220_v57 = vshrl.u32 %v2725_v48, %v217_v45  ;;  %v223_v58 = vshrl.u32 %v2726_v50, %v217_v45  ;;  %v226_v59 = vshrl.u32 %v2727_v52, %v217_v45 }
  0x39   : > { %v229_v60 = vshrl.u32 %v2728_v54, %v217_v45  ;;  %v232_v62 = vshrl.u32 %v2729_v61, %v217_v45  ;;  %vm236_vm4 = vcmp.lt.s32.totalorder %v215_v38, 3  ;;  %vm237_vm5 = vcmp.lt.s32.totalorder %v215_v38, 4 }
  0x3a   : > { %v221_v63 = vor.u32 %v220_v57, %v219_v47  ;;  %v224_v1 = vor.u32 %v223_v58, %v222_v49  ;;  %v227_v2 = vor.u32 %v226_v59, %v225_v51  ;;  %v1890_v4 = vsel %vm1889_vm1, %v1888_v35, 0 }
  0x3b   : > { %v230_v5 = vor.u32 %v229_v60, %v228_v53  ;;  %v233_v6 = vor.u32 %v232_v62, %v231_v55  ;;  %v1891_v7 = vshrl.u32 %v1890_v4, 5  ;;  %v1892_v10 = vand.u32 31, %v1890_v4 }
  0x3c   : > { %v238_v11 = vsel %vm234_vm2, %v218_v56, %v221_v63  ;;  %v239_v12 = vsel %vm237_vm5, %v227_v2, 2102212464  ;;  %v242_v14 = vsel %vm234_vm2, %v221_v63, %v224_v1  ;;  %v246_v15 = vsel %vm234_vm2, %v224_v1, %v227_v2 }
  0x3d   : > { %v240_v17 = vsel %vm236_vm4, %v224_v1, %v239_v12  ;;  %v243_v20 = vsel %vm237_vm5, %v230_v5, 920167782  ;;  %v247_v21 = vsel %vm237_vm5, %v233_v6, 1326507024  ;;  %v1893_v23 = vsub.s32 32, %v1892_v10 }
  0x3e   : > { %v241_v24 = vsel %vm235_vm3, %v238_v11, %v240_v17  ;;  %v244_v25 = vsel %vm236_vm4, %v227_v2, %v243_v20  ;;  %v248_v26 = vsel %vm236_vm4, %v230_v5, %v247_v21  ;;  %v1895_v27 = vshll.u32 %v2724_v46, %v1892_v10 }
  0x3f   : > { %v245_v28 = vsel %vm235_vm3, %v242_v14, %v244_v25  ;;  %v249_v29 = vsel %vm235_vm3, %v246_v15, %v248_v26  ;;  %v257_v30 = vmul.u32 %v2858_v42, %v241_v24  ;;  %v1894_v31 = vshrl.u32 %v2724_v46, %v1893_v23 }
  0x40   : > { %v2889_v32 = vmul.u32.u64.low %v2858_v42, %v249_v29  ;;  %v2890_v33 = vmul.u32.u64.high %v2858_v42, %v249_v29, %v2889_v32  ;;  %v2893_v34 = vmul.u32.u64.low %v2858_v42, %v245_v28  ;;  %v2894_v35 = vmul.u32.u64.high %v2858_v42, %v245_v28, %v2893_v34 }
  0x41   : > { %v1896_v39 = vshrl.u32 %v2725_v48, %v1893_v23  ;;  %v1898_v45 = vshll.u32 %v2725_v48, %v1892_v10  ;;  %v1899_v38 = vshrl.u32 %v2726_v50, %v1893_v23  ;;  %v1901_v47 = vshll.u32 %v2726_v50, %v1892_v10 }
  0x42   : > { %v1902_v49 = vshrl.u32 %v2727_v52, %v1893_v23  ;;  %v1904_v51 = vshll.u32 %v2727_v52, %v1892_v10  ;;  %v1905_v53 = vshrl.u32 %v2728_v54, %v1893_v23  ;;  %v1907_v55 = vshll.u32 %v2728_v54, %v1892_v10 }
  0x43   : > { %v1897_v56 = vor.u32 %v1896_v39, %v1895_v27  ;;  %v1900_v42 = vor.u32 %v1899_v38, %v1898_v45  ;;  %v1908_v57 = vshrl.u32 %v2729_v61, %v1893_v23  ;;  %vm1910_vm6 = vcmp.lt.s32.totalorder %v1891_v7, 1 }
  0x44   : > { %vm259_vm7 = vc.u32 %v2890_v33, %v2893_v34  ;;  %v260_v58 = vadd.s32 1, %v2894_v35  ;;  %v1903_v59 = vor.u32 %v1902_v49, %v1901_v47  ;;  %v1992_v60 = vadd.s32 1, %v2862_v44 }
  0x45   : > { %v1906_v62 = vor.u32 %v1905_v53, %v1904_v51  ;;  %v1909_v63 = vor.u32 %v1908_v57, %v1907_v55  ;;  %vm1911_vm8 = vcmp.lt.s32.totalorder %v1891_v7, 2  ;;  %vm1912_vm9 = vcmp.lt.s32.totalorder %v1891_v7, 3 }
  0x46   : > { %v261_v1 = vsel %vm259_vm7, %v260_v58, %v2894_v35  ;;  %vm1913_vm10 = vcmp.lt.s32.totalorder %v1891_v7, 4  ;;  %v1914_v2 = vsel %vm1910_vm6, %v1894_v31, %v1897_v56  ;;  %v1918_v4 = vsel %vm1910_vm6, %v1897_v56, %v1900_v42 }
  0x47   : > { %v262_v5 = vadd.s32 %v261_v1, %v257_v30  ;;  %v1915_v6 = vsel %vm1913_vm10, %v1903_v59, 2102212464  ;;  %v1919_v10 = vsel %vm1913_vm10, %v1906_v62, 920167782  ;;  %v1922_v11 = vsel %vm1910_vm6, %v1900_v42, %v1903_v59 }
  0x48   : > { %v1916_v12 = vsel %vm1912_vm9, %v1900_v42, %v1915_v6  ;;  %v1920_v14 = vsel %vm1912_vm9, %v1903_v59, %v1919_v10  ;;  %v1923_v15 = vsel %vm1913_vm10, %v1909_v63, 1326507024  ;;  %vm1993_vm11 = vcmp.gt.s32.totalorder %v1992_v60, 0 }
  0x49   : > { %v263_v44 = vadd.s32 536870912, %v262_v5  ;;  %v1921_v17 = vsel %vm1911_vm8, %v1918_v4, %v1920_v14  ;;  %v1924_v20 = vsel %vm1912_vm9, %v1906_v62, %v1923_v15  ;;  %v309_v21 = vand.u32 2139095040, %v2856_v41 }
  0x4a   : > { %v1917_v23 = vsel %vm1911_vm8, %v1914_v2, %v1916_v12  ;;  %v1925_v24 = vsel %vm1911_vm8, %v1922_v11, %v1924_v20  ;;  %v2919_v25 = vmul.u32.u64.low %v2860_v43, %v1921_v17  ;;  %v2920_v26 = vmul.u32.u64.high %v2860_v43, %v1921_v17, %v2919_v25 }
  0x4b   : > { %v264_v27 = vshrl.u32 %v263_v44, 30  ;;  %v2924_v28 = vmul.u32.u64.low %v2860_v43, %v1925_v24  ;;  %v2925_v29 = vmul.u32.u64.high %v2860_v43, %v1925_v24, %v2924_v28  ;;  %v1994_v30 = vsel %vm1993_vm11, %v1992_v60, 0 }
  0x4c   : > { %v2928_v31 = vand.u32 127, %v160_v0  ;;  %v1989_v32 = vand.u32 8388607, %v1982_v40  ;;  %v1996_v35 = vand.u32 31, %v1994_v30  ;;  %v1933_v39 = vmul.u32 %v2860_v43, %v1917_v23 }
  0x4d   : > { %v265_v7 = vshll.u32 %v264_v27, 30  ;;  %v310_v45 = vshrl.u32 %v309_v21, 23  ;;  %v2934_v38 = vmul.f32 5.0, %v2822_v8  ;;  %v288_v47 = vsub.s32 4, %v264_v27 }
  0x4e   : > { %v1936_v49 = vadd.s32 1, %v2920_v26  ;;  %v2939_v51 = vadd.f32 %v2825_v9, %v2849_v36  ;;  %v2943_v0 = vadd.f32 %v2825_v9, %v2852_v37  ;;  %vm1935_vm13 = vc.u32 %v2925_v29, %v2919_v25 }
  0x4f   : > { %v2946_v53 = vsub.s32 %v262_v5, %v265_v7  ;;  %v1997_v8 = vsub.s32 32, %v1996_v35  ;;  %v1990_v55 = vor.u32 8388608, %v1989_v32  ;;  %v306_v37 = vand.u32 2147483647, %v2856_v41 }
  0x50   : > { %v1937_v36 = vsel %vm1935_vm13, %v1936_v49, %v2920_v26  ;;  %v2959_v57 = vshrl.u32 %v1994_v30, 5  ;;  %v2320_v58 = vadd.s32 4294967169, %v310_v45  ;;  %v289_v59 = vsel %vm204_vm12, %v288_v47, %v264_v27 }
  0x51   : > { %v268_v56 = vsub.s32 0, %v2946_v53  ;;  %v1938_v42 = vadd.s32 %v1937_v36, %v1933_v39  ;;  %v1999_v60 = vshll.u32 %v2724_v46, %v1996_v35  ;;  %v2002_v16 = vshll.u32 %v2725_v48, %v1996_v35 }
  0x52   : > { %v2008_v62 = vshll.u32 %v2727_v52, %v1996_v35  ;;  %v2000_v2 = vshrl.u32 %v2725_v48, %v1997_v8  ;;  %v2003_v4 = vshrl.u32 %v2726_v50, %v1997_v8  ;;  %v2005_v5 = vshll.u32 %v2726_v50, %v1996_v35 }
  0x53   : > { %v2317_v63 = vmin.u32 %v268_v56, %v2946_v53  ;;  %v1939_v1 = vadd.s32 536870912, %v1938_v42  ;;  %v2006_v6 = vshrl.u32 %v2727_v52, %v1997_v8  ;;  %v2009_v10 = vshrl.u32 %v2728_v54, %v1997_v8 }
  0x54   : > { %v2972_v11 = vshll.u32 %v1990_v55, 8  ;;  %v258_v12 = vadd.s32 %v2893_v34, %v2890_v33  ;;  %v2011_v15 = vshll.u32 %v2728_v54, %v1996_v35  ;;  %v2012_v44 = vshrl.u32 %v2729_v61, %v1997_v8 }
  0x55   : > { %v270_v14 = vclz %v2317_v63  ;;  %v291_v17 = vsel %vm2952_vm14, 0, %v289_v59  ;;  %v2980_v20 = vshrl.u32 %v1939_v1, 30  ;;  %v2010_v21 = vor.u32 %v2009_v10, %v2008_v62 }
  0x56   : > { %v316_v23 = vadd.s32 1, %v2320_v58  ;;  %v2001_v26 = vor.u32 %v2000_v2, %v1999_v60  ;;  %v2004_v27 = vor.u32 %v2003_v4, %v2002_v16  ;;  %vm2017_vm15 = vcmp.lt.s32.totalorder %v2959_v57, 4 }
  0x57   : > { %v2318_v24 = vadd.s32 4294967294, %v270_v14  ;;  %v1941_v28 = vshll.u32 %v2980_v20, 30  ;;  %v1998_v33 = vshrl.u32 %v2724_v46, %v1997_v8  ;;  %v2007_v34 = vor.u32 %v2006_v6, %v2005_v5 }
  0x58   : > { %vm2014_vm0 = vcmp.lt.s32.totalorder %v2959_v57, 1  ;;  %v2013_v30 = vor.u32 %v2012_v44, %v2011_v15  ;;  %vm2016_vm2 = vcmp.lt.s32.totalorder %v2959_v57, 3  ;;  %v2023_v32 = vsel %vm2017_vm15, %v2010_v21, 920167782 }
  0x59   : > { %vm2319_vm1 = vcmp.lt.s32.totalorder %v2318_v24, 0  ;;  %v2989_v7 = vsub.s32 %v1938_v42, %v1941_v28  ;;  %vm2015_vm3 = vcmp.lt.s32.totalorder %v2959_v57, 2  ;;  %v2019_v39 = vsel %vm2017_vm15, %v2007_v34, 2102212464 }
  0x5a   : > { %v273_v35 = vsel %vm2319_vm1, 0, %v2318_v24  ;;  %v2022_v8 = vsel %vm2014_vm0, %v2001_v26, %v2004_v27  ;;  %v2018_v55 = vsel %vm2014_vm0, %v1998_v33, %v2001_v26  ;;  %v2024_v56 = vsel %vm2016_vm2, %v2007_v34, %v2023_v32 }
  0x5b   : > { %v274_v45 = vsub.s32 32, %v273_v35  ;;  %v275_v47 = vshll.u32 %v2946_v53, %v273_v35  ;;  %v278_v49 = vsub.s32 4294967266, %v273_v35  ;;  %v1944_v36 = vsub.s32 0, %v2989_v7 }
  0x5c   : > { %v2026_v42 = vsel %vm2014_vm0, %v2004_v27, %v2007_v34  ;;  %v2020_v53 = vsel %vm2016_vm2, %v2004_v27, %v2019_v39  ;;  %v2027_v60 = vsel %vm2017_vm15, %v2013_v30, 1326507024  ;;  %v2025_v62 = vsel %vm2015_vm3, %v2022_v8, %v2024_v56 }
  0x5d   : > { %v276_v58 = vshrl.u32 %v258_v12, %v274_v45  ;;  %v279_v59 = vadd.s32 127, %v278_v49  ;;  %v2381_v16 = vmin.u32 %v1944_v36, %v2989_v7  ;;  %v2028_v63 = vsel %vm2016_vm2, %v2010_v21, %v2027_v60 }
  0x5e   : > { %v3015_v1 = vand.u32 8388607, %v306_v37  ;;  %v2029_v5 = vsel %vm2015_vm3, %v2026_v42, %v2028_v63  ;;  %vm317_vm4 = vcmp.gt.s32.totalorder %v316_v23, 0  ;;  %v295_v6 = vadd.s32 3, %v291_v17 }
  0x5f   : > { %v277_v2 = vor.u32 %v276_v58, %v275_v47  ;;  %v280_v4 = vshll.u32 %v279_v59, 23  ;;  %vm1880_vm5 = vcmp.lt.s32.totalorder %v2836_v18, 0  ;;  %v1946_v10 = vclz %v2381_v16 }
  0x60   : > { %v2021_v12 = vsel %vm2015_vm3, %v2018_v55, %v2020_v53  ;;  %v3023_v44 = vmul.u32.u64.low %v2972_v11, %v2029_v5  ;;  %v3024_v21 = vmul.u32.u64.high %v2972_v11, %v2029_v5, %v3023_v44  ;;  %v318_v28 = vsel %vm317_vm4, %v316_v23, 0 }
  0x61   : > { %v281_v14 = vor.u32 4788187, %v280_v4  ;;  %v284_v15 = vcvt.s32.f32 %v277_v2  ;;  %v2382_v24 = vadd.s32 4294967294, %v1946_v10  ;;  %v1964_v33 = vsub.s32 4, %v2980_v20 }
  0x62   : > { %v3027_v26 = vmul.u32.u64.low %v2972_v11, %v2025_v62  ;;  %v3028_v27 = vmul.u32.u64.high %v2972_v11, %v2025_v62, %v3027_v26  ;;  %v314_v34 = vor.u32 8388608, %v3015_v1  ;;  %v320_v57 = vand.u32 31, %v318_v28 }
  0x63   : > { %v282_v17 = vand.u32 2147483647, %v281_v14  ;;  %v3033_v30 = vand.u32 3, %v295_v6  ;;  %v1934_v32 = vadd.s32 %v2919_v25, %v2925_v29  ;;  %vm2383_vm6 = vcmp.lt.s32.totalorder %v2382_v24, 0 }
  0x64   : > { %v410_v35 = vand.u32 2147483647, %v2939_v51  ;;  %v1949_v45 = vsel %vm2383_vm6, 0, %v2382_v24  ;;  %v2037_v47 = vmul.u32 %v2972_v11, %v2021_v12  ;;  %vm2039_vm7 = vc.u32 %v3024_v21, %v3027_v26 }
  0x65   : > { %v285_v39 = vmul.f32 %v284_v15, %v282_v17  ;;  %v1950_v23 = vsub.s32 32, %v1949_v45  ;;  %v1951_v49 = vshll.u32 %v2989_v7, %v1949_v45  ;;  %v1954_v8 = vsub.s32 4294967266, %v1949_v45 }
  0x66   : > { %v2040_v36 = vadd.s32 1, %v3028_v27  ;;  %vm3045_vm8 = vcmp.le.f32.partialorder %v1878_v22, 0.7853982  ;;  %v3052_v29 = vsel %vm1880_vm5, %v1964_v33, %v2980_v20  ;;  %v3054_v11 = vshrl.u32 %v318_v28, 5 }
  0x67   : > { %v286_v55 = vxor.u32 2147483648, %v285_v39  ;;  %v321_v56 = vsub.s32 32, %v320_v57  ;;  %v1952_v42 = vshrl.u32 %v1934_v32, %v1950_v23  ;;  %v1955_v7 = vadd.s32 127, %v1954_v8 }
  0x68   : > { %v2041_v58 = vsel %vm2039_vm7, %v2040_v36, %v3028_v27  ;;  %v323_v59 = vshll.u32 %v2724_v46, %v320_v57  ;;  %v326_v16 = vshll.u32 %v2725_v48, %v320_v57  ;;  %v329_v4 = vshll.u32 %v2726_v50, %v320_v57 }
  0x69   : > { %v287_v22 = vsel %vm204_vm12, %v286_v55, %v285_v39  ;;  %v2042_v53 = vadd.s32 %v2041_v58, %v2037_v47  ;;  %v324_v60 = vshrl.u32 %v2725_v48, %v321_v56  ;;  %v1953_v62 = vor.u32 %v1952_v42, %v1951_v49 }
  0x6a   : > { %v290_v20 = vsel %vm2952_vm14, %v2832_v13, %v287_v22  ;;  %v1956_v63 = vshll.u32 %v1955_v7, 23  ;;  %v327_v1 = vshrl.u32 %v2726_v50, %v321_v56  ;;  %v330_v5 = vshrl.u32 %v2727_v52, %v321_v56 }
  0x6b   : > { %2540 = vcosq.f32 %v290_v20  ;;  %v2043_v2 = vadd.s32 536870912, %v2042_v53  ;;  %v1960_v10 = vcvt.s32.f32 %v1953_v62  ;;  %v322_v12 = vshrl.u32 %v2724_v46, %v321_v56 }
  0x6c   : > { %2542 = vsinq.f32 %v290_v20  ;;  %v1957_v6 = vor.u32 4788187, %v1956_v63  ;;  %v325_v15 = vor.u32 %v324_v60, %v323_v59  ;;  %v332_v43 = vshll.u32 %v2727_v52, %v320_v57 }
  0x6d   : > { %v2044_v14 = vshrl.u32 %v2043_v2, 30  ;;  %v333_v44 = vshrl.u32 %v2728_v54, %v321_v56  ;;  %v328_v27 = vor.u32 %v327_v1, %v326_v16  ;;  %v335_v28 = vshll.u32 %v2728_v54, %v320_v57 }
  0x6e   : > { %v1958_v24 = vand.u32 2147483647, %v1957_v6  ;;  %v336_v17 = vshrl.u32 %v2729_v61, %v321_v56  ;;  %v331_v32 = vor.u32 %v330_v5, %v329_v4  ;;  %vm338_vm9 = vcmp.lt.s32.totalorder %v3054_v11, 1 }
  0x6f   : > { %v2045_v33 = vshll.u32 %v2044_v14, 30  ;;  %v334_v39 = vor.u32 %v333_v44, %v332_v43  ;;  %v1967_v47 = vsel %vm3045_vm8, 0, %v3052_v29  ;;  %vm341_vm10 = vcmp.lt.s32.totalorder %v3054_v11, 4 }
  0x70   : > { %v1961_v45 = vmul.f32 %v1960_v10, %v1958_v24  ;;  %v337_v23 = vor.u32 %v336_v17, %v335_v28  ;;  %vm1984_vm11 = vcmp.lt.s32.totalorder %v2838_v19, 0  ;;  %vm340_vm12 = vcmp.lt.s32.totalorder %v3054_v11, 3 }
  0x71   : > { %v3079_v49 = vsub.s32 %v2042_v53, %v2045_v33  ;;  %v343_v57 = vsel %vm341_vm10, %v331_v32, 2102212464  ;;  %v3084_v8 = vshll.u32 %v314_v34, 8  ;;  %vm339_vm13 = vcmp.lt.s32.totalorder %v3054_v11, 2 }
  0x72   : > { %v1962_v36 = vxor.u32 2147483648, %v1961_v45  ;;  %v346_v55 = vsel %vm338_vm9, %v325_v15, %v328_v27  ;;  %v413_v29 = vand.u32 2139095040, %v2939_v51  ;;  %v2068_v42 = vsub.s32 4, %v2044_v14 }
  0x73   : > { %v2048_v56 = vsub.s32 0, %v3079_v49  ;;  %v342_v7 = vsel %vm338_vm9, %v322_v12, %v325_v15  ;;  %v347_v58 = vsel %vm341_vm10, %v334_v39, 920167782  ;;  %vm297_vm14 = vcmp.lt.s32.totalorder %v3033_v30, 2 }
  0x74   : > { %v1963_v34 = vsel %vm1880_vm5, %v1962_v36, %v1961_v45  ;;  %vm3100_vm15 = vcmp.le.f32.partialorder %v1982_v40, 0.7853982  ;;  %v344_v22 = vsel %vm340_vm12, %v328_v27, %v343_v57  ;;  %v348_v53 = vsel %vm340_vm12, %v331_v32, %v347_v58 }
  0x75   : > { %v351_v60 = vsel %vm341_vm10, %v337_v23, 1326507024  ;;  %v1966_v16 = vsel %vm3045_vm8, %v2836_v18, %v1963_v34  ;;  %v2385_v20 = vmin.u32 %v2048_v56, %v3079_v49  ;;  %v349_v40 = vsel %vm339_vm13, %v346_v55, %v348_v53 }
  0x76   : > { %v350_v62 = vsel %vm338_vm9, %v328_v27, %v331_v32  ;;  %2544 = vcosq.f32 %v1966_v16  ;;  %v352_v63 = vsel %vm340_vm12, %v334_v39, %v351_v60  ;;  %vm298_vm0 = vcmp.eq.s32.totalorder %v3033_v30, 0 }
  0x77   : > { %v3121_v1 = vmul.u32.u64.low %v3084_v8, %v349_v40  ;;  %v3122_v2 = vmul.u32.u64.high %v3084_v8, %v349_v40, %v3121_v1  ;;  %vm301_vm1 = vcmp.eq.s32.totalorder %v3033_v30, 2  ;;  %2546 = vsinq.f32 %v1966_v16 }
  0x78   : > { %v2050_v25 = vclz %v2385_v20  ;;  %v2541_v4 = vpop.eup %2540  ;;  %v1971_v5 = vadd.s32 3, %v1967_v47  ;;  %v345_v6 = vsel %vm339_vm13, %v342_v7, %v344_v22  ;;  %v353_v10 = vsel %vm339_vm13, %v350_v62, %v352_v63 }
  0x79   : > { %v414_v12 = vshrl.u32 %v413_v29, 23  ;;  %v2543_v15 = vpop.eup %2542  ;;  %v302_v43 = vxor.u32 2147483648, %v2541_v4  ;;  %v3132_v24 = vmul.u32.u64.low %v3084_v8, %v353_v10  ;;  %v3133_v27 = vmul.u32.u64.high %v3084_v8, %v353_v10, %v3132_v24 }
  0x7a   : > { %v2386_v44 = vadd.s32 4294967294, %v2050_v25  ;;  %v299_v28 = vxor.u32 2147483648, %v2543_v15  ;;  %v2069_v17 = vsel %vm1984_vm11, %v2068_v42, %v2044_v14  ;;  %v417_v32 = vand.u32 8388607, %v410_v35 }
  0x7b   : > { %v2324_v33 = vadd.s32 4294967169, %v414_v12  ;;  %v2038_v11 = vadd.s32 %v3027_v26, %v3024_v21  ;;  %v361_v39 = vmul.u32 %v3084_v8, %v345_v6  ;;  %v364_v45 = vadd.s32 1, %v3122_v2 }
  0x7c   : > { %vm2387_vm2 = vcmp.lt.s32.totalorder %v2386_v44, 0  ;;  %v300_v47 = vsel %vm298_vm0, %v2541_v4, %v299_v28  ;;  %v303_v23 = vsel %vm301_vm1, %v302_v43, %v2543_v15  ;;  %v2071_v21 = vsel %vm3100_vm15, 0, %v2069_v17 }
  0x7d   : > { %v2053_v57 = vsel %vm2387_vm2, 0, %v2386_v44  ;;  %v420_v14 = vadd.s32 1, %v2324_v33  ;;  %vm294_vm3 = vweird.f32 %v2832_v13  ;;  %v1972_v26 = vand.u32 3, %v1971_v5 }
  0x7e   : > { %v2054_v36 = vsub.s32 32, %v2053_v57  ;;  %v2055_v55 = vshll.u32 %v3079_v49, %v2053_v57  ;;  %v2058_v29 = vsub.s32 4294967266, %v2053_v57  ;;  %vm363_vm4 = vc.u32 %v3133_v27, %v3121_v1 }
  0x7f   : > { %vm421_vm5 = vcmp.gt.s32.totalorder %v420_v14, 0  ;;  %v304_v8 = vsel %vm297_vm14, %v300_v47, %v303_v23  ;;  %vm2088_vm6 = vcmp.lt.s32.totalorder %v2928_v31, 64  ;;  %v365_v49 = vsel %vm363_vm4, %v364_v45, %v3122_v2 }
  0x80   : > { %v2056_v56 = vshrl.u32 %v2038_v11, %v2054_v36  ;;  %v2059_v42 = vadd.s32 127, %v2058_v29  ;;  %v2075_v7 = vadd.s32 3, %v2071_v21  ;;  %v366_v58 = vadd.s32 %v365_v49, %v361_v39 }
  0x81   : > { %v418_v34 = vor.u32 8388608, %v417_v32  ;;  %v422_v22 = vsel %vm421_vm5, %v420_v14, 0  ;;  %vm1970_vm7 = vweird.f32 %v2836_v18  ;;  %v305_v30 = vsel %vm294_vm3, nan, %v304_v8 }
  0x82   : > { %v2057_v53 = vor.u32 %v2056_v56, %v2055_v55  ;;  %v2060_v60 = vshll.u32 %v2059_v42, 23  ;;  %v424_v16 = vand.u32 31, %v422_v22  ;;  %vm1973_vm8 = vcmp.lt.s32.totalorder %v1972_v26, 2 }
  0x83   : > { %vm1974_vm9 = vcmp.eq.s32.totalorder %v1972_v26, 0  ;;  %v367_v20 = vadd.s32 536870912, %v366_v58  ;;  %v2545_v40 = vpop.eup %2544  ;;  %vm1977_vm10 = vcmp.eq.s32.totalorder %v1972_v26, 2  ;;  %v3161_v5 = vand.u32 3, %v2075_v7 }
  0x84   : > { %v2061_v62 = vor.u32 4788187, %v2060_v60  ;;  %v2064_v63 = vcvt.s32.f32 %v2057_v53  ;;  %v425_v2 = vsub.s32 32, %v424_v16  ;;  %v2547_v25 = vpop.eup %2546  ;;  %v1978_v4 = vxor.u32 2147483648, %v2545_v40 }
  0x85   : > { %v368_v6 = vshrl.u32 %v367_v20, 30  ;;  %v3163_v10 = vshll.u32 %v418_v34, 8  ;;  %v1975_v12 = vxor.u32 2147483648, %v2547_v25  ;;  %v3168_v13 = vrot.slane %v305_v30, %v2820_v3 }
  0x86   : > { %v2062_v15 = vand.u32 2147483647, %v2061_v62  ;;  %v3172_v43 = vadd.s32 %v3121_v1, %v3133_v27  ;;  %v1979_v44 = vsel %vm1977_vm10, %v1978_v4, %v2547_v25  ;;  %v427_v28 = vshll.u32 %v2724_v46, %v424_v16 }
  0x87   : > { %v369_v24 = vshll.u32 %v368_v6, 30  ;;  %v428_v17 = vshrl.u32 %v2725_v48, %v425_v2  ;;  %v1976_v33 = vsel %vm1974_vm9, %v2545_v40, %v1975_v12  ;;  %v430_v11 = vshll.u32 %v2725_v48, %v424_v16 }
  0x88   : > { %v2065_v32 = vmul.f32 %v2064_v63, %v2062_v15  ;;  %v433_v39 = vshll.u32 %v2726_v50, %v424_v16  ;;  %v1980_v45 = vsel %vm1973_vm8, %v1976_v33, %v1979_v44  ;;  %v431_v1 = vshrl.u32 %v2726_v50, %v425_v2 }
  0x89   : > { %v3180_v47 = vsub.s32 %v366_v58, %v369_v24  ;;  %v434_v27 = vshrl.u32 %v2727_v52, %v425_v2  ;;  %v3186_v23 = vsel %vm1970_vm7, nan, %v1980_v45  ;;  %vm308_vm12 = vcmp.lt.s32.totalorder %v2856_v41, 0 }
  0x8a   : > { %v2066_v57 = vxor.u32 2147483648, %v2065_v32  ;;  %v423_v14 = vshrl.u32 %v422_v22, 5  ;;  %v426_v36 = vshrl.u32 %v2724_v46, %v425_v2  ;;  %v2155_v55 = vsel %vm2088_vm6, %v3168_v13, %v3186_v23 }
  0x8b   : > { %v372_v29 = vsub.s32 0, %v3180_v47  ;;  %v429_v21 = vor.u32 %v428_v17, %v427_v28  ;;  %v436_v26 = vshll.u32 %v2727_v52, %v424_v16  ;;  %2187 = vst [vmem:[%s3196_s29] sm:$0xff] %v2155_v55  ;;  %v437_v8 = vshrl.u32 %v2728_v54, %v425_v2 }
  0x8c   : > { %v2067_v18 = vsel %vm1984_vm11, %v2066_v57, %v2065_v32  ;;  %v439_v56 = vshll.u32 %v2728_v54, %v424_v16  ;;  %v440_v42 = vshrl.u32 %v2729_v61, %v425_v2  ;;  %v432_v58 = vor.u32 %v431_v1, %v430_v11 }
  0x8d   : > { %v2070_v49 = vsel %vm3100_vm15, %v2838_v19, %v2067_v18  ;;  %v2321_v7 = vmin.u32 %v372_v29, %v3180_v47  ;;  %v435_v34 = vor.u32 %v434_v27, %v433_v39  ;;  %v438_v22 = vor.u32 %v437_v8, %v436_v26 }
  0x8e   : > { %2548 = vcosq.f32 %v2070_v49  ;;  %v441_v53 = vor.u32 %v440_v42, %v439_v56  ;;  %vm442_vm13 = vcmp.lt.s32.totalorder %v423_v14, 1  ;;  %v392_v30 = vsub.s32 4, %v368_v6 }
  0x8f   : > { %2550 = vsinq.f32 %v2070_v49  ;;  %v374_v60 = vclz %v2321_v7  ;;  %v517_v20 = vand.u32 2139095040, %v2943_v0  ;;  %vm443_vm11 = vcmp.lt.s32.totalorder %v423_v14, 2 }
  0x90   : > { %vm444_vm14 = vcmp.lt.s32.totalorder %v423_v14, 3  ;;  %vm445_vm0 = vcmp.lt.s32.totalorder %v423_v14, 4  ;;  %v446_v16 = vsel %vm442_vm13, %v426_v36, %v429_v21  ;;  %v450_v62 = vsel %vm442_vm13, %v429_v21, %v432_v58 }
  0x91   : > { %v2322_v40 = vadd.s32 4294967294, %v374_v60  ;;  %v447_v59 = vsel %vm445_vm0, %v435_v34, 2102212464  ;;  %v451_v63 = vsel %vm445_vm0, %v438_v22, 920167782  ;;  %v454_v4 = vsel %vm442_vm13, %v432_v58, %v435_v34 }
  0x92   : > { %v448_v2 = vsel %vm444_vm14, %v432_v58, %v447_v59  ;;  %v452_v25 = vsel %vm444_vm14, %v435_v34, %v451_v63  ;;  %v455_v12 = vsel %vm445_vm0, %v441_v53, 1326507024  ;;  %v393_v15 = vsel %vm308_vm12, %v392_v30, %v368_v6 }
  0x93   : > { %vm2323_vm15 = vcmp.lt.s32.totalorder %v2322_v40, 0  ;;  %v453_v44 = vsel %vm443_vm11, %v450_v62, %v452_v25  ;;  %v456_v24 = vsel %vm444_vm14, %v438_v22, %v455_v12  ;;  %v449_v1 = vsel %vm443_vm11, %v446_v16, %v448_v2 }
  0x94   : > { %v377_v28 = vsel %vm2323_vm15, 0, %v2322_v40  ;;  %v457_v17 = vsel %vm443_vm11, %v454_v4, %v456_v24  ;;  %v3214_v33 = vmul.u32.u64.low %v3163_v10, %v453_v44  ;;  %v3215_v32 = vmul.u32.u64.high %v3163_v10, %v453_v44, %v3214_v33 }
  0x95   : > { %v378_v11 = vsub.s32 32, %v377_v28  ;;  %v379_v39 = vshll.u32 %v3180_v47, %v377_v28  ;;  %v382_v45 = vsub.s32 4294967266, %v377_v28  ;;  %v518_v57 = vshrl.u32 %v517_v20, 23 }
  0x96   : > { %v3221_v27 = vmul.u32.u64.low %v3163_v10, %v457_v17  ;;  %v3222_v6 = vmul.u32.u64.high %v3163_v10, %v457_v17, %v3221_v27  ;;  %vm3226_vm1 = vcmp.le.f32.partialorder %v306_v37, 0.7853982  ;;  %v3233_v47 = vadd.f32 %v2825_v9, %v2934_v38 }
  0x97   : > { %v380_v55 = vshrl.u32 %v3172_v43, %v378_v11  ;;  %v383_v29 = vadd.s32 127, %v382_v45  ;;  %v395_v14 = vsel %vm3226_vm1, 0, %v393_v15  ;;  %v465_v21 = vmul.u32 %v3163_v10, %v449_v1 }
  0x98   : > { %v468_v26 = vadd.s32 1, %v3215_v32  ;;  %v2328_v18 = vadd.s32 4294967169, %v518_v57  ;;  %vm2077_vm2 = vcmp.lt.s32.totalorder %v3161_v5, 2  ;;  %v514_v56 = vand.u32 2147483647, %v2943_v0 }
  0x99   : > { %v381_v37 = vor.u32 %v380_v55, %v379_v39  ;;  %v384_v8 = vshll.u32 %v383_v29, 23  ;;  %vm2078_vm3 = vcmp.eq.s32.totalorder %v3161_v5, 0  ;;  %vm2081_vm4 = vcmp.eq.s32.totalorder %v3161_v5, 2 }
  0x9a   : > { %vm467_vm5 = vc.u32 %v3222_v6, %v3214_v33  ;;  %v524_v38 = vadd.s32 1, %v2328_v18  ;;  %v399_v49 = vadd.s32 3, %v395_v14  ;;  %v621_v53 = vand.u32 2139095040, %v3233_v47 }
  0x9b   : > { %v2549_v43 = vpop.eup %2548  ;;  %v385_v42 = vor.u32 4788187, %v384_v8  ;;  %v388_v10 = vcvt.s32.f32 %v381_v37  ;;  %v469_v7 = vsel %vm467_vm5, %v468_v26, %v3215_v32  ;;  %v521_v20 = vand.u32 8388607, %v514_v56 }
  0x9c   : > { %v2551_v58 = vpop.eup %2550  ;;  %v2082_v34 = vxor.u32 2147483648, %v2549_v43  ;;  %v470_v22 = vadd.s32 %v469_v7, %v465_v21  ;;  %vm525_vm7 = vcmp.gt.s32.totalorder %v524_v38, 0  ;;  %vm2074_vm8 = vweird.f32 %v2838_v19 }
  0x9d   : > { %v2079_v60 = vxor.u32 2147483648, %v2551_v58  ;;  %v386_v30 = vand.u32 2147483647, %v385_v42  ;;  %v526_v16 = vsel %vm525_vm7, %v524_v38, 0  ;;  %v3254_v25 = vand.u32 3, %v399_v49 }
  0x9e   : > { %v2083_v40 = vsel %vm2081_vm4, %v2082_v34, %v2551_v58  ;;  %v471_v59 = vadd.s32 536870912, %v470_v22  ;;  %v528_v62 = vand.u32 31, %v526_v16  ;;  %v622_v44 = vshrl.u32 %v621_v53, 23 }
  0x9f   : > { %v2080_v63 = vsel %vm2078_vm3, %v2549_v43, %v2079_v60  ;;  %v389_v2 = vmul.f32 %v388_v10, %v386_v30  ;;  %v522_v28 = vor.u32 8388608, %v521_v20  ;;  %v527_v29 = vshrl.u32 %v526_v16, 5 }
  0xa0   : > { %v2084_v4 = vsel %vm2077_vm2, %v2080_v63, %v2083_v40  ;;  %v3258_v12 = vshrl.u32 %v471_v59, 30  ;;  %v529_v15 = vsub.s32 32, %v528_v62  ;;  %v531_v17 = vshll.u32 %v2724_v46, %v528_v62 }
  0xa1   : > { %v3260_v19 = vsel %vm2074_vm8, nan, %v2084_v4  ;;  %v390_v24 = vxor.u32 2147483648, %v389_v2  ;;  %v534_v5 = vshll.u32 %v2725_v48, %v528_v62  ;;  %v537_v39 = vshll.u32 %v2726_v50, %v528_v62 }
  0xa2   : > { %v2156_v32 = vsel %vm2088_vm6, %v3168_v13, %v3260_v19  ;;  %v473_v11 = vshll.u32 %v3258_v12, 30  ;;  %v532_v1 = vshrl.u32 %v2725_v48, %v529_v15  ;;  %v535_v27 = vshrl.u32 %v2726_v50, %v529_v15 }
  0xa3   : > { %2188 = vst [vmem:[%s3196_s29 + $0x8] sm:$0xff] %v2156_v32  ;;  %v391_v45 = vsel %vm308_vm12, %v390_v24, %v389_v2  ;;  %v538_v57 = vshrl.u32 %v2727_v52, %v529_v15  ;;  %v2332_v14 = vadd.s32 4294967169, %v622_v44  ;;  %v530_v21 = vshrl.u32 %v2724_v46, %v529_v15 }
  0xa4   : > { %v394_v13 = vsel %vm3226_vm1, %v2856_v41, %v391_v45  ;;  %v3279_v55 = vsub.s32 %v470_v22, %v473_v11  ;;  %v540_v26 = vshll.u32 %v2727_v52, %v528_v62  ;;  %v618_v18 = vand.u32 2147483647, %v3233_v47 }
  0xa5   : > { %2552 = vcosq.f32 %v394_v13  ;;  %v533_v8 = vor.u32 %v532_v1, %v531_v17  ;;  %v536_v38 = vor.u32 %v535_v27, %v534_v5  ;;  %v539_v43 = vor.u32 %v538_v57, %v537_v39 }
  0xa6   : > { %2554 = vsinq.f32 %v394_v13  ;;  %v476_v37 = vsub.s32 0, %v3279_v55  ;;  %v541_v36 = vshrl.u32 %v2728_v54, %v529_v15  ;;  %v543_v42 = vshll.u32 %v2728_v54, %v528_v62 }
  0xa7   : > { %v544_v10 = vshrl.u32 %v2729_v61, %v529_v15  ;;  %vm546_vm9 = vcmp.lt.s32.totalorder %v527_v29, 1  ;;  %v562_v7 = vshll.u32 %v522_v28, 8  ;;  %v628_v58 = vadd.s32 1, %v2332_v14 }
  0xa8   : > { %v2325_v49 = vmin.u32 %v476_v37, %v3279_v55  ;;  %v542_v34 = vor.u32 %v541_v36, %v540_v26  ;;  %vm548_vm10 = vcmp.lt.s32.totalorder %v527_v29, 3  ;;  %vm549_vm12 = vcmp.lt.s32.totalorder %v527_v29, 4 }
  0xa9   : > { %v545_v22 = vor.u32 %v544_v10, %v543_v42  ;;  %v466_v53 = vadd.s32 %v3214_v33, %v3222_v6  ;;  %vm547_vm13 = vcmp.lt.s32.totalorder %v527_v29, 2  ;;  %v550_v30 = vsel %vm546_vm9, %v530_v21, %v533_v8 }
  0xaa   : > { %v478_v60 = vclz %v2325_v49  ;;  %v551_v20 = vsel %vm549_vm12, %v539_v43, 2102212464  ;;  %v554_v16 = vsel %vm546_vm9, %v533_v8, %v536_v38  ;;  %v555_v40 = vsel %vm549_vm12, %v542_v34, 920167782 }
  0xab   : > { %v558_v59 = vsel %vm546_vm9, %v536_v38, %v539_v43  ;;  %vm412_vm11 = vcmp.lt.s32.totalorder %v2939_v51, 0  ;;  %v552_v63 = vsel %vm548_vm10, %v536_v38, %v551_v20  ;;  %v556_v2 = vsel %vm548_vm10, %v539_v43, %v555_v40 }
  0xac   : > { %v2326_v62 = vadd.s32 4294967294, %v478_v60  ;;  %v559_v4 = vsel %vm549_vm12, %v545_v22, 1326507024  ;;  %vm398_vm14 = vweird.f32 %v2856_v41  ;;  %v553_v15 = vsel %vm547_vm13, %v550_v30, %v552_v63 }
  0xad   : > { %v557_v33 = vsel %vm547_vm13, %v554_v16, %v556_v2  ;;  %v560_v6 = vsel %vm548_vm10, %v542_v34, %v559_v4  ;;  %vm629_vm0 = vcmp.gt.s32.totalorder %v628_v58, 0  ;;  %vm401_vm1 = vcmp.lt.s32.totalorder %v3254_v25, 2 }
  0xae   : > { %vm2327_vm15 = vcmp.lt.s32.totalorder %v2326_v62, 0  ;;  %v561_v44 = vsel %vm547_vm13, %v558_v59, %v560_v6  ;;  %v3299_v24 = vmul.u32.u64.low %v562_v7, %v557_v33  ;;  %v3300_v28 = vmul.u32.u64.high %v562_v7, %v557_v33, %v3299_v24 }
  0xaf   : > { %v481_v17 = vsel %vm2327_vm15, 0, %v2326_v62  ;;  %v3304_v32 = vmul.u32.u64.low %v562_v7, %v561_v44  ;;  %v3305_v11 = vmul.u32.u64.high %v562_v7, %v561_v44, %v3304_v32  ;;  %v630_v1 = vsel %vm629_vm0, %v628_v58, 0 }
  0xb0   : > { %v482_v5 = vsub.s32 32, %v481_v17  ;;  %v483_v39 = vshll.u32 %v3279_v55, %v481_v17  ;;  %v486_v45 = vsub.s32 4294967266, %v481_v17  ;;  %v496_v27 = vsub.s32 4, %v3258_v12 }
  0xb1   : > { %v569_v57 = vmul.u32 %v562_v7, %v553_v15  ;;  %v625_v13 = vand.u32 8388607, %v618_v18  ;;  %v632_v29 = vand.u32 31, %v630_v1  ;;  %vm405_vm2 = vcmp.eq.s32.totalorder %v3254_v25, 2 }
  0xb2   : > { %v2553_v14 = vpop.eup %2552  ;;  %v484_v21 = vshrl.u32 %v466_v53, %v482_v5  ;;  %v487_v26 = vadd.s32 127, %v486_v45  ;;  %v572_v37 = vadd.s32 1, %v3300_v28  ;;  %vm402_vm3 = vcmp.eq.s32.totalorder %v3254_v25, 0 }
  0xb3   : > { %v2555_v8 = vpop.eup %2554  ;;  %v406_v55 = vxor.u32 2147483648, %v2553_v14  ;;  %vm3316_vm4 = vcmp.le.f32.partialorder %v410_v35, 0.7853982  ;;  %vm571_vm5 = vc.u32 %v3305_v11, %v3299_v24  ;;  %v633_v43 = vsub.s32 32, %v632_v29 }
  0xb4   : > { %v403_v36 = vxor.u32 2147483648, %v2555_v8  ;;  %v485_v42 = vor.u32 %v484_v21, %v483_v39  ;;  %v488_v10 = vshll.u32 %v487_v26, 23  ;;  %v573_v49 = vsel %vm571_vm5, %v572_v37, %v3300_v28 }
  0xb5   : > { %v407_v7 = vsel %vm405_vm2, %v406_v55, %v2555_v8  ;;  %v497_v58 = vsel %vm412_vm11, %v496_v27, %v3258_v12  ;;  %v574_v34 = vadd.s32 %v573_v49, %v569_v57  ;;  %v626_v22 = vor.u32 8388608, %v625_v13 }
  0xb6   : > { %v404_v35 = vsel %vm402_vm3, %v2553_v14, %v403_v36  ;;  %v489_v53 = vor.u32 4788187, %v488_v10  ;;  %v492_v60 = vcvt.s32.f32 %v485_v42  ;;  %v3326_v30 = vshrl.u32 %v630_v1, 5 }
  0xb7   : > { %v408_v20 = vsel %vm401_vm1, %v404_v35, %v407_v7  ;;  %v575_v16 = vadd.s32 536870912, %v574_v34  ;;  %v635_v40 = vshll.u32 %v2724_v46, %v632_v29  ;;  %v636_v59 = vshrl.u32 %v2725_v48, %v633_v43 }
  0xb8   : > { %v409_v62 = vsel %vm398_vm14, nan, %v408_v20  ;;  %v490_v12 = vand.u32 2147483647, %v489_v53  ;;  %v638_v63 = vshll.u32 %v2725_v48, %v632_v29  ;;  %v639_v2 = vshrl.u32 %v2726_v50, %v633_v43 }
  0xb9   : > { %v2096_v4 = vrot.slane %v409_v62, %v2820_v3  ;;  %v576_v15 = vshrl.u32 %v575_v16, 30  ;;  %v641_v25 = vshll.u32 %v2726_v50, %v632_v29  ;;  %v642_v33 = vshrl.u32 %v2727_v52, %v633_v43 }
  0xba   : > { %v493_v6 = vmul.f32 %v492_v60, %v490_v12  ;;  %v644_v44 = vshll.u32 %v2727_v52, %v632_v29  ;;  %v645_v41 = vshrl.u32 %v2728_v54, %v633_v43  ;;  %v647_v28 = vshll.u32 %v2728_v54, %v632_v29 }
  0xbb   : > { %v2157_v17 = vsel %vm2088_vm6, %v2096_v4, %v3186_v23  ;;  %v2158_v32 = vsel %vm2088_vm6, %v2096_v4, %v3260_v19  ;;  %v577_v5 = vshll.u32 %v576_v15, 30  ;;  %v3348_v39 = vshll.u32 %v626_v22, 8 }
  0xbc   : > { %2189 = vst [vmem:[%s3196_s29 + $0x10] sm:$0xff] %v2157_v17  ;;  %2190 = vst [vmem:[%s3196_s29 + $0x18] sm:$0xff] %v2158_v32  ;;  %v494_v45 = vxor.u32 2147483648, %v493_v6  ;;  %v499_v1 = vsel %vm3316_vm4, 0, %v497_v58  ;;  %v634_v27 = vshrl.u32 %v2724_v46, %v633_v43  ;;  %v648_v57 = vshrl.u32 %v2729_v61, %v633_v43  ;;  %v3366_v43 = vld [vmem:[#allocation2] sm:$0x3] }
  0xbd   : > { %v3356_v13 = vsub.s32 %v574_v34, %v577_v5  ;;  %v637_v29 = vor.u32 %v636_v59, %v635_v40  ;;  %v640_v14 = vor.u32 %v639_v2, %v638_v63  ;;  %v643_v21 = vor.u32 %v642_v33, %v641_v25 }
  0xbe   : > { %v495_v26 = vsel %vm412_vm11, %v494_v45, %v493_v6  ;;  %v646_v37 = vor.u32 %v645_v41, %v644_v44  ;;  %v649_v8 = vor.u32 %v648_v57, %v647_v28  ;;  %vm650_vm7 = vcmp.lt.s32.totalorder %v3326_v30, 1 }
  0xbf   : > { %v498_v55 = vsel %vm3316_vm4, %v2939_v51, %v495_v26  ;;  %v580_v36 = vsub.s32 0, %v3356_v13  ;;  %vm653_vm8 = vcmp.lt.s32.totalorder %v3326_v30, 4  ;;  %v172_v42 = vmul.f32 6.0, %v3366_v43 }
  0xc0   : > { %2556 = vcosq.f32 %v498_v55  ;;  %vm651_vm9 = vcmp.lt.s32.totalorder %v3326_v30, 2  ;;  %vm652_vm10 = vcmp.lt.s32.totalorder %v3326_v30, 3  ;;  %v655_v10 = vsel %vm653_vm8, %v643_v21, 2102212464 }
  0xc1   : > { %2558 = vsinq.f32 %v498_v55  ;;  %v2329_v49 = vmin.u32 %v580_v36, %v3356_v13  ;;  %v654_v38 = vsel %vm650_vm7, %v634_v27, %v637_v29  ;;  %v658_v7 = vsel %vm650_vm7, %v637_v29, %v640_v14 }
  0xc2   : > { %v656_v58 = vsel %vm652_vm10, %v640_v14, %v655_v10  ;;  %v659_v34 = vsel %vm653_vm8, %v646_v37, 920167782  ;;  %v662_v22 = vsel %vm650_vm7, %v640_v14, %v643_v21  ;;  %v663_v35 = vsel %vm653_vm8, %v649_v8, 1326507024 }
  0xc3   : > { %v503_v53 = vadd.s32 3, %v499_v1  ;;  %vm516_vm12 = vcmp.lt.s32.totalorder %v2943_v0, 0  ;;  %v582_v60 = vclz %v2329_v49  ;;  %v600_v20 = vsub.s32 4, %v576_v15 }
  0xc4   : > { %v660_v16 = vsel %vm652_vm10, %v643_v21, %v659_v34  ;;  %v664_v40 = vsel %vm652_vm10, %v646_v37, %v663_v35  ;;  %v3380_v59 = vadd.f32 %v2825_v9, %v172_v42  ;;  %v657_v12 = vsel %vm651_vm9, %v654_v38, %v656_v58 }
  0xc5   : > { %v2330_v62 = vadd.s32 4294967294, %v582_v60  ;;  %v661_v63 = vsel %vm651_vm9, %v658_v7, %v660_v16  ;;  %v665_v2 = vsel %vm651_vm9, %v662_v22, %v664_v40  ;;  %v504_v44 = vand.u32 3, %v503_v53 }
  0xc6   : > { %v3389_v4 = vmul.u32.u64.low %v3348_v39, %v665_v2  ;;  %v3390_v25 = vmul.u32.u64.high %v3348_v39, %v665_v2, %v3389_v4  ;;  %v3393_v33 = vmul.u32.u64.low %v3348_v39, %v661_v63  ;;  %v3394_v6 = vmul.u32.u64.high %v3348_v39, %v661_v63, %v3393_v33 }
  0xc7   : > { %v570_v41 = vadd.s32 %v3299_v24, %v3305_v11  ;;  %vm2331_vm13 = vcmp.lt.s32.totalorder %v2330_v62, 0  ;;  %v725_v28 = vand.u32 2139095040, %v3380_v59  ;;  %vm502_vm11 = vweird.f32 %v2939_v51 }
  0xc8   : > { %v585_v30 = vsel %vm2331_vm13, 0, %v2330_v62  ;;  %v601_v17 = vsel %vm516_vm12, %v600_v20, %v576_v15  ;;  %v173_v32 = vmul.f32 7.0, %v3366_v43  ;;  %v673_v27 = vmul.u32 %v3348_v39, %v657_v12 }
  0xc9   : > { %v586_v5 = vsub.s32 32, %v585_v30  ;;  %v587_v45 = vshll.u32 %v3356_v13, %v585_v30  ;;  %v590_v1 = vsub.s32 4294967266, %v585_v30  ;;  %vm3408_vm14 = vcmp.le.f32.partialorder %v514_v56, 0.7853982 }
  0xca   : > { %vm675_vm0 = vc.u32 %v3390_v25, %v3393_v33  ;;  %v676_v11 = vadd.s32 1, %v3394_v6  ;;  %v726_v15 = vshrl.u32 %v725_v28, 23  ;;  %vm505_vm15 = vcmp.lt.s32.totalorder %v504_v44, 2 }
  0xcb   : > { %v588_v57 = vshrl.u32 %v570_v41, %v586_v5  ;;  %v591_v29 = vadd.s32 127, %v590_v1  ;;  %v603_v13 = vsel %vm3408_vm14, 0, %v601_v17  ;;  %v722_v14 = vand.u32 2147483647, %v3380_v59 }
  0xcc   : > { %v677_v39 = vsel %vm675_vm0, %v676_v11, %v3394_v6  ;;  %v2336_v56 = vadd.s32 4294967169, %v726_v15  ;;  %v3420_v21 = vadd.f32 %v2825_v9, %v173_v32  ;;  %vm509_vm1 = vcmp.eq.s32.totalorder %v504_v44, 2 }
  0xcd   : > { %v2557_v26 = vpop.eup %2556  ;;  %v589_v37 = vor.u32 %v588_v57, %v587_v45  ;;  %v592_v8 = vshll.u32 %v591_v29, 23  ;;  %v678_v55 = vadd.s32 %v677_v39, %v673_v27  ;;  %vm506_vm2 = vcmp.eq.s32.totalorder %v504_v44, 0 }
  0xce   : > { %v2559_v36 = vpop.eup %2558  ;;  %v510_v42 = vxor.u32 2147483648, %v2557_v26  ;;  %v607_v10 = vadd.s32 3, %v603_v13  ;;  %v732_v49 = vadd.s32 1, %v2336_v56  ;;  %v729_v35 = vand.u32 8388607, %v722_v14 }
  0xcf   : > { %v507_v38 = vxor.u32 2147483648, %v2559_v36  ;;  %v593_v7 = vor.u32 4788187, %v592_v8  ;;  %v596_v58 = vcvt.s32.f32 %v589_v37  ;;  %v679_v34 = vadd.s32 536870912, %v678_v55 }
  0xd0   : > { %v511_v22 = vsel %vm509_vm1, %v510_v42, %v2559_v36  ;;  %vm733_vm3 = vcmp.gt.s32.totalorder %v732_v49, 0  ;;  %v829_v53 = vand.u32 2139095040, %v3420_v21  ;;  %v3429_v63 = vmul.f32 8.0, %v3366_v43 }
  0xd1   : > { %v508_v60 = vsel %vm506_vm2, %v2557_v26, %v507_v38  ;;  %v594_v20 = vand.u32 2147483647, %v593_v7  ;;  %v3425_v16 = vshrl.u32 %v679_v34, 30  ;;  %v734_v40 = vsel %vm733_vm3, %v732_v49, 0 }
  0xd2   : > { %v512_v62 = vsel %vm505_vm15, %v508_v60, %v511_v22  ;;  %v736_v12 = vand.u32 31, %v734_v40  ;;  %v3433_v6 = vand.u32 3, %v607_v10  ;;  %v730_v30 = vor.u32 8388608, %v729_v35 }
  0xd3   : > { %v513_v2 = vsel %vm502_vm11, nan, %v512_v62  ;;  %v597_v4 = vmul.f32 %v596_v58, %v594_v20  ;;  %v681_v41 = vshll.u32 %v3425_v16, 30  ;;  %v826_v44 = vand.u32 2147483647, %v3420_v21 }
  0xd4   : > { %v2100_v28 = vrot.slane %v513_v2, %v2820_v3  ;;  %v737_v17 = vsub.s32 32, %v736_v12  ;;  %v735_v45 = vshrl.u32 %v734_v40, 5  ;;  %v830_v1 = vshrl.u32 %v829_v53, 23 }
  0xd5   : > { %v598_v32 = vxor.u32 2147483648, %v597_v4  ;;  %v3438_v5 = vsub.s32 %v678_v55, %v681_v41  ;;  %v739_v11 = vshll.u32 %v2724_v46, %v736_v12  ;;  %v742_v15 = vshll.u32 %v2725_v48, %v736_v12 }
  0xd6   : > { %v2159_v51 = vsel %vm2088_vm6, %v2100_v28, %v3186_v23  ;;  %v2160_v27 = vsel %vm2088_vm6, %v2100_v28, %v3260_v19  ;;  %v740_v13 = vshrl.u32 %v2725_v48, %v737_v17  ;;  %v745_v39 = vshll.u32 %v2726_v50, %v736_v12 }
  0xd7   : > { %2191 = vst [vmem:[%s3196_s29 + $0x20] sm:$0xff] %v2159_v51  ;;  %2192 = vst [vmem:[%s3196_s29 + $0x28] sm:$0xff] %v2160_v27  ;;  %v599_v57 = vsel %vm516_vm12, %v598_v32, %v597_v4  ;;  %v684_v29 = vsub.s32 0, %v3438_v5  ;;  %v743_v26 = vshrl.u32 %v2726_v50, %v737_v17  ;;  %v746_v37 = vshrl.u32 %v2727_v52, %v737_v17 }
  0xd8   : > { %v602_v56 = vsel %vm3408_vm14, %v2943_v0, %v599_v57  ;;  %v748_v8 = vshll.u32 %v2727_v52, %v736_v12  ;;  %v674_v55 = vadd.s32 %v3393_v33, %v3390_v25  ;;  %v2340_v42 = vadd.s32 4294967169, %v830_v1 }
  0xd9   : > { %2560 = vcosq.f32 %v602_v56  ;;  %v2333_v36 = vmin.u32 %v684_v29, %v3438_v5  ;;  %v741_v10 = vor.u32 %v740_v13, %v739_v11  ;;  %v744_v49 = vor.u32 %v743_v26, %v742_v15 }
  0xda   : > { %2562 = vsinq.f32 %v602_v56  ;;  %v749_v38 = vshrl.u32 %v2728_v54, %v737_v17  ;;  %v738_v7 = vshrl.u32 %v2724_v46, %v737_v17  ;;  %v747_v58 = vor.u32 %v746_v37, %v745_v39 }
  0xdb   : > { %v686_v24 = vclz %v2333_v36  ;;  %v3466_v34 = vshll.u32 %v730_v30, 8  ;;  %v751_v35 = vshll.u32 %v2728_v54, %v736_v12  ;;  %v752_v53 = vshrl.u32 %v2729_v61, %v737_v17 }
  0xdc   : > { %v750_v22 = vor.u32 %v749_v38, %v748_v8  ;;  %vm754_vm4 = vcmp.lt.s32.totalorder %v735_v45, 1  ;;  %vm756_vm5 = vcmp.lt.s32.totalorder %v735_v45, 3  ;;  %vm757_vm7 = vcmp.lt.s32.totalorder %v735_v45, 4 }
  0xdd   : > { %v2334_v25 = vadd.s32 4294967294, %v686_v24  ;;  %v836_v33 = vadd.s32 1, %v2340_v42  ;;  %v753_v60 = vor.u32 %v752_v53, %v751_v35  ;;  %vm755_vm8 = vcmp.lt.s32.totalorder %v735_v45, 2 }
  0xde   : > { %v759_v20 = vsel %vm757_vm7, %v747_v58, 2102212464  ;;  %v762_v40 = vsel %vm754_vm4, %v741_v10, %v744_v49  ;;  %v758_v62 = vsel %vm754_vm4, %v738_v7, %v741_v10  ;;  %v763_v4 = vsel %vm757_vm7, %v750_v22, 920167782 }
  0xdf   : > { %vm2335_vm9 = vcmp.lt.s32.totalorder %v2334_v25, 0  ;;  %v760_v2 = vsel %vm756_vm5, %v744_v49, %v759_v20  ;;  %vm609_vm10 = vcmp.lt.s32.totalorder %v3433_v6, 2  ;;  %vm620_vm12 = vcmp.lt.s32.totalorder %v3233_v47, 0 }
  0xe0   : > { %v689_v12 = vsel %vm2335_vm9, 0, %v2334_v25  ;;  %v764_v41 = vsel %vm756_vm5, %v747_v58, %v763_v4  ;;  %v766_v28 = vsel %vm754_vm4, %v744_v49, %v747_v58  ;;  %v767_v30 = vsel %vm757_vm7, %v753_v60, 1326507024 }
  0xe1   : > { %vm606_vm13 = vweird.f32 %v2943_v0  ;;  %v690_v17 = vsub.s32 32, %v689_v12  ;;  %v691_v32 = vshll.u32 %v3438_v5, %v689_v12  ;;  %v694_v1 = vsub.s32 4294967266, %v689_v12 }
  0xe2   : > { %v765_v51 = vsel %vm755_vm8, %v762_v40, %v764_v41  ;;  %v761_v27 = vsel %vm755_vm8, %v758_v62, %v760_v2  ;;  %v768_v11 = vsel %vm756_vm5, %v750_v22, %v767_v30  ;;  %vm837_vm11 = vcmp.gt.s32.totalorder %v836_v33, 0 }
  0xe3   : > { %v3483_v15 = vmul.u32.u64.low %v3466_v34, %v765_v51  ;;  %v3484_v57 = vmul.u32.u64.high %v3466_v34, %v765_v51, %v3483_v15  ;;  %v692_v29 = vshrl.u32 %v674_v55, %v690_v17  ;;  %v695_v13 = vadd.s32 127, %v694_v1 }
  0xe4   : > { %v769_v39 = vsel %vm755_vm8, %v766_v28, %v768_v11  ;;  %v3494_v26 = vand.u32 8388607, %v826_v44  ;;  %v838_v37 = vsel %vm837_vm11, %v836_v33, 0  ;;  %vm3498_vm14 = vcmp.le.f32.partialorder %v618_v18, 0.7853982 }
  0xe5   : > { %v3489_v56 = vmul.u32.u64.low %v3466_v34, %v769_v39  ;;  %v3490_v5 = vmul.u32.u64.high %v3466_v34, %v769_v39, %v3489_v56  ;;  %v693_v55 = vor.u32 %v692_v29, %v691_v32  ;;  %v696_v36 = vshll.u32 %v695_v13, 23 }
  0xe6   : > { %v704_v45 = vsub.s32 4, %v3425_v16  ;;  %v840_v42 = vand.u32 31, %v838_v37  ;;  %v2561_v10 = vpop.eup %2560  ;;  %vm610_vm0 = vcmp.eq.s32.totalorder %v3433_v6, 0  ;;  %vm613_vm15 = vcmp.eq.s32.totalorder %v3433_v6, 2 }
  0xe7   : > { %v777_v49 = vmul.u32 %v3466_v34, %v761_v27  ;;  %v780_v38 = vadd.s32 1, %v3484_v57  ;;  %v2563_v24 = vpop.eup %2562  ;;  %v614_v7 = vxor.u32 2147483648, %v2561_v10  ;;  %v697_v18 = vor.u32 4788187, %v696_v36 }
  0xe8   : > { %v700_v58 = vcvt.s32.f32 %v693_v55  ;;  %v841_v22 = vsub.s32 32, %v840_v42  ;;  %v611_v35 = vxor.u32 2147483648, %v2563_v24  ;;  %vm779_vm1 = vc.u32 %v3490_v5, %v3483_v15 }
  0xe9   : > { %v834_v53 = vor.u32 8388608, %v3494_v26  ;;  %v843_v25 = vshll.u32 %v2724_v46, %v840_v42  ;;  %v615_v33 = vsel %vm613_vm15, %v614_v7, %v2563_v24  ;;  %v698_v60 = vand.u32 2147483647, %v697_v18 }
  0xea   : > { %v705_v34 = vsel %vm620_vm12, %v704_v45, %v3425_v16  ;;  %v781_v20 = vsel %vm779_vm1, %v780_v38, %v3484_v57  ;;  %v612_v40 = vsel %vm610_vm0, %v2561_v10, %v611_v35  ;;  %v844_v2 = vshrl.u32 %v2725_v48, %v841_v22 }
  0xeb   : > { %v782_v62 = vadd.s32 %v781_v20, %v777_v49  ;;  %v846_v4 = vshll.u32 %v2725_v48, %v840_v42  ;;  %v616_v12 = vsel %vm609_vm10, %v612_v40, %v615_v33  ;;  %v701_v41 = vmul.f32 %v700_v58, %v698_v60 }
  0xec   : > { %v839_v28 = vshrl.u32 %v838_v37, 5  ;;  %v847_v30 = vshrl.u32 %v2726_v50, %v841_v22  ;;  %v617_v16 = vsel %vm606_vm13, nan, %v616_v12  ;;  %v845_v32 = vor.u32 %v844_v2, %v843_v25 }
  0xed   : > { %v783_v17 = vadd.s32 536870912, %v782_v62  ;;  %v849_v1 = vshll.u32 %v2726_v50, %v840_v42  ;;  %v2104_v51 = vrot.slane %v617_v16, %v2820_v3  ;;  %v702_v27 = vxor.u32 2147483648, %v701_v41 }
  0xee   : > { %v850_v11 = vshrl.u32 %v2727_v52, %v841_v22  ;;  %v852_v6 = vshll.u32 %v2727_v52, %v840_v42  ;;  %v848_v29 = vor.u32 %v847_v30, %v846_v4  ;;  %v853_v13 = vshrl.u32 %v2728_v54, %v841_v22 }
  0xef   : > { %v3528_v57 = vshrl.u32 %v783_v17, 30  ;;  %v855_v0 = vshll.u32 %v2728_v54, %v840_v42  ;;  %v2161_v39 = vsel %vm2088_vm6, %v2104_v51, %v3186_v23  ;;  %v2162_v56 = vsel %vm2088_vm6, %v2104_v51, %v3260_v19 }
  0xf0   : > { %v703_v26 = vsel %vm620_vm12, %v702_v27, %v701_v41  ;;  %v856_v37 = vshrl.u32 %v2729_v61, %v841_v22  ;;  %2193 = vst [vmem:[%s3196_s29 + $0x30] sm:$0xff] %v2161_v39  ;;  %2194 = vst [vmem:[%s3196_s29 + $0x38] sm:$0xff] %v2162_v56  ;;  %v707_v36 = vsel %vm3498_vm14, 0, %v705_v34  ;;  %v854_v42 = vor.u32 %v853_v13, %v852_v6 }
  0xf1   : > { %v706_v55 = vsel %vm3498_vm14, %v3233_v47, %v703_v26  ;;  %v785_v45 = vshll.u32 %v3528_v57, 30  ;;  %v851_v10 = vor.u32 %v850_v11, %v849_v1  ;;  %vm858_vm2 = vcmp.lt.s32.totalorder %v839_v28, 1 }
  0xf2   : > { %2564 = vcosq.f32 %v706_v55  ;;  %v857_v49 = vor.u32 %v856_v37, %v855_v0  ;;  %v842_v24 = vshrl.u32 %v2724_v46, %v841_v22  ;;  %vm860_vm3 = vcmp.lt.s32.totalorder %v839_v28, 3 }
  0xf3   : > { %2566 = vsinq.f32 %v706_v55  ;;  %v786_v38 = vsub.s32 %v782_v62, %v785_v45  ;;  %vm859_vm4 = vcmp.lt.s32.totalorder %v839_v28, 2  ;;  %vm861_vm5 = vcmp.lt.s32.totalorder %v839_v28, 4 }
  0xf4   : > { %v866_v7 = vsel %vm858_vm2, %v845_v32, %v848_v29  ;;  %v874_v18 = vshll.u32 %v834_v53, 8  ;;  %v711_v58 = vadd.s32 3, %v707_v36  ;;  %v863_v35 = vsel %vm861_vm5, %v851_v10, 2102212464 }
  0xf5   : > { %v788_v8 = vsub.s32 0, %v786_v38  ;;  %v867_v25 = vsel %vm861_vm5, %v854_v42, 920167782  ;;  %v871_v60 = vsel %vm861_vm5, %v857_v49, 1326507024  ;;  %v3554_v34 = vadd.f32 %v2825_v9, %v3429_v63 }
  0xf6   : > { %v868_v33 = vsel %vm860_vm3, %v851_v10, %v867_v25  ;;  %v862_v22 = vsel %vm858_vm2, %v842_v24, %v845_v32  ;;  %v870_v62 = vsel %vm858_vm2, %v848_v29, %v851_v10  ;;  %v864_v53 = vsel %vm860_vm3, %v848_v29, %v863_v35 }
  0xf7   : > { %v2337_v20 = vmin.u32 %v788_v8, %v786_v38  ;;  %v869_v40 = vsel %vm859_vm4, %v866_v7, %v868_v33  ;;  %v872_v2 = vsel %vm860_vm3, %v854_v42, %v871_v60  ;;  %v712_v41 = vand.u32 3, %v711_v58 }
  0xf8   : > { %v3561_v4 = vmul.u32.u64.low %v874_v18, %v869_v40  ;;  %v3562_v12 = vmul.u32.u64.high %v874_v18, %v869_v40, %v3561_v4  ;;  %v873_v63 = vsel %vm859_vm4, %v870_v62, %v872_v2  ;;  %v933_v16 = vand.u32 2139095040, %v3554_v34 }
  0xf9   : > { %v790_v30 = vclz %v2337_v20  ;;  %v865_v32 = vsel %vm859_vm4, %v862_v22, %v864_v53  ;;  %v3568_v1 = vmul.u32.u64.low %v874_v18, %v873_v63  ;;  %v3569_v51 = vmul.u32.u64.high %v874_v18, %v873_v63, %v3568_v1 }
  0xfa   : > { %vm710_vm7 = vweird.f32 %v3233_v47  ;;  %vm724_vm8 = vcmp.lt.s32.totalorder %v3380_v59, 0  ;;  %v808_v27 = vsub.s32 4, %v3528_v57  ;;  %v934_v11 = vshrl.u32 %v933_v16, 23 }
  0xfb   : > { %v2338_v17 = vadd.s32 4294967294, %v790_v30  ;;  %vm713_vm9 = vcmp.lt.s32.totalorder %v712_v41, 2  ;;  %v778_v6 = vadd.s32 %v3483_v15, %v3490_v5  ;;  %v884_v29 = vadd.s32 1, %v3562_v12 }
  0xfc   : > { %vm714_vm12 = vcmp.eq.s32.totalorder %v712_v41, 0  ;;  %v881_v13 = vmul.u32 %v874_v18, %v865_v32  ;;  %v2344_v0 = vadd.s32 4294967169, %v934_v11  ;;  %vm717_vm13 = vcmp.eq.s32.totalorder %v712_v41, 2 }
  0xfd   : > { %vm2339_vm10 = vcmp.lt.s32.totalorder %v2338_v17, 0  ;;  %v809_v45 = vsel %vm724_vm8, %v808_v27, %v3528_v57  ;;  %vm883_vm11 = vc.u32 %v3569_v51, %v3561_v4  ;;  %vm3590_vm0 = vcmp.le.f32.partialorder %v722_v14, 0.7853982 }
  0xfe   : > { %v793_v28 = vsel %vm2339_vm10, 0, %v2338_v17  ;;  %v940_v15 = vadd.s32 1, %v2344_v0  ;;  %v885_v49 = vsel %vm883_vm11, %v884_v29, %v3562_v12  ;;  %v811_v53 = vsel %vm3590_vm0, 0, %v809_v45 }
  0xff   : > { %v2565_v39 = vpop.eup %2564  ;;  %v794_v56 = vsub.s32 32, %v793_v28  ;;  %v795_v26 = vshll.u32 %v786_v38, %v793_v28  ;;  %v798_v37 = vsub.s32 4294967266, %v793_v28  ;;  %v886_v7 = vadd.s32 %v885_v49, %v881_v13 }
 0x100   : > { %v2567_v55 = vpop.eup %2566  ;;  %v718_v36 = vxor.u32 2147483648, %v2565_v39  ;;  %v930_v38 = vand.u32 2147483647, %v3554_v34  ;;  %vm941_vm14 = vcmp.gt.s32.totalorder %v940_v15, 0  ;;  %vm828_vm15 = vcmp.lt.s32.totalorder %v3420_v21, 0 }
 0x101   : > { %v715_v5 = vxor.u32 2147483648, %v2567_v55  ;;  %v796_v42 = vshrl.u32 %v778_v6, %v794_v56  ;;  %v799_v10 = vadd.s32 127, %v798_v37  ;;  %v942_v35 = vsel %vm941_vm14, %v940_v15, 0 }
 0x102   : > { %v719_v24 = vsel %vm717_vm13, %v718_v36, %v2567_v55  ;;  %v887_v25 = vadd.s32 536870912, %v886_v7  ;;  %v944_v33 = vand.u32 31, %v942_v35  ;;  %v937_v41 = vand.u32 8388607, %v930_v38 }
 0x103   : > { %v716_v18 = vsel %vm714_vm12, %v2565_v39, %v715_v5  ;;  %v797_v58 = vor.u32 %v796_v42, %v795_v26  ;;  %v800_v8 = vshll.u32 %v799_v10, 23  ;;  %v943_v30 = vshrl.u32 %v942_v35, 5 }
 0x104   : > { %v720_v57 = vsel %vm713_vm9, %v716_v18, %v719_v24  ;;  %v3597_v2 = vshrl.u32 %v887_v25, 30  ;;  %v945_v12 = vsub.s32 32, %v944_v33  ;;  %v947_v14 = vshll.u32 %v2724_v46, %v944_v33 }
 0x105   : > { %v721_v60 = vsel %vm710_vm7, nan, %v720_v57  ;;  %v801_v22 = vor.u32 4788187, %v800_v8  ;;  %v804_v40 = vcvt.s32.f32 %v797_v58  ;;  %v950_v32 = vshll.u32 %v2725_v48, %v944_v33 }
 0x106   : > { %v2108_v62 = vrot.slane %v721_v60, %v2820_v3  ;;  %v889_v17 = vshll.u32 %v3597_v2, 30  ;;  %v948_v27 = vshrl.u32 %v2725_v48, %v945_v12  ;;  %v951_v11 = vshrl.u32 %v2726_v50, %v945_v12 }
 0x107   : > { %v802_v47 = vand.u32 2147483647, %v801_v22  ;;  %v953_v6 = vshll.u32 %v2726_v50, %v944_v33  ;;  %v954_v28 = vshrl.u32 %v2727_v52, %v945_v12  ;;  %v956_v13 = vshll.u32 %v2727_v52, %v944_v33 }
 0x108   : > { %v2163_v63 = vsel %vm2088_vm6, %v2108_v62, %v3186_v23  ;;  %v2164_v16 = vsel %vm2088_vm6, %v2108_v62, %v3260_v19  ;;  %v3615_v29 = vsub.s32 %v886_v7, %v889_v17  ;;  %v957_v0 = vshrl.u32 %v2728_v54, %v945_v12 }
 0x109   : > { %2195 = vst [vmem:[%s3196_s29 + $0x40] sm:$0xff] %v2163_v63  ;;  %2196 = vst [vmem:[%s3196_s29 + $0x48] sm:$0xff] %v2164_v16  ;;  %v805_v1 = vmul.f32 %v804_v40, %v802_v47  ;;  %v815_v56 = vadd.s32 3, %v811_v53  ;;  %v938_v26 = vor.u32 8388608, %v937_v41  ;;  %v175_v37 = vmul.f32 9.0, %v3366_v43 }
 0x10a   : > { %v892_v55 = vsub.s32 0, %v3615_v29  ;;  %v946_v36 = vshrl.u32 %v2724_v46, %v945_v12  ;;  %v949_v45 = vor.u32 %v948_v27, %v947_v14  ;;  %v952_v15 = vor.u32 %v951_v11, %v950_v32 }
 0x10b   : > { %v806_v39 = vxor.u32 2147483648, %v805_v1  ;;  %v955_v42 = vor.u32 %v954_v28, %v953_v6  ;;  %v959_v10 = vshll.u32 %v2728_v54, %v944_v33  ;;  %v960_v49 = vshrl.u32 %v2729_v61, %v945_v12 }
 0x10c   : > { %v2341_v7 = vmin.u32 %v892_v55, %v3615_v29  ;;  %v958_v18 = vor.u32 %v957_v0, %v956_v13  ;;  %vm962_vm1 = vcmp.lt.s32.totalorder %v943_v30, 1  ;;  %vm965_vm2 = vcmp.lt.s32.totalorder %v943_v30, 4 }
 0x10d   : > { %v807_v5 = vsel %vm724_vm8, %v806_v39, %v805_v1  ;;  %v961_v58 = vor.u32 %v960_v49, %v959_v10  ;;  %v3633_v8 = vadd.f32 %v2825_v9, %v175_v37  ;;  %vm964_vm3 = vcmp.lt.s32.totalorder %v943_v30, 3 }
 0x10e   : > { %v810_v24 = vsel %vm3590_vm0, %v3380_v59, %v807_v5  ;;  %v894_v35 = vclz %v2341_v7  ;;  %v978_v57 = vshll.u32 %v938_v26, 8  ;;  %vm963_vm4 = vcmp.lt.s32.totalorder %v943_v30, 2 }
 0x10f   : > { %2568 = vcosq.f32 %v810_v24  ;;  %v966_v25 = vsel %vm962_vm1, %v946_v36, %v949_v45  ;;  %v967_v33 = vsel %vm965_vm2, %v955_v42, 2102212464  ;;  %v970_v60 = vsel %vm962_vm1, %v949_v45, %v952_v15 }
 0x110   : > { %2570 = vsinq.f32 %v810_v24  ;;  %v2342_v20 = vadd.s32 4294967294, %v894_v35  ;;  %v968_v22 = vsel %vm964_vm3, %v952_v15, %v967_v33  ;;  %v971_v40 = vsel %vm965_vm2, %v958_v18, 920167782 }
 0x111   : > { %v974_v62 = vsel %vm962_vm1, %v952_v15, %v955_v42  ;;  %v882_v53 = vadd.s32 %v3561_v4, %v3569_v51  ;;  %v912_v12 = vsub.s32 4, %v3597_v2  ;;  %v972_v47 = vsel %vm964_vm3, %v955_v42, %v971_v40 }
 0x112   : > { %v975_v41 = vsel %vm965_vm2, %v961_v58, 1326507024  ;;  %vm2343_vm5 = vcmp.lt.s32.totalorder %v2342_v20, 0  ;;  %v969_v14 = vsel %vm963_vm4, %v966_v25, %v968_v22  ;;  %v973_v63 = vsel %vm963_vm4, %v970_v60, %v972_v47 }
 0x113   : > { %v976_v16 = vsel %vm964_vm3, %v958_v18, %v975_v41  ;;  %v897_v17 = vsel %vm2343_vm5, 0, %v2342_v20  ;;  %v3650_v1 = vmul.u32.u64.low %v978_v57, %v973_v63  ;;  %v3651_v27 = vmul.u32.u64.high %v978_v57, %v973_v63, %v3650_v1 }
 0x114   : > { %v977_v32 = vsel %vm963_vm4, %v974_v62, %v976_v16  ;;  %v898_v4 = vsub.s32 32, %v897_v17  ;;  %v899_v51 = vshll.u32 %v3615_v29, %v897_v17  ;;  %v902_v11 = vsub.s32 4294967266, %v897_v17 }
 0x115   : > { %v1037_v6 = vand.u32 2139095040, %v3633_v8  ;;  %v816_v28 = vand.u32 3, %v815_v56  ;;  %v913_v13 = vsel %vm828_vm15, %v912_v12, %v3597_v2  ;;  %vm814_vm7 = vweird.f32 %v3380_v59 }
 0x116   : > { %v3659_v0 = vmul.u32.u64.low %v978_v57, %v977_v32  ;;  %v3660_v39 = vmul.u32.u64.high %v978_v57, %v977_v32, %v3659_v0  ;;  %v900_v30 = vshrl.u32 %v882_v53, %v898_v4  ;;  %v903_v26 = vadd.s32 127, %v902_v11 }
 0x117   : > { %v1038_v37 = vshrl.u32 %v1037_v6, 23  ;;  %vm3665_vm8 = vcmp.le.f32.partialorder %v826_v44, 0.7853982  ;;  %v985_v55 = vmul.u32 %v978_v57, %v969_v14  ;;  %v988_v56 = vadd.s32 1, %v3651_v27 }
 0x118   : > { %v176_v36 = vmul.f32 10.0, %v3366_v43  ;;  %v901_v2 = vor.u32 %v900_v30, %v899_v51  ;;  %v904_v45 = vshll.u32 %v903_v26, 23  ;;  %v915_v15 = vsel %vm3665_vm8, 0, %v913_v13 }
 0x119   : > { %v2348_v5 = vadd.s32 4294967169, %v1038_v37  ;;  %vm817_vm9 = vcmp.lt.s32.totalorder %v816_v28, 2  ;;  %vm821_vm10 = vcmp.eq.s32.totalorder %v816_v28, 2  ;;  %vm987_vm12 = vc.u32 %v3660_v39, %v3650_v1 }
 0x11a   : > { %v1034_v44 = vand.u32 2147483647, %v3633_v8  ;;  %v905_v10 = vor.u32 4788187, %v904_v45  ;;  %v908_v49 = vcvt.s32.f32 %v901_v2  ;;  %v989_v24 = vsel %vm987_vm12, %v988_v56, %v3651_v27 }
 0x11b   : > { %v1044_v7 = vadd.s32 1, %v2348_v5  ;;  %vm818_vm13 = vcmp.eq.s32.totalorder %v816_v28, 0  ;;  %v919_v35 = vadd.s32 3, %v915_v15  ;;  %v990_v57 = vadd.s32 %v989_v24, %v985_v55 }
 0x11c   : > { %v2569_v42 = vpop.eup %2568  ;;  %v906_v33 = vand.u32 2147483647, %v905_v10  ;;  %v3678_v60 = vadd.f32 %v2825_v9, %v176_v36  ;;  %v1041_v40 = vand.u32 8388607, %v1034_v44  ;;  %v3689_v16 = vmul.f32 11.0, %v3366_v43 }
 0x11d   : > { %v2571_v18 = vpop.eup %2570  ;;  %v822_v58 = vxor.u32 2147483648, %v2569_v42  ;;  %vm1045_vm11 = vcmp.gt.s32.totalorder %v1044_v7, 0  ;;  %v991_v22 = vadd.s32 536870912, %v990_v57  ;;  %v3684_v14 = vand.u32 3, %v919_v35 }
 0x11e   : > { %v819_v25 = vxor.u32 2147483648, %v2571_v18  ;;  %v1046_v62 = vsel %vm1045_vm11, %v1044_v7, 0  ;;  %v909_v12 = vmul.f32 %v908_v49, %v906_v33  ;;  %v1141_v4 = vand.u32 2139095040, %v3678_v60 }
 0x11f   : > { %v823_v20 = vsel %vm821_vm10, %v822_v58, %v2571_v18  ;;  %v1048_v47 = vand.u32 31, %v1046_v62  ;;  %v3686_v63 = vshrl.u32 %v991_v22, 30  ;;  %v1042_v6 = vor.u32 8388608, %v1041_v40 }
 0x120   : > { %v820_v53 = vsel %vm818_vm13, %v2569_v42, %v819_v25  ;;  %v910_v32 = vxor.u32 2147483648, %v909_v12  ;;  %v1047_v56 = vshrl.u32 %v1046_v62, 5  ;;  %v1138_v36 = vand.u32 2147483647, %v3678_v60 }
 0x121   : > { %v824_v41 = vsel %vm817_vm9, %v820_v53, %v823_v20  ;;  %v1049_v27 = vsub.s32 32, %v1048_v47  ;;  %v993_v11 = vshll.u32 %v3686_v63, 30  ;;  %v1051_v28 = vshll.u32 %v2724_v46, %v1048_v47 }
 0x122   : > { %v825_v17 = vsel %vm814_vm7, nan, %v824_v41  ;;  %v911_v43 = vsel %vm828_vm15, %v910_v32, %v909_v12  ;;  %v1054_v59 = vshll.u32 %v2725_v48, %v1048_v47  ;;  %v1142_v2 = vshrl.u32 %v1141_v4, 23 }
 0x123   : > { %v2112_v51 = vrot.slane %v825_v17, %v2820_v3  ;;  %v1052_v13 = vshrl.u32 %v2725_v48, %v1049_v27  ;;  %v1055_v0 = vshrl.u32 %v2726_v50, %v1049_v27  ;;  %v914_v37 = vsel %vm3665_vm8, %v3420_v21, %v911_v43 }
 0x124   : > { %v3711_v55 = vsub.s32 %v990_v57, %v993_v11  ;;  %2572 = vcosq.f32 %v914_v37  ;;  %v1050_v15 = vshrl.u32 %v2724_v46, %v1049_v27  ;;  %v1057_v5 = vshll.u32 %v2726_v50, %v1048_v47 }
 0x125   : > { %v2165_v30 = vsel %vm2088_vm6, %v2112_v51, %v3186_v23  ;;  %v2166_v26 = vsel %vm2088_vm6, %v2112_v51, %v3260_v19  ;;  %2574 = vsinq.f32 %v914_v37  ;;  %v1053_v42 = vor.u32 %v1052_v13, %v1051_v28 }
 0x126   : > { %2197 = vst [vmem:[%s3196_s29 + $0x50] sm:$0xff] %v2165_v30  ;;  %2198 = vst [vmem:[%s3196_s29 + $0x58] sm:$0xff] %v2166_v26  ;;  %v996_v45 = vsub.s32 0, %v3711_v55  ;;  %v1058_v29 = vshrl.u32 %v2727_v52, %v1049_v27  ;;  %v1060_v10 = vshll.u32 %v2727_v52, %v1048_v47  ;;  %v1061_v49 = vshrl.u32 %v2728_v54, %v1049_v27 }
 0x127   : > { %v1056_v7 = vor.u32 %v1055_v0, %v1054_v59  ;;  %v1063_v18 = vshll.u32 %v2728_v54, %v1048_v47  ;;  %v1064_v58 = vshrl.u32 %v2729_v61, %v1049_v27  ;;  %v986_v35 = vadd.s32 %v3650_v1, %v3660_v39 }
 0x128   : > { %v2345_v24 = vmin.u32 %v996_v45, %v3711_v55  ;;  %v1059_v57 = vor.u32 %v1058_v29, %v1057_v5  ;;  %v1062_v25 = vor.u32 %v1061_v49, %v1060_v10  ;;  %vm1066_vm14 = vcmp.lt.s32.totalorder %v1047_v56, 1 }
 0x129   : > { %v1065_v20 = vor.u32 %v1064_v58, %v1063_v18  ;;  %vm1068_vm0 = vcmp.lt.s32.totalorder %v1047_v56, 3  ;;  %vm1069_vm15 = vcmp.lt.s32.totalorder %v1047_v56, 4  ;;  %vm922_vm1 = vcmp.eq.s32.totalorder %v3684_v14, 0 }
 0x12a   : > { %v998_v33 = vclz %v2345_v24  ;;  %vm1067_vm2 = vcmp.lt.s32.totalorder %v1047_v56, 2  ;;  %v1070_v22 = vsel %vm1066_vm14, %v1050_v15, %v1053_v42  ;;  %v1082_v40 = vshll.u32 %v1042_v6, 8 }
 0x12b   : > { %v2352_v62 = vadd.s32 4294967169, %v1142_v2  ;;  %vm921_vm3 = vcmp.lt.s32.totalorder %v3684_v14, 2  ;;  %vm932_vm4 = vcmp.lt.s32.totalorder %v3554_v34, 0  ;;  %v1071_v1 = vsel %vm1069_vm15, %v1059_v57, 2102212464 }
 0x12c   : > { %v2346_v53 = vadd.s32 4294967294, %v998_v33  ;;  %v1074_v39 = vsel %vm1066_vm14, %v1053_v42, %v1056_v7  ;;  %v1075_v12 = vsel %vm1069_vm15, %v1062_v25, 920167782  ;;  %vm918_vm5 = vweird.f32 %v3420_v21 }
 0x12d   : > { %v1072_v47 = vsel %vm1068_vm0, %v1056_v7, %v1071_v1  ;;  %v1076_v41 = vsel %vm1068_vm0, %v1059_v57, %v1075_v12  ;;  %v1078_v17 = vsel %vm1066_vm14, %v1056_v7, %v1059_v57  ;;  %v1079_v32 = vsel %vm1069_vm15, %v1065_v20, 1326507024 }
 0x12e   : > { %vm2347_vm7 = vcmp.lt.s32.totalorder %v2346_v53, 0  ;;  %v1077_v27 = vsel %vm1067_vm2, %v1074_v39, %v1076_v41  ;;  %v1080_v4 = vsel %vm1068_vm0, %v1062_v25, %v1079_v32  ;;  %v1145_v51 = vand.u32 8388607, %v1138_v36 }
 0x12f   : > { %v1001_v11 = vsel %vm2347_vm7, 0, %v2346_v53  ;;  %v1081_v6 = vsel %vm1067_vm2, %v1078_v17, %v1080_v4  ;;  %v3744_v28 = vmul.u32.u64.low %v1082_v40, %v1077_v27  ;;  %v3745_v43 = vmul.u32.u64.high %v1082_v40, %v1077_v27, %v3744_v28 }
 0x130   : > { %v1002_v13 = vsub.s32 32, %v1001_v11  ;;  %v1003_v59 = vshll.u32 %v3711_v55, %v1001_v11  ;;  %v1006_v0 = vsub.s32 4294967266, %v1001_v11  ;;  %v1073_v30 = vsel %vm1067_vm2, %v1070_v22, %v1072_v47 }
 0x131   : > { %v1016_v26 = vsub.s32 4, %v3686_v63  ;;  %v3751_v37 = vmul.u32.u64.low %v1082_v40, %v1081_v6  ;;  %v3752_v2 = vmul.u32.u64.high %v1082_v40, %v1081_v6, %v3751_v37  ;;  %v1148_v45 = vadd.s32 1, %v2352_v62  ;;  %v2573_v15 = vpop.eup %2572 }
 0x132   : > { %vm925_vm8 = vcmp.eq.s32.totalorder %v3684_v14, 2  ;;  %v1004_v5 = vshrl.u32 %v986_v35, %v1002_v13  ;;  %v1007_v42 = vadd.s32 127, %v1006_v0  ;;  %v1146_v29 = vor.u32 8388608, %v1145_v51  ;;  %v2575_v10 = vpop.eup %2574 }
 0x133   : > { %v926_v49 = vxor.u32 2147483648, %v2573_v15  ;;  %v1089_v24 = vmul.u32 %v1082_v40, %v1073_v30  ;;  %v1092_v55 = vadd.s32 1, %v3745_v43  ;;  %vm1149_vm9 = vcmp.gt.s32.totalorder %v1148_v45, 0 }
 0x134   : > { %v923_v56 = vxor.u32 2147483648, %v2575_v10  ;;  %v1005_v7 = vor.u32 %v1004_v5, %v1003_v59  ;;  %v1008_v18 = vshll.u32 %v1007_v42, 23  ;;  %v1150_v58 = vsel %vm1149_vm9, %v1148_v45, 0 }
 0x135   : > { %v927_v57 = vsel %vm925_vm8, %v926_v49, %v2575_v10  ;;  %vm3758_vm10 = vcmp.le.f32.partialorder %v930_v38, 0.7853982  ;;  %v1017_v35 = vsel %vm932_vm4, %v1016_v26, %v3686_v63  ;;  %vm1091_vm12 = vc.u32 %v3752_v2, %v3744_v28 }
 0x136   : > { %v924_v33 = vsel %vm922_vm1, %v2573_v15, %v923_v56  ;;  %v1009_v20 = vor.u32 4788187, %v1008_v18  ;;  %v1012_v22 = vcvt.s32.f32 %v1005_v7  ;;  %v1093_v40 = vsel %vm1091_vm12, %v1092_v55, %v3745_v43 }
 0x137   : > { %v928_v38 = vsel %vm921_vm3, %v924_v33, %v927_v57  ;;  %v1094_v62 = vadd.s32 %v1093_v40, %v1089_v24  ;;  %v1152_v53 = vand.u32 31, %v1150_v58  ;;  %v3774_v1 = vadd.f32 %v2825_v9, %v3689_v16 }
 0x138   : > { %v929_v63 = vsel %vm918_vm5, nan, %v928_v38  ;;  %v1010_v39 = vand.u32 2147483647, %v1009_v20  ;;  %v1019_v12 = vsel %vm3758_vm10, 0, %v1017_v35  ;;  %v3780_v47 = vshll.u32 %v1146_v29, 8 }
 0x139   : > { %v2116_v14 = vrot.slane %v929_v63, %v2820_v3  ;;  %v1095_v41 = vadd.s32 536870912, %v1094_v62  ;;  %v1151_v17 = vshrl.u32 %v1150_v58, 5  ;;  %v1153_v32 = vsub.s32 32, %v1152_v53 }
 0x13a   : > { %v1013_v27 = vmul.f32 %v1012_v22, %v1010_v39  ;;  %v1155_v16 = vshll.u32 %v2724_v46, %v1152_v53  ;;  %v1158_v4 = vshll.u32 %v2725_v48, %v1152_v53  ;;  %v1161_v21 = vshll.u32 %v2726_v50, %v1152_v53 }
 0x13b   : > { %v2167_v51 = vsel %vm2088_vm6, %v2116_v14, %v3186_v23  ;;  %v2168_v11 = vsel %vm2088_vm6, %v2116_v14, %v3260_v19  ;;  %v1096_v6 = vshrl.u32 %v1095_v41, 30  ;;  %v1164_v43 = vshll.u32 %v2727_v52, %v1152_v53  ;;  %v3827_v14 = vld [vmem:[#allocation2] sm:$0x3] }
 0x13c   : > { %2199 = vst [vmem:[%s3196_s29 + $0x60] sm:$0xff] %v2167_v51  ;;  %2200 = vst [vmem:[%s3196_s29 + $0x68] sm:$0xff] %v2168_v11  ;;  %v1014_v13 = vxor.u32 2147483648, %v1013_v27  ;;  %v1156_v59 = vshrl.u32 %v2725_v48, %v1153_v32  ;;  %v1159_v0 = vshrl.u32 %v2726_v50, %v1153_v32  ;;  %v1162_v30 = vshrl.u32 %v2727_v52, %v1153_v32 }
 0x13d   : > { %v1097_v26 = vshll.u32 %v1096_v6, 30  ;;  %v1154_v37 = vshrl.u32 %v2724_v46, %v1153_v32  ;;  %v1165_v45 = vshrl.u32 %v2728_v54, %v1153_v32  ;;  %vm1170_vm13 = vcmp.lt.s32.totalorder %v1151_v17, 1 }
 0x13e   : > { %v1015_v15 = vsel %vm932_vm4, %v1014_v13, %v1013_v27  ;;  %v1157_v5 = vor.u32 %v1156_v59, %v1155_v16  ;;  %v1160_v42 = vor.u32 %v1159_v0, %v1158_v4  ;;  %v1167_v29 = vshll.u32 %v2728_v54, %v1152_v53 }
 0x13f   : > { %v1018_v10 = vsel %vm3758_vm10, %v3554_v34, %v1015_v15  ;;  %v3806_v49 = vsub.s32 %v1094_v62, %v1097_v26  ;;  %v1163_v24 = vor.u32 %v1162_v30, %v1161_v21  ;;  %v1166_v55 = vor.u32 %v1165_v45, %v1164_v43 }
 0x140   : > { %2576 = vcosq.f32 %v1018_v10  ;;  %v1168_v56 = vshrl.u32 %v2729_v61, %v1153_v32  ;;  %vm1172_vm11 = vcmp.lt.s32.totalorder %v1151_v17, 3  ;;  %vm1173_vm14 = vcmp.lt.s32.totalorder %v1151_v17, 4 }
 0x141   : > { %2578 = vsinq.f32 %v1018_v10  ;;  %v1100_v7 = vsub.s32 0, %v3806_v49  ;;  %v1120_v18 = vsub.s32 4, %v1096_v6  ;;  %vm1171_vm0 = vcmp.lt.s32.totalorder %v1151_v17, 2 }
 0x142   : > { %v1169_v58 = vor.u32 %v1168_v56, %v1167_v29  ;;  %v1175_v57 = vsel %vm1173_vm14, %v1163_v24, 2102212464  ;;  %v1178_v25 = vsel %vm1170_vm13, %v1157_v5, %v1160_v42  ;;  %v1179_v35 = vsel %vm1173_vm14, %v1166_v55, 920167782 }
 0x143   : > { %v1023_v33 = vadd.s32 3, %v1019_v12  ;;  %v2349_v20 = vmin.u32 %v1100_v7, %v3806_v49  ;;  %v1174_v22 = vsel %vm1170_vm13, %v1154_v37, %v1157_v5  ;;  %v1180_v40 = vsel %vm1172_vm11, %v1163_v24, %v1179_v35 }
 0x144   : > { %v1176_v38 = vsel %vm1172_vm11, %v1160_v42, %v1175_v57  ;;  %v1181_v62 = vsel %vm1171_vm0, %v1178_v25, %v1180_v40  ;;  %v1182_v53 = vsel %vm1170_vm13, %v1160_v42, %v1163_v24  ;;  %v1183_v63 = vsel %vm1173_vm14, %v1169_v58, 1326507024 }
 0x145   : > { %vm3822_vm15 = vcmp.le.f32.partialorder %v1034_v44, 0.7853982  ;;  %vm1036_vm1 = vcmp.lt.s32.totalorder %v3633_v8, 0  ;;  %v1102_v12 = vclz %v2349_v20  ;;  %v178_v41 = vmul.f32 12.0, %v3827_v14 }
 0x146   : > { %v1121_v32 = vsel %vm1036_vm1, %v1120_v18, %v1096_v6  ;;  %v1184_v27 = vsel %vm1172_vm11, %v1166_v55, %v1183_v63  ;;  %v3834_v16 = vmul.u32.u64.low %v3780_v47, %v1181_v62  ;;  %v3835_v4 = vmul.u32.u64.high %v3780_v47, %v1181_v62, %v3834_v16 }
 0x147   : > { %v2350_v44 = vadd.s32 4294967294, %v1102_v12  ;;  %v1177_v21 = vsel %vm1171_vm0, %v1174_v22, %v1176_v38  ;;  %v1185_v51 = vsel %vm1171_vm0, %v1182_v53, %v1184_v27  ;;  %v1245_v11 = vand.u32 2139095040, %v3774_v1 }
 0x148   : > { %vm1022_vm2 = vweird.f32 %v3554_v34  ;;  %v1024_v43 = vand.u32 3, %v1023_v33  ;;  %v3842_v13 = vmul.u32.u64.low %v3780_v47, %v1185_v51  ;;  %v3843_v59 = vmul.u32.u64.high %v3780_v47, %v1185_v51, %v3842_v13 }
 0x149   : > { %v1242_v6 = vand.u32 2147483647, %v3774_v1  ;;  %v1090_v0 = vadd.s32 %v3744_v28, %v3752_v2  ;;  %vm2351_vm3 = vcmp.lt.s32.totalorder %v2350_v44, 0  ;;  %v1246_v30 = vshrl.u32 %v1245_v11, 23 }
 0x14a   : > { %v3849_v26 = vadd.f32 %v2825_v9, %v178_v41  ;;  %v1105_v17 = vsel %vm2351_vm3, 0, %v2350_v44  ;;  %v1123_v37 = vsel %vm3822_vm15, 0, %v1121_v32  ;;  %v1193_v45 = vmul.u32 %v3780_v47, %v1177_v21 }
 0x14b   : > { %v1196_v15 = vadd.s32 1, %v3835_v4  ;;  %v1106_v5 = vsub.s32 32, %v1105_v17  ;;  %v1107_v42 = vshll.u32 %v3806_v49, %v1105_v17  ;;  %v1110_v29 = vsub.s32 4294967266, %v1105_v17 }
 0x14c   : > { %v2356_v10 = vadd.s32 4294967169, %v1246_v30  ;;  %vm1025_vm4 = vcmp.lt.s32.totalorder %v1024_v43, 2  ;;  %vm1029_vm5 = vcmp.eq.s32.totalorder %v1024_v43, 2  ;;  %vm1195_vm7 = vc.u32 %v3843_v59, %v3834_v16 }
 0x14d   : > { %v1249_v28 = vand.u32 8388607, %v1242_v6  ;;  %v2577_v2 = vpop.eup %2576  ;;  %v1108_v24 = vshrl.u32 %v1090_v0, %v1106_v5  ;;  %v1111_v55 = vadd.s32 127, %v1110_v29  ;;  %v1197_v56 = vsel %vm1195_vm7, %v1196_v15, %v3835_v4 }
 0x14e   : > { %v1252_v47 = vadd.s32 1, %v2356_v10  ;;  %v2579_v7 = vpop.eup %2578  ;;  %vm1026_vm8 = vcmp.eq.s32.totalorder %v1024_v43, 0  ;;  %v1030_v18 = vxor.u32 2147483648, %v2577_v2  ;;  %v1127_v58 = vadd.s32 3, %v1123_v37 }
 0x14f   : > { %v1198_v49 = vadd.s32 %v1197_v56, %v1193_v45  ;;  %v1027_v57 = vxor.u32 2147483648, %v2579_v7  ;;  %v1109_v25 = vor.u32 %v1108_v24, %v1107_v42  ;;  %v1112_v35 = vshll.u32 %v1111_v55, 23 }
 0x150   : > { %vm1253_vm9 = vcmp.gt.s32.totalorder %v1252_v47, 0  ;;  %v1031_v33 = vsel %vm1029_vm5, %v1030_v18, %v2579_v7  ;;  %v1250_v22 = vor.u32 8388608, %v1249_v28  ;;  %v1349_v63 = vand.u32 2139095040, %v3849_v26 }
 0x151   : > { %v1199_v20 = vadd.s32 536870912, %v1198_v49  ;;  %v1254_v40 = vsel %vm1253_vm9, %v1252_v47, 0  ;;  %v1028_v38 = vsel %vm1026_vm8, %v2577_v2, %v1027_v57  ;;  %v1113_v62 = vor.u32 4788187, %v1112_v35 }
 0x152   : > { %v1116_v53 = vcvt.s32.f32 %v1109_v25  ;;  %v1032_v12 = vsel %vm1025_vm4, %v1028_v38, %v1031_v33  ;;  %v3863_v41 = vand.u32 3, %v1127_v58  ;;  %v1256_v27 = vand.u32 31, %v1254_v40 }
 0x153   : > { %v1200_v32 = vshrl.u32 %v1199_v20, 30  ;;  %v1033_v4 = vsel %vm1022_vm2, nan, %v1032_v12  ;;  %v1114_v44 = vand.u32 2147483647, %v1113_v62  ;;  %v3867_v21 = vshrl.u32 %v1254_v40, 5 }
 0x154   : > { %v1346_v51 = vand.u32 2147483647, %v3849_v26  ;;  %v2120_v11 = vrot.slane %v1033_v4, %v2820_v3  ;;  %v3872_v13 = vadd.s32 %v3834_v16, %v3843_v59  ;;  %v1257_v0 = vsub.s32 32, %v1256_v27 }
 0x155   : > { %v1201_v43 = vshll.u32 %v1200_v32, 30  ;;  %v1117_v30 = vmul.f32 %v1116_v53, %v1114_v44  ;;  %v1259_v17 = vshll.u32 %v2724_v46, %v1256_v27  ;;  %v3875_v37 = vshll.u32 %v1250_v22, 8 }
 0x156   : > { %v1350_v34 = vshrl.u32 %v1349_v63, 23  ;;  %v2169_v45 = vsel %vm2088_vm6, %v2120_v11, %v3186_v23  ;;  %v2170_v15 = vsel %vm2088_vm6, %v2120_v11, %v3260_v19  ;;  %vm1140_vm10 = vcmp.lt.s32.totalorder %v3678_v60, 0 }
 0x157   : > { %v3884_v16 = vsub.s32 %v1198_v49, %v1201_v43  ;;  %v1262_v59 = vshll.u32 %v2725_v48, %v1256_v27  ;;  %2201 = vst [vmem:[%s3196_s29 + $0x70] sm:$0xff] %v2169_v45  ;;  %2202 = vst [vmem:[%s3196_s29 + $0x78] sm:$0xff] %v2170_v15  ;;  %v1118_v5 = vxor.u32 2147483648, %v1117_v30  ;;  %v1260_v42 = vshrl.u32 %v2725_v48, %v1257_v0 }
 0x158   : > { %vm1274_vm12 = vcmp.lt.s32.totalorder %v3867_v21, 1  ;;  %v3893_v29 = vand.u32 8388607, %v1346_v51  ;;  %v1263_v28 = vshrl.u32 %v2726_v50, %v1257_v0  ;;  %v1265_v2 = vshll.u32 %v2726_v50, %v1256_v27 }
 0x159   : > { %v1204_v10 = vsub.s32 0, %v3884_v16  ;;  %v1266_v24 = vshrl.u32 %v2727_v52, %v1257_v0  ;;  %v1119_v55 = vsel %vm1036_vm1, %v1118_v5, %v1117_v30  ;;  %v1258_v56 = vshrl.u32 %v2724_v46, %v1257_v0 }
 0x15a   : > { %v1268_v47 = vshll.u32 %v2727_v52, %v1256_v27  ;;  %v1269_v7 = vshrl.u32 %v2728_v54, %v1257_v0  ;;  %v1122_v18 = vsel %vm3822_vm15, %v3633_v8, %v1119_v55  ;;  %v1261_v49 = vor.u32 %v1260_v42, %v1259_v17 }
 0x15b   : > { %v2353_v58 = vmin.u32 %v1204_v10, %v3884_v16  ;;  %v1264_v57 = vor.u32 %v1263_v28, %v1262_v59  ;;  %2580 = vcosq.f32 %v1122_v18  ;;  %v1224_v25 = vsub.s32 4, %v1200_v32 }
 0x15c   : > { %v1270_v35 = vor.u32 %v1269_v7, %v1268_v47  ;;  %v1271_v33 = vshll.u32 %v2728_v54, %v1256_v27  ;;  %2582 = vsinq.f32 %v1122_v18  ;;  %vm3911_vm13 = vcmp.le.f32.partialorder %v1138_v36, 0.7853982 }
 0x15d   : > { %v1206_v22 = vclz %v2353_v58  ;;  %v1267_v40 = vor.u32 %v1266_v24, %v1265_v2  ;;  %v2360_v39 = vadd.s32 4294967169, %v1350_v34  ;;  %v1272_v38 = vshrl.u32 %v2729_v61, %v1257_v0 }
 0x15e   : > { %vm1275_vm11 = vcmp.lt.s32.totalorder %v3867_v21, 2  ;;  %vm1276_vm14 = vcmp.lt.s32.totalorder %v3867_v21, 3  ;;  %vm1277_vm0 = vcmp.lt.s32.totalorder %v3867_v21, 4  ;;  %v1278_v53 = vsel %vm1274_vm12, %v1258_v56, %v1261_v49 }
 0x15f   : > { %v2354_v62 = vadd.s32 4294967294, %v1206_v22  ;;  %v1279_v36 = vsel %vm1277_vm0, %v1267_v40, 2102212464  ;;  %v1282_v63 = vsel %vm1274_vm12, %v1261_v49, %v1264_v57  ;;  %v1225_v12 = vsel %vm1140_vm10, %v1224_v25, %v1200_v32 }
 0x160   : > { %v1273_v27 = vor.u32 %v1272_v38, %v1271_v33  ;;  %v1280_v4 = vsel %vm1276_vm14, %v1264_v57, %v1279_v36  ;;  %v1283_v44 = vsel %vm1277_vm0, %v1270_v35, 920167782  ;;  %v1286_v43 = vsel %vm1274_vm12, %v1264_v57, %v1267_v40 }
 0x161   : > { %vm2355_vm15 = vcmp.lt.s32.totalorder %v2354_v62, 0  ;;  %v1284_v11 = vsel %vm1276_vm14, %v1267_v40, %v1283_v44  ;;  %v1356_v0 = vadd.s32 1, %v2360_v39  ;;  %v1281_v17 = vsel %vm1275_vm11, %v1278_v53, %v1280_v4 }
 0x162   : > { %v1209_v30 = vsel %vm2355_vm15, 0, %v2354_v62  ;;  %v1285_v32 = vsel %vm1275_vm11, %v1282_v63, %v1284_v11  ;;  %v1287_v34 = vsel %vm1277_vm0, %v1273_v27, 1326507024  ;;  %vm1126_vm2 = vweird.f32 %v3633_v8 }
 0x163   : > { %v1210_v45 = vsub.s32 32, %v1209_v30  ;;  %v1211_v15 = vshll.u32 %v3884_v16, %v1209_v30  ;;  %v1214_v59 = vsub.s32 4294967266, %v1209_v30  ;;  %v1288_v5 = vsel %vm1276_vm14, %v1270_v35, %v1287_v34 }
 0x164   : > { %v1289_v42 = vsel %vm1275_vm11, %v1286_v43, %v1288_v5  ;;  %v3947_v10 = vmul.u32.u64.low %v3875_v37, %v1285_v32  ;;  %v3948_v28 = vmul.u32.u64.high %v3875_v37, %v1285_v32, %v3947_v10  ;;  %vm1357_vm1 = vcmp.gt.s32.totalorder %v1356_v0, 0 }
 0x165   : > { %v1212_v2 = vshrl.u32 %v3872_v13, %v1210_v45  ;;  %v1215_v24 = vadd.s32 127, %v1214_v59  ;;  %v3953_v55 = vmul.u32.u64.low %v3875_v37, %v1289_v42  ;;  %v3954_v56 = vmul.u32.u64.high %v3875_v37, %v1289_v42, %v3953_v55 }
 0x166   : > { %v1227_v16 = vsel %vm3911_vm13, 0, %v1225_v12  ;;  %v1358_v21 = vsel %vm1357_vm1, %v1356_v0, 0  ;;  %v1297_v18 = vmul.u32 %v3875_v37, %v1281_v17  ;;  %vm1129_vm3 = vcmp.lt.s32.totalorder %v3863_v41, 2 }
 0x167   : > { %v1213_v47 = vor.u32 %v1212_v2, %v1211_v15  ;;  %v1216_v7 = vshll.u32 %v1215_v24, 23  ;;  %v1360_v58 = vand.u32 31, %v1358_v21  ;;  %vm1130_vm4 = vcmp.eq.s32.totalorder %v3863_v41, 0 }
 0x168   : > { %vm1133_vm5 = vcmp.eq.s32.totalorder %v3863_v41, 2  ;;  %v1300_v13 = vadd.s32 1, %v3948_v28  ;;  %v2581_v49 = vpop.eup %2580  ;;  %vm1299_vm7 = vc.u32 %v3954_v56, %v3947_v10  ;;  %v1354_v35 = vor.u32 8388608, %v3893_v29 }
 0x169   : > { %v1217_v57 = vor.u32 4788187, %v1216_v7  ;;  %v1220_v25 = vcvt.s32.f32 %v1213_v47  ;;  %v2583_v33 = vpop.eup %2582  ;;  %v1134_v22 = vxor.u32 2147483648, %v2581_v49  ;;  %v1231_v37 = vadd.s32 3, %v1227_v16 }
 0x16a   : > { %v1301_v40 = vsel %vm1299_vm7, %v1300_v13, %v3948_v28  ;;  %v1361_v39 = vsub.s32 32, %v1360_v58  ;;  %v1131_v38 = vxor.u32 2147483648, %v2583_v33  ;;  %v179_v36 = vmul.f32 13.0, %v3827_v14 }
 0x16b   : > { %v1218_v62 = vand.u32 2147483647, %v1217_v57  ;;  %v1302_v53 = vadd.s32 %v1301_v40, %v1297_v18  ;;  %v1135_v63 = vsel %vm1133_vm5, %v1134_v22, %v2583_v33  ;;  %v1363_v12 = vshll.u32 %v2724_v46, %v1360_v58 }
 0x16c   : > { %v1364_v27 = vshrl.u32 %v2725_v48, %v1361_v39  ;;  %v1366_v29 = vshll.u32 %v2725_v48, %v1360_v58  ;;  %v1132_v4 = vsel %vm1130_vm4, %v2581_v49, %v1131_v38  ;;  %v1367_v43 = vshrl.u32 %v2726_v50, %v1361_v39 }
 0x16d   : > { %v1221_v44 = vmul.f32 %v1220_v25, %v1218_v62  ;;  %v1303_v11 = vadd.s32 536870912, %v1302_v53  ;;  %v1136_v0 = vsel %vm1129_vm3, %v1132_v4, %v1135_v63  ;;  %v1359_v30 = vshrl.u32 %v1358_v21, 5 }
 0x16e   : > { %v1369_v17 = vshll.u32 %v2726_v50, %v1360_v58  ;;  %v1370_v32 = vshrl.u32 %v2727_v52, %v1361_v39  ;;  %v1137_v34 = vsel %vm1126_vm2, nan, %v1136_v0  ;;  %v1372_v59 = vshll.u32 %v2727_v52, %v1360_v58 }
 0x16f   : > { %v1222_v45 = vxor.u32 2147483648, %v1221_v44  ;;  %v1304_v15 = vshrl.u32 %v1303_v11, 30  ;;  %v2124_v5 = vrot.slane %v1137_v34, %v2820_v3  ;;  %v1365_v42 = vor.u32 %v1364_v27, %v1363_v12 }
 0x170   : > { %v1373_v41 = vshrl.u32 %v2728_v54, %v1361_v39  ;;  %v1375_v28 = vshll.u32 %v2728_v54, %v1360_v58  ;;  %v1368_v55 = vor.u32 %v1367_v43, %v1366_v29  ;;  %v1376_v8 = vshrl.u32 %v2729_v61, %v1361_v39 }
 0x171   : > { %v1223_v2 = vsel %vm1140_vm10, %v1222_v45, %v1221_v44  ;;  %v1305_v24 = vshll.u32 %v1304_v15, 30  ;;  %v2171_v16 = vsel %vm2088_vm6, %v2124_v5, %v3186_v23  ;;  %v2172_v21 = vsel %vm2088_vm6, %v2124_v5, %v3260_v19 }
 0x172   : > { %v1226_v47 = vsel %vm3911_vm13, %v3678_v60, %v1223_v2  ;;  %v1374_v7 = vor.u32 %v1373_v41, %v1372_v59  ;;  %2203 = vst [vmem:[%s3196_s29 + $0x80] sm:$0xff] %v2171_v16  ;;  %2204 = vst [vmem:[%s3196_s29 + $0x88] sm:$0xff] %v2172_v21  ;;  %v1362_v58 = vshrl.u32 %v2724_v46, %v1361_v39  ;;  %v4004_v49 = vand.u32 3, %v1231_v37 }
 0x173   : > { %2584 = vcosq.f32 %v1226_v47  ;;  %v4001_v18 = vsub.s32 %v1302_v53, %v1305_v24  ;;  %v1371_v13 = vor.u32 %v1370_v32, %v1369_v17  ;;  %v1377_v57 = vor.u32 %v1376_v8, %v1375_v28 }
 0x174   : > { %2586 = vsinq.f32 %v1226_v47  ;;  %vm1378_vm8 = vcmp.lt.s32.totalorder %v1359_v30, 1  ;;  %vm1379_vm9 = vcmp.lt.s32.totalorder %v1359_v30, 2  ;;  %vm1380_vm10 = vcmp.lt.s32.totalorder %v1359_v30, 3 }
 0x175   : > { %v1308_v25 = vsub.s32 0, %v4001_v18  ;;  %vm1381_vm12 = vcmp.lt.s32.totalorder %v1359_v30, 4  ;;  %v1386_v33 = vsel %vm1378_vm8, %v1365_v42, %v1368_v55  ;;  %v1394_v40 = vshll.u32 %v1354_v35, 8 }
 0x176   : > { %v1383_v20 = vsel %vm1381_vm12, %v1371_v13, 2102212464  ;;  %v1387_v22 = vsel %vm1381_vm12, %v1374_v7, 920167782  ;;  %v1382_v62 = vsel %vm1378_vm8, %v1362_v58, %v1365_v42  ;;  %v4010_v53 = vadd.f32 %v2825_v9, %v179_v36 }
 0x177   : > { %v2357_v38 = vmin.u32 %v1308_v25, %v4001_v18  ;;  %v1388_v39 = vsel %vm1380_vm10, %v1371_v13, %v1387_v22  ;;  %v1384_v37 = vsel %vm1380_vm10, %v1368_v55, %v1383_v20  ;;  %v1390_v12 = vsel %vm1378_vm8, %v1368_v55, %v1371_v13 }
 0x178   : > { %v1389_v63 = vsel %vm1379_vm9, %v1386_v33, %v1388_v39  ;;  %v1391_v27 = vsel %vm1381_vm12, %v1377_v57, 1326507024  ;;  %v1328_v4 = vsub.s32 4, %v1304_v15  ;;  %vm1244_vm13 = vcmp.lt.s32.totalorder %v3774_v1, 0 }
 0x179   : > { %v1310_v29 = vclz %v2357_v38  ;;  %v1392_v35 = vsel %vm1380_vm10, %v1374_v7, %v1391_v27  ;;  %v4016_v44 = vmul.u32.u64.low %v1394_v40, %v1389_v63  ;;  %v4017_v11 = vmul.u32.u64.high %v1394_v40, %v1389_v63, %v4016_v44 }
 0x17a   : > { %vm1230_vm11 = vweird.f32 %v3678_v60  ;;  %vm4023_vm14 = vcmp.le.f32.partialorder %v1242_v6, 0.7853982  ;;  %v1385_v0 = vsel %vm1379_vm9, %v1382_v62, %v1384_v37  ;;  %v1393_v17 = vsel %vm1379_vm9, %v1390_v12, %v1392_v35 }
 0x17b   : > { %v2358_v43 = vadd.s32 4294967294, %v1310_v29  ;;  %vm1233_vm0 = vcmp.lt.s32.totalorder %v4004_v49, 2  ;;  %v4030_v32 = vmul.u32.u64.low %v1394_v40, %v1393_v17  ;;  %v4031_v34 = vmul.u32.u64.high %v1394_v40, %v1393_v17, %v4030_v32 }
 0x17c   : > { %v1453_v45 = vand.u32 2139095040, %v4010_v53  ;;  %vm1234_vm15 = vcmp.eq.s32.totalorder %v4004_v49, 0  ;;  %v1298_v6 = vadd.s32 %v3947_v10, %v3954_v56  ;;  %v1329_v59 = vsel %vm1244_vm13, %v1328_v4, %v1304_v15 }
 0x17d   : > { %vm2359_vm1 = vcmp.lt.s32.totalorder %v2358_v43, 0  ;;  %v1401_v42 = vmul.u32 %v1394_v40, %v1385_v0  ;;  %v1404_v30 = vadd.s32 1, %v4017_v11  ;;  %vm1237_vm2 = vcmp.eq.s32.totalorder %v4004_v49, 2 }
 0x17e   : > { %v1313_v5 = vsel %vm2359_vm1, 0, %v2358_v43  ;;  %v1454_v41 = vshrl.u32 %v1453_v45, 23  ;;  %v1331_v8 = vsel %vm4023_vm14, 0, %v1329_v59  ;;  %vm1403_vm3 = vc.u32 %v4031_v34, %v4016_v44 }
 0x17f   : > { %v1314_v28 = vsub.s32 32, %v1313_v5  ;;  %v1315_v2 = vshll.u32 %v4001_v18, %v1313_v5  ;;  %v1318_v24 = vsub.s32 4294967266, %v1313_v5  ;;  %v1450_v10 = vand.u32 2147483647, %v4010_v53 }
 0x180   : > { %v2585_v55 = vpop.eup %2584  ;;  %v2364_v56 = vadd.s32 4294967169, %v1454_v41  ;;  %v1405_v7 = vsel %vm1403_vm3, %v1404_v30, %v4017_v11  ;;  %v180_v57 = vmul.f32 14.0, %v3827_v14  ;;  %v1335_v22 = vadd.s32 3, %v1331_v8 }
 0x181   : > { %v2587_v15 = vpop.eup %2586  ;;  %v1238_v16 = vxor.u32 2147483648, %v2585_v55  ;;  %v1316_v21 = vshrl.u32 %v1298_v6, %v1314_v28  ;;  %v1319_v47 = vadd.s32 127, %v1318_v24  ;;  %v1406_v13 = vadd.s32 %v1405_v7, %v1401_v42 }
 0x182   : > { %v1235_v58 = vxor.u32 2147483648, %v2587_v15  ;;  %v1460_v18 = vadd.s32 1, %v2364_v56  ;;  %v1457_v62 = vand.u32 8388607, %v1450_v10  ;;  %v4060_v43 = vand.u32 3, %v1335_v22 }
 0x183   : > { %v1239_v25 = vsel %vm1237_vm2, %v1238_v16, %v2587_v15  ;;  %v1317_v20 = vor.u32 %v1316_v21, %v1315_v2  ;;  %v1320_v33 = vshll.u32 %v1319_v47, 23  ;;  %v1407_v38 = vadd.s32 536870912, %v1406_v13 }
 0x184   : > { %v1236_v40 = vsel %vm1234_vm15, %v2585_v55, %v1235_v58  ;;  %vm1461_vm4 = vcmp.gt.s32.totalorder %v1460_v18, 0  ;;  %v4063_v0 = vmul.f32 15.0, %v3827_v14  ;;  %vm1348_vm5 = vcmp.lt.s32.totalorder %v3849_v26, 0 }
 0x185   : > { %v1240_v39 = vsel %vm1233_vm0, %v1236_v40, %v1239_v25  ;;  %v1321_v37 = vor.u32 4788187, %v1320_v33  ;;  %v1324_v63 = vcvt.s32.f32 %v1317_v20  ;;  %v1462_v12 = vsel %vm1461_vm4, %v1460_v18, 0 }
 0x186   : > { %v1241_v27 = vsel %vm1230_vm11, nan, %v1240_v39  ;;  %v1408_v29 = vshrl.u32 %v1407_v38, 30  ;;  %v1464_v4 = vand.u32 31, %v1462_v12  ;;  %v1458_v17 = vor.u32 8388608, %v1457_v62 }
 0x187   : > { %v2128_v35 = vrot.slane %v1241_v27, %v2820_v3  ;;  %v1322_v11 = vand.u32 2147483647, %v1321_v37  ;;  %v4067_v60 = vadd.f32 %v2825_v9, %v180_v57  ;;  %v1402_v5 = vadd.s32 %v4016_v44, %v4031_v34 }
 0x188   : > { %v1409_v49 = vshll.u32 %v1408_v29, 30  ;;  %v1465_v32 = vsub.s32 32, %v1464_v4  ;;  %v1467_v14 = vshll.u32 %v2724_v46, %v1464_v4  ;;  %v1470_v41 = vshll.u32 %v2725_v48, %v1464_v4 }
 0x189   : > { %v2173_v45 = vsel %vm2088_vm6, %v2128_v35, %v3186_v23  ;;  %v2174_v6 = vsel %vm2088_vm6, %v2128_v35, %v3260_v19  ;;  %v1325_v59 = vmul.f32 %v1324_v63, %v1322_v11  ;;  %v1463_v2 = vshrl.u32 %v1462_v12, 5 }
 0x18a   : > { %2205 = vst [vmem:[%s3196_s29 + $0x90] sm:$0xff] %v2173_v45  ;;  %2206 = vst [vmem:[%s3196_s29 + $0x98] sm:$0xff] %v2174_v6  ;;  %v4080_v42 = vsub.s32 %v1406_v13, %v1409_v49  ;;  %v1468_v30 = vshrl.u32 %v2725_v48, %v1465_v32  ;;  %v1471_v24 = vshrl.u32 %v2726_v50, %v1465_v32  ;;  %v1432_v56 = vsub.s32 4, %v1408_v29 }
 0x18b   : > { %v1326_v28 = vxor.u32 2147483648, %v1325_v59  ;;  %v1473_v55 = vshll.u32 %v2726_v50, %v1464_v4  ;;  %v1466_v15 = vshrl.u32 %v2724_v46, %v1465_v32  ;;  %v1474_v16 = vshrl.u32 %v2727_v52, %v1465_v32 }
 0x18c   : > { %v1412_v8 = vsub.s32 0, %v4080_v42  ;;  %v1469_v34 = vor.u32 %v1468_v30, %v1467_v14  ;;  %v1476_v21 = vshll.u32 %v2727_v52, %v1464_v4  ;;  %v1477_v47 = vshrl.u32 %v2728_v54, %v1465_v32 }
 0x18d   : > { %v1327_v44 = vsel %vm1244_vm13, %v1326_v28, %v1325_v59  ;;  %v1472_v13 = vor.u32 %v1471_v24, %v1470_v41  ;;  %v1475_v18 = vor.u32 %v1474_v16, %v1473_v55  ;;  %v1479_v25 = vshll.u32 %v2728_v54, %v1464_v4 }
 0x18e   : > { %v1330_v7 = vsel %vm4023_vm14, %v3774_v1, %v1327_v44  ;;  %v2361_v58 = vmin.u32 %v1412_v8, %v4080_v42  ;;  %v1478_v57 = vor.u32 %v1477_v47, %v1476_v21  ;;  %v1480_v20 = vshrl.u32 %v2729_v61, %v1465_v32 }
 0x18f   : > { %2588 = vcosq.f32 %v1330_v7  ;;  %v1498_v22 = vshll.u32 %v1458_v17, 8  ;;  %v1557_v40 = vand.u32 2139095040, %v4067_v60  ;;  %v1433_v38 = vsel %vm1348_vm5, %v1432_v56, %v1408_v29 }
 0x190   : > { %2590 = vsinq.f32 %v1330_v7  ;;  %v1414_v33 = vclz %v2361_v58  ;;  %v1481_v36 = vor.u32 %v1480_v20, %v1479_v25  ;;  %vm1482_vm7 = vcmp.lt.s32.totalorder %v1463_v2, 1 }
 0x191   : > { %vm1483_vm8 = vcmp.lt.s32.totalorder %v1463_v2, 2  ;;  %vm1484_vm9 = vcmp.lt.s32.totalorder %v1463_v2, 3  ;;  %vm1485_vm10 = vcmp.lt.s32.totalorder %v1463_v2, 4  ;;  %v1486_v39 = vsel %vm1482_vm7, %v1466_v15, %v1469_v34 }
 0x192   : > { %v2362_v62 = vadd.s32 4294967294, %v1414_v33  ;;  %v1487_v37 = vsel %vm1485_vm10, %v1475_v18, 2102212464  ;;  %v1490_v63 = vsel %vm1482_vm7, %v1469_v34, %v1472_v13  ;;  %v1491_v12 = vsel %vm1485_vm10, %v1478_v57, 920167782 }
 0x193   : > { %v1494_v27 = vsel %vm1482_vm7, %v1472_v13, %v1475_v18  ;;  %v1488_v4 = vsel %vm1484_vm9, %v1472_v13, %v1487_v37  ;;  %v1492_v35 = vsel %vm1484_vm9, %v1475_v18, %v1491_v12  ;;  %v1495_v11 = vsel %vm1485_vm10, %v1481_v36, 1326507024 }
 0x194   : > { %vm2363_vm12 = vcmp.lt.s32.totalorder %v2362_v62, 0  ;;  %v1489_v17 = vsel %vm1483_vm8, %v1486_v39, %v1488_v4  ;;  %v1493_v29 = vsel %vm1483_vm8, %v1490_v63, %v1492_v35  ;;  %v1496_v32 = vsel %vm1484_vm9, %v1478_v57, %v1495_v11 }
 0x195   : > { %v1417_v49 = vsel %vm2363_vm12, 0, %v2362_v62  ;;  %v1497_v14 = vsel %vm1483_vm8, %v1494_v27, %v1496_v32  ;;  %v4109_v28 = vmul.u32.u64.low %v1498_v22, %v1493_v29  ;;  %v4110_v24 = vmul.u32.u64.high %v1498_v22, %v1493_v29, %v4109_v28 }
 0x196   : > { %v1418_v45 = vsub.s32 32, %v1417_v49  ;;  %v1419_v6 = vshll.u32 %v4080_v42, %v1417_v49  ;;  %v1422_v59 = vsub.s32 4294967266, %v1417_v49  ;;  %vm4115_vm13 = vcmp.le.f32.partialorder %v1346_v51, 0.7853982 }
 0x197   : > { %v4106_v30 = vmul.u32.u64.low %v1498_v22, %v1497_v14  ;;  %v4107_v41 = vmul.u32.u64.high %v1498_v22, %v1497_v14, %v4106_v30  ;;  %v1558_v15 = vshrl.u32 %v1557_v40, 23  ;;  %vm1334_vm11 = vweird.f32 %v3774_v1 }
 0x198   : > { %v1420_v8 = vshrl.u32 %v1402_v5, %v1418_v45  ;;  %v1423_v56 = vadd.s32 127, %v1422_v59  ;;  %vm1337_vm14 = vcmp.lt.s32.totalorder %v4060_v43, 2  ;;  %v1435_v42 = vsel %vm4115_vm13, 0, %v1433_v38 }
 0x199   : > { %v1505_v44 = vmul.u32 %v1498_v22, %v1489_v17  ;;  %v2368_v34 = vadd.s32 4294967169, %v1558_v15  ;;  %vm1507_vm0 = vc.u32 %v4107_v41, %v4109_v28  ;;  %v1508_v51 = vadd.s32 1, %v4110_v24 }
 0x19a   : > { %v1421_v2 = vor.u32 %v1420_v8, %v1419_v6  ;;  %v1424_v16 = vshll.u32 %v1423_v56, 23  ;;  %v1554_v5 = vand.u32 2147483647, %v4067_v60  ;;  %v4129_v21 = vadd.f32 %v2825_v9, %v4063_v0 }
 0x19b   : > { %vm1341_vm15 = vcmp.eq.s32.totalorder %v4060_v43, 2  ;;  %v1564_v13 = vadd.s32 1, %v2368_v34  ;;  %vm1338_vm1 = vcmp.eq.s32.totalorder %v4060_v43, 0  ;;  %v1439_v25 = vadd.s32 3, %v1435_v42 }
 0x19c   : > { %v2589_v47 = vpop.eup %2588  ;;  %v1425_v7 = vor.u32 4788187, %v1424_v16  ;;  %v1428_v58 = vcvt.s32.f32 %v1421_v2  ;;  %v1509_v20 = vsel %vm1507_vm0, %v1508_v51, %v4110_v24  ;;  %v1561_v0 = vand.u32 8388607, %v1554_v5 }
 0x19d   : > { %v2591_v18 = vpop.eup %2590  ;;  %v1342_v57 = vxor.u32 2147483648, %v2589_v47  ;;  %v1510_v40 = vadd.s32 %v1509_v20, %v1505_v44  ;;  %vm1565_vm2 = vcmp.gt.s32.totalorder %v1564_v13, 0  ;;  %v1661_v62 = vand.u32 2139095040, %v4129_v21 }
 0x19e   : > { %v1339_v33 = vxor.u32 2147483648, %v2591_v18  ;;  %v1426_v22 = vand.u32 2147483647, %v1425_v7  ;;  %v1566_v36 = vsel %vm1565_vm2, %v1564_v13, 0  ;;  %v4141_v11 = vand.u32 3, %v1439_v25 }
 0x19f   : > { %v1343_v38 = vsel %vm1341_vm15, %v1342_v57, %v2591_v18  ;;  %v1511_v63 = vadd.s32 536870912, %v1510_v40  ;;  %v1568_v27 = vand.u32 31, %v1566_v36  ;;  %v1562_v29 = vor.u32 8388608, %v1561_v0 }
 0x1a0   : > { %v1340_v39 = vsel %vm1338_vm1, %v2589_v47, %v1339_v33  ;;  %v1429_v37 = vmul.f32 %v1428_v58, %v1426_v22  ;;  %v1662_v45 = vshrl.u32 %v1661_v62, 23  ;;  %v4149_v59 = vshrl.u32 %v1566_v36, 5 }
 0x1a1   : > { %v1344_v12 = vsel %vm1337_vm14, %v1340_v39, %v1343_v38  ;;  %v4143_v49 = vshrl.u32 %v1511_v63, 30  ;;  %v1569_v32 = vsub.s32 32, %v1568_v27  ;;  %v1571_v1 = vshll.u32 %v2724_v46, %v1568_v27 }
 0x1a2   : > { %v1345_v4 = vsel %vm1334_vm11, nan, %v1344_v12  ;;  %v1430_v35 = vxor.u32 2147483648, %v1429_v37  ;;  %v1574_v8 = vshll.u32 %v2725_v48, %v1568_v27  ;;  %v1577_v42 = vshll.u32 %v2726_v50, %v1568_v27 }
 0x1a3   : > { %v2132_v17 = vrot.slane %v1345_v4, %v2820_v3  ;;  %v1513_v6 = vshll.u32 %v4143_v49, 30  ;;  %v1572_v15 = vshrl.u32 %v2725_v48, %v1569_v32  ;;  %v1575_v2 = vshrl.u32 %v2726_v50, %v1569_v32 }
 0x1a4   : > { %v1431_v43 = vsel %vm1348_vm5, %v1430_v35, %v1429_v37  ;;  %v1578_v16 = vshrl.u32 %v2727_v52, %v1569_v32  ;;  %v2372_v44 = vadd.s32 4294967169, %v1662_v45  ;;  %v1580_v34 = vshll.u32 %v2727_v52, %v1568_v27 }
 0x1a5   : > { %v2175_v14 = vsel %vm2088_vm6, %v2132_v17, %v3186_v23  ;;  %v2176_v30 = vsel %vm2088_vm6, %v2132_v17, %v3260_v19  ;;  %v1434_v24 = vsel %vm4115_vm13, %v3849_v26, %v1431_v43  ;;  %v4164_v56 = vsub.s32 %v1510_v40, %v1513_v6 }
 0x1a6   : > { %2207 = vst [vmem:[%s3196_s29 + $0xa0] sm:$0xff] %v2175_v14  ;;  %2208 = vst [vmem:[%s3196_s29 + $0xa8] sm:$0xff] %v2176_v30  ;;  %2592 = vcosq.f32 %v1434_v24  ;;  %vm1586_vm3 = vcmp.lt.s32.totalorder %v4149_v59, 1  ;;  %v1658_v51 = vand.u32 2147483647, %v4129_v21  ;;  %v1573_v47 = vor.u32 %v1572_v15, %v1571_v1 }
 0x1a7   : > { %2594 = vsinq.f32 %v1434_v24  ;;  %v1516_v55 = vsub.s32 0, %v4164_v56  ;;  %v1576_v7 = vor.u32 %v1575_v2, %v1574_v8  ;;  %v1581_v58 = vshrl.u32 %v2728_v54, %v1569_v32 }
 0x1a8   : > { %v1583_v13 = vshll.u32 %v2728_v54, %v1568_v27  ;;  %v1570_v57 = vshrl.u32 %v2724_v46, %v1569_v32  ;;  %v1579_v25 = vor.u32 %v1578_v16, %v1577_v42  ;;  %v1584_v20 = vshrl.u32 %v2729_v61, %v1569_v32 }
 0x1a9   : > { %v2365_v18 = vmin.u32 %v1516_v55, %v4164_v56  ;;  %v1582_v33 = vor.u32 %v1581_v58, %v1580_v34  ;;  %vm1588_vm4 = vcmp.lt.s32.totalorder %v4149_v59, 3  ;;  %vm1589_vm5 = vcmp.lt.s32.totalorder %v4149_v59, 4 }
 0x1aa   : > { %v1668_v22 = vadd.s32 1, %v2372_v44  ;;  %vm1442_vm7 = vcmp.eq.s32.totalorder %v4141_v11, 0  ;;  %v1506_v40 = vadd.s32 %v4109_v28, %v4107_v41  ;;  %vm1587_vm8 = vcmp.lt.s32.totalorder %v4149_v59, 2 }
 0x1ab   : > { %v1518_v38 = vclz %v2365_v18  ;;  %v1602_v0 = vshll.u32 %v1562_v29, 8  ;;  %vm1441_vm9 = vcmp.lt.s32.totalorder %v4141_v11, 2  ;;  %v1585_v36 = vor.u32 %v1584_v20, %v1583_v13 }
 0x1ac   : > { %v1591_v62 = vsel %vm1589_vm5, %v1579_v25, 2102212464  ;;  %v1594_v39 = vsel %vm1586_vm3, %v1573_v47, %v1576_v7  ;;  %v1595_v37 = vsel %vm1589_vm5, %v1582_v33, 920167782  ;;  %vm1438_vm10 = vweird.f32 %v3849_v26 }
 0x1ad   : > { %v2366_v63 = vadd.s32 4294967294, %v1518_v38  ;;  %v1590_v41 = vsel %vm1586_vm3, %v1570_v57, %v1573_v47  ;;  %v1596_v28 = vsel %vm1588_vm4, %v1579_v25, %v1595_v37  ;;  %v1598_v12 = vsel %vm1586_vm3, %v1576_v7, %v1579_v25 }
 0x1ae   : > { %v1592_v27 = vsel %vm1588_vm4, %v1576_v7, %v1591_v62  ;;  %v1597_v4 = vsel %vm1587_vm8, %v1594_v39, %v1596_v28  ;;  %v1599_v35 = vsel %vm1589_vm5, %v1585_v36, 1326507024  ;;  %vm1669_vm12 = vcmp.gt.s32.totalorder %v1668_v22, 0 }
 0x1af   : > { %vm2367_vm13 = vcmp.lt.s32.totalorder %v2366_v63, 0  ;;  %v1600_v17 = vsel %vm1588_vm4, %v1582_v33, %v1599_v35  ;;  %v4207_v29 = vmul.u32.u64.low %v1602_v0, %v1597_v4  ;;  %v4208_v32 = vmul.u32.u64.high %v1602_v0, %v1597_v4, %v4207_v29 }
 0x1b0   : > { %v1521_v45 = vsel %vm2367_vm13, 0, %v2366_v63  ;;  %v1601_v43 = vsel %vm1587_vm8, %v1598_v12, %v1600_v17  ;;  %v4215_v6 = vand.u32 8388607, %v1658_v51  ;;  %v1670_v1 = vsel %vm1669_vm12, %v1668_v22, 0 }
 0x1b1   : > { %v1522_v14 = vsub.s32 32, %v1521_v45  ;;  %v1523_v30 = vshll.u32 %v4164_v56, %v1521_v45  ;;  %v1526_v24 = vsub.s32 4294967266, %v1521_v45  ;;  %v1593_v8 = vsel %vm1587_vm8, %v1590_v41, %v1592_v27 }
 0x1b2   : > { %vm1445_vm11 = vcmp.eq.s32.totalorder %v4141_v11, 2  ;;  %v4221_v42 = vmul.u32.u64.low %v1602_v0, %v1601_v43  ;;  %v4222_v2 = vmul.u32.u64.high %v1602_v0, %v1601_v43, %v4221_v42  ;;  %v1672_v16 = vand.u32 31, %v1670_v1 }
 0x1b3   : > { %v2593_v15 = vpop.eup %2592  ;;  %v1524_v34 = vshrl.u32 %v1506_v40, %v1522_v14  ;;  %v1527_v47 = vadd.s32 127, %v1526_v24  ;;  %v1612_v7 = vadd.s32 1, %v4208_v32  ;;  %vm1452_vm14 = vcmp.lt.s32.totalorder %v4010_v53, 0 }
 0x1b4   : > { %v2595_v44 = vpop.eup %2594  ;;  %v1446_v55 = vxor.u32 2147483648, %v2593_v15  ;;  %v1609_v56 = vmul.u32 %v1602_v0, %v1593_v8  ;;  %v1666_v59 = vor.u32 8388608, %v4215_v6  ;;  %v1673_v13 = vsub.s32 32, %v1672_v16 }
 0x1b5   : > { %v1443_v58 = vxor.u32 2147483648, %v2595_v44  ;;  %vm4229_vm0 = vcmp.le.f32.partialorder %v1450_v10, 0.7853982  ;;  %v1525_v25 = vor.u32 %v1524_v34, %v1523_v30  ;;  %v1528_v20 = vshll.u32 %v1527_v47, 23 }
 0x1b6   : > { %v1447_v18 = vsel %vm1445_vm11, %v1446_v55, %v2595_v44  ;;  %v1536_v33 = vsub.s32 4, %v4143_v49  ;;  %vm1611_vm15 = vc.u32 %v4222_v2, %v4207_v29  ;;  %v1675_v40 = vshll.u32 %v2724_v46, %v1672_v16 }
 0x1b7   : > { %v1444_v22 = vsel %vm1442_vm7, %v2593_v15, %v1443_v58  ;;  %v1678_v38 = vshll.u32 %v2725_v48, %v1672_v16  ;;  %v1529_v0 = vor.u32 4788187, %v1528_v20  ;;  %v1532_v36 = vcvt.s32.f32 %v1525_v25 }
 0x1b8   : > { %v1448_v10 = vsel %vm1441_vm9, %v1444_v22, %v1447_v18  ;;  %v1613_v62 = vsel %vm1611_vm15, %v1612_v7, %v4208_v32  ;;  %v1676_v63 = vshrl.u32 %v2725_v48, %v1673_v13  ;;  %v1679_v41 = vshrl.u32 %v2726_v50, %v1673_v13 }
 0x1b9   : > { %v1449_v39 = vsel %vm1438_vm10, nan, %v1448_v10  ;;  %v1614_v37 = vadd.s32 %v1613_v62, %v1609_v56  ;;  %v1530_v12 = vand.u32 2147483647, %v1529_v0  ;;  %v1671_v27 = vshrl.u32 %v1670_v1, 5  ;;  %v2614_v62 = vld [vmem:[#allocation2] sm:$0x3] }
 0x1ba   : > { %v2136_v28 = vrot.slane %v1449_v39, %v2820_v3  ;;  %v1684_v11 = vshll.u32 %v2727_v52, %v1672_v16  ;;  %v1681_v35 = vshll.u32 %v2726_v50, %v1672_v16  ;;  %v1682_v17 = vshrl.u32 %v2727_v52, %v1673_v13 }
 0x1bb   : > { %v1615_v4 = vadd.s32 536870912, %v1614_v37  ;;  %v1685_v26 = vshrl.u32 %v2728_v54, %v1673_v13  ;;  %v1533_v43 = vmul.f32 %v1532_v36, %v1530_v12  ;;  %v1677_v6 = vor.u32 %v1676_v63, %v1675_v40 }
 0x1bc   : > { %v2177_v32 = vsel %vm2088_vm6, %v2136_v28, %v3186_v23  ;;  %v2178_v45 = vsel %vm2088_vm6, %v2136_v28, %v3260_v19  ;;  %v1680_v14 = vor.u32 %v1679_v41, %v1678_v38  ;;  %v1687_v30 = vshll.u32 %v2728_v54, %v1672_v16 }
 0x1bd   : > { %2209 = vst [vmem:[%s3196_s29 + $0xb0] sm:$0xff] %v2177_v32  ;;  %2210 = vst [vmem:[%s3196_s29 + $0xb8] sm:$0xff] %v2178_v45  ;;  %v4260_v1 = vshrl.u32 %v1615_v4, 30  ;;  %v1688_v24 = vshrl.u32 %v2729_v61, %v1673_v13  ;;  %v1534_v8 = vxor.u32 2147483648, %v1533_v43  ;;  %v1537_v15 = vsel %vm1452_vm14, %v1536_v33, %v4143_v49 }
 0x1be   : > { %v1686_v42 = vor.u32 %v1685_v26, %v1684_v11  ;;  %vm1690_vm1 = vcmp.lt.s32.totalorder %v1671_v27, 1  ;;  %v1674_v55 = vshrl.u32 %v2724_v46, %v1673_v13  ;;  %v1683_v34 = vor.u32 %v1682_v17, %v1681_v35 }
 0x1bf   : > { %v1617_v44 = vshll.u32 %v4260_v1, 30  ;;  %vm1693_vm2 = vcmp.lt.s32.totalorder %v1671_v27, 4  ;;  %v1535_v47 = vsel %vm1452_vm14, %v1534_v8, %v1533_v43  ;;  %v1689_v7 = vor.u32 %v1688_v24, %v1687_v30 }
 0x1c0   : > { %vm1691_vm3 = vcmp.lt.s32.totalorder %v1671_v27, 2  ;;  %vm1692_vm4 = vcmp.lt.s32.totalorder %v1671_v27, 3  ;;  %v1538_v16 = vsel %vm4229_vm0, %v4010_v53, %v1535_v47  ;;  %v1695_v49 = vsel %vm1693_vm2, %v1683_v34, 2102212464 }
 0x1c1   : > { %v1618_v58 = vsub.s32 %v1614_v37, %v1617_v44  ;;  %v1698_v56 = vsel %vm1690_vm1, %v1677_v6, %v1680_v14  ;;  %v1539_v13 = vsel %vm4229_vm0, 0, %v1537_v15  ;;  %2596 = vcosq.f32 %v1538_v16 }
 0x1c2   : > { %v1699_v18 = vsel %vm1693_vm2, %v1686_v42, 920167782  ;;  %v1706_v25 = vshll.u32 %v1666_v59, 8  ;;  %2598 = vsinq.f32 %v1538_v16  ;;  %v1694_v33 = vsel %vm1690_vm1, %v1674_v55, %v1677_v6 }
 0x1c3   : > { %v1620_v20 = vsub.s32 0, %v1618_v58  ;;  %v1700_v22 = vsel %vm1692_vm4, %v1683_v34, %v1699_v18  ;;  %v1696_v40 = vsel %vm1692_vm4, %v1680_v14, %v1695_v49  ;;  %v1702_v10 = vsel %vm1690_vm1, %v1680_v14, %v1683_v34 }
 0x1c4   : > { %v1701_v38 = vsel %vm1691_vm3, %v1698_v56, %v1700_v22  ;;  %v1703_v0 = vsel %vm1693_vm2, %v1689_v7, 1326507024  ;;  %v182_v39 = vmul.f32 16.0, %v2614_v62  ;;  %v1543_v59 = vadd.s32 3, %v1539_v13 }
 0x1c5   : > { %v2369_v57 = vmin.u32 %v1620_v20, %v1618_v58  ;;  %v1704_v36 = vsel %vm1692_vm4, %v1686_v42, %v1703_v0  ;;  %v4287_v63 = vmul.u32.u64.low %v1706_v25, %v1701_v38  ;;  %v4288_v41 = vmul.u32.u64.high %v1706_v25, %v1701_v38, %v4287_v63 }
 0x1c6   : > { %v1705_v37 = vsel %vm1691_vm3, %v1702_v10, %v1704_v36  ;;  %v1697_v12 = vsel %vm1691_vm3, %v1694_v33, %v1696_v40  ;;  %v4296_v35 = vadd.f32 %v2825_v9, %v182_v39  ;;  %v1544_v26 = vand.u32 3, %v1543_v59 }
 0x1c7   : > { %v1622_v28 = vclz %v2369_v57  ;;  %v4292_v11 = vmul.u32.u64.low %v1706_v25, %v1705_v37  ;;  %v4293_v4 = vmul.u32.u64.high %v1706_v25, %v1705_v37, %v4292_v11  ;;  %v1713_v32 = vmul.u32 %v1706_v25, %v1697_v12 }
 0x1c8   : > { %v1716_v45 = vadd.s32 1, %v4288_v41  ;;  %v1765_v43 = vand.u32 2139095040, %v4296_v35  ;;  %v1610_v6 = vadd.s32 %v4207_v29, %v4222_v2  ;;  %vm1545_vm8 = vcmp.lt.s32.totalorder %v1544_v26, 2 }
 0x1c9   : > { %v2370_v17 = vadd.s32 4294967294, %v1622_v28  ;;  %vm1715_vm7 = vc.u32 %v4293_v4, %v4287_v63  ;;  %vm1546_vm9 = vcmp.eq.s32.totalorder %v1544_v26, 0  ;;  %vm1549_vm10 = vcmp.eq.s32.totalorder %v1544_v26, 2 }
 0x1ca   : > { %v1717_v9 = vsel %vm1715_vm7, %v1716_v45, %v4288_v41  ;;  %v1766_v15 = vshrl.u32 %v1765_v43, 23  ;;  %v1640_v2 = vsub.s32 4, %v4260_v1  ;;  %v1762_v56 = vand.u32 2147483647, %v4296_v35 }
 0x1cb   : > { %vm2371_vm5 = vcmp.lt.s32.totalorder %v2370_v17, 0  ;;  %v1718_v8 = vadd.s32 %v1717_v9, %v1713_v32  ;;  %vm1542_vm12 = vweird.f32 %v4010_v53  ;;  %vm1556_vm13 = vcmp.lt.s32.totalorder %v4067_v60, 0 }
 0x1cc   : > { %v1625_v14 = vsel %vm2371_vm5, 0, %v2370_v17  ;;  %v2376_v7 = vadd.s32 4294967169, %v1766_v15  ;;  %v1641_v38 = vsel %vm1556_vm13, %v1640_v2, %v4260_v1  ;;  %v1769_v57 = vand.u32 8388607, %v1762_v56 }
 0x1cd   : > { %v1626_v27 = vsub.s32 32, %v1625_v14  ;;  %v1627_v30 = vshll.u32 %v1618_v58, %v1625_v14  ;;  %v1630_v24 = vsub.s32 4294967266, %v1625_v14  ;;  %v1719_v47 = vadd.s32 536870912, %v1718_v8 }
 0x1ce   : > { %v2597_v42 = vpop.eup %2596  ;;  %v1772_v25 = vadd.s32 1, %v2376_v7  ;;  %vm4322_vm14 = vcmp.le.f32.partialorder %v1554_v5, 0.7853982  ;;  %v1770_v17 = vor.u32 8388608, %v1769_v57  ;;  %v1714_v43 = vadd.s32 %v4287_v63, %v4293_v4 }
 0x1cf   : > { %v1628_v44 = vshrl.u32 %v1610_v6, %v1626_v27  ;;  %v1631_v55 = vadd.s32 127, %v1630_v24  ;;  %v2599_v34 = vpop.eup %2598  ;;  %v1550_v29 = vxor.u32 2147483648, %v2597_v42  ;;  %v4308_v18 = vshrl.u32 %v1719_v47, 30 }
 0x1d0   : > { %v1547_v16 = vxor.u32 2147483648, %v2599_v34  ;;  %vm1773_vm11 = vcmp.gt.s32.totalorder %v1772_v25, 0  ;;  %v1643_v37 = vsel %vm4322_vm14, 0, %v1641_v38  ;;  %vm1646_vm5 = vweird.f32 %v4067_v60 }
 0x1d1   : > { %v1629_v49 = vor.u32 %v1628_v44, %v1627_v30  ;;  %v1632_v58 = vshll.u32 %v1631_v55, 23  ;;  %v1551_v13 = vsel %vm1549_vm10, %v1550_v29, %v2599_v34  ;;  %v1721_v10 = vshll.u32 %v4308_v18, 30 }
 0x1d2   : > { %v1548_v20 = vsel %vm1546_vm9, %v2597_v42, %v1547_v16  ;;  %v1774_v36 = vsel %vm1773_vm11, %v1772_v25, 0  ;;  %v1647_v45 = vadd.s32 3, %v1643_v37  ;;  %v4350_v55 = vshll.u32 %v1770_v17, 8 }
 0x1d3   : > { %v1633_v33 = vor.u32 4788187, %v1632_v58  ;;  %v1636_v22 = vcvt.s32.f32 %v1629_v49  ;;  %v1552_v40 = vsel %vm1545_vm8, %v1548_v20, %v1551_v13  ;;  %v1722_v1 = vsub.s32 %v1718_v8, %v1721_v10 }
 0x1d4   : > { %v1553_v53 = vsel %vm1542_vm12, nan, %v1552_v40  ;;  %v1776_v41 = vand.u32 31, %v1774_v36  ;;  %v1775_v14 = vshrl.u32 %v1774_v36, 5  ;;  %v1648_v57 = vand.u32 3, %v1647_v45 }
 0x1d5   : > { %v1634_v0 = vand.u32 2147483647, %v1633_v33  ;;  %v2140_v62 = vrot.slane %v1553_v53, %v2820_v3  ;;  %v1724_v11 = vsub.s32 0, %v1722_v1  ;;  %vm1660_vm10 = vcmp.lt.s32.totalorder %v4129_v21, 0 }
 0x1d6   : > { %v1777_v26 = vsub.s32 32, %v1776_v41  ;;  %v1779_v32 = vshll.u32 %v2724_v46, %v1776_v41  ;;  %v1782_v24 = vshll.u32 %v2725_v48, %v1776_v41  ;;  %v1785_v42 = vshll.u32 %v2726_v50, %v1776_v41 }
 0x1d7   : > { %v1637_v59 = vmul.f32 %v1636_v22, %v1634_v0  ;;  %v2179_v28 = vsel %vm2088_vm6, %v2140_v62, %v3186_v23  ;;  %v2180_v12 = vsel %vm2088_vm6, %v2140_v62, %v3260_v19  ;;  %v2373_v6 = vmin.u32 %v1724_v11, %v1722_v1 }
 0x1d8   : > { %2211 = vst [vmem:[%s3196_s29 + $0xc0] sm:$0xff] %v2179_v28  ;;  %2212 = vst [vmem:[%s3196_s29 + $0xc8] sm:$0xff] %v2180_v12  ;;  %v1780_v30 = vshrl.u32 %v2725_v48, %v1777_v26  ;;  %v1783_v9 = vshrl.u32 %v2726_v50, %v1777_v26  ;;  %v1788_v63 = vshll.u32 %v2727_v52, %v1776_v41  ;;  %vm1794_vm0 = vcmp.lt.s32.totalorder %v1775_v14, 1 }
 0x1d9   : > { %v1638_v5 = vxor.u32 2147483648, %v1637_v59  ;;  %v1726_v15 = vclz %v2373_v6  ;;  %v1778_v4 = vshrl.u32 %v2724_v46, %v1777_v26  ;;  %v1786_v48 = vshrl.u32 %v2727_v52, %v1777_v26 }
 0x1da   : > { %v1781_v44 = vor.u32 %v1780_v30, %v1779_v32  ;;  %v1789_v29 = vshrl.u32 %v2728_v54, %v1777_v26  ;;  %v1784_v2 = vor.u32 %v1783_v9, %v1782_v24  ;;  %v1791_v47 = vshll.u32 %v2728_v54, %v1776_v41 }
 0x1db   : > { %v1639_v27 = vsel %vm1556_vm13, %v1638_v5, %v1637_v59  ;;  %v2374_v34 = vadd.s32 4294967294, %v1726_v15  ;;  %v1792_v7 = vshrl.u32 %v2729_v61, %v1777_v26  ;;  %v1787_v50 = vor.u32 %v1786_v48, %v1785_v42 }
 0x1dc   : > { %v1642_v8 = vsel %vm4322_vm14, %v4067_v60, %v1639_v27  ;;  %v1790_v16 = vor.u32 %v1789_v29, %v1788_v63  ;;  %vm1795_vm1 = vcmp.lt.s32.totalorder %v1775_v14, 2  ;;  %vm1796_vm2 = vcmp.lt.s32.totalorder %v1775_v14, 3 }
 0x1dd   : > { %2600 = vcosq.f32 %v1642_v8  ;;  %vm2375_vm15 = vcmp.lt.s32.totalorder %v2374_v34, 0  ;;  %v1793_v49 = vor.u32 %v1792_v7, %v1791_v47  ;;  %vm1797_vm3 = vcmp.lt.s32.totalorder %v1775_v14, 4 }
 0x1de   : > { %2602 = vsinq.f32 %v1642_v8  ;;  %v1729_v46 = vsel %vm2375_vm15, 0, %v2374_v34  ;;  %v1799_v52 = vsel %vm1797_vm3, %v1787_v50, 2102212464  ;;  %v1798_v20 = vsel %vm1794_vm0, %v1778_v4, %v1781_v44 }
 0x1df   : > { %v1730_v58 = vsub.s32 32, %v1729_v46  ;;  %v1731_v13 = vshll.u32 %v1722_v1, %v1729_v46  ;;  %v1734_v25 = vsub.s32 4294967266, %v1729_v46  ;;  %v1800_v33 = vsel %vm1796_vm2, %v1784_v2, %v1799_v52 }
 0x1e0   : > { %v1802_v54 = vsel %vm1794_vm0, %v1781_v44, %v1784_v2  ;;  %v1803_v61 = vsel %vm1797_vm3, %v1790_v16, 920167782  ;;  %v1806_v10 = vsel %vm1794_vm0, %v1784_v2, %v1787_v50  ;;  %v1807_v0 = vsel %vm1797_vm3, %v1793_v49, 1326507024 }
 0x1e1   : > { %v1732_v22 = vshrl.u32 %v1714_v43, %v1730_v58  ;;  %v1735_v40 = vadd.s32 127, %v1734_v25  ;;  %v1804_v38 = vsel %vm1796_vm2, %v1787_v50, %v1803_v61  ;;  %v1808_v39 = vsel %vm1796_vm2, %v1790_v16, %v1807_v0 }
 0x1e2   : > { %v1805_v53 = vsel %vm1795_vm1, %v1802_v54, %v1804_v38  ;;  %v1801_v1 = vsel %vm1795_vm1, %v1798_v20, %v1800_v33  ;;  %v1809_v59 = vsel %vm1795_vm1, %v1806_v10, %v1808_v39  ;;  %vm1653_vm4 = vcmp.eq.s32.totalorder %v1648_v57, 2 }
 0x1e3   : > { %v1733_v36 = vor.u32 %v1732_v22, %v1731_v13  ;;  %v1736_v62 = vshll.u32 %v1735_v40, 23  ;;  %v4366_v37 = vmul.u32.u64.low %v4350_v55, %v1805_v53  ;;  %v4367_v41 = vmul.u32.u64.high %v4350_v55, %v1805_v53, %v4366_v37 }
 0x1e4   : > { %v4370_v11 = vmul.u32.u64.low %v4350_v55, %v1809_v59  ;;  %v4371_v5 = vmul.u32.u64.high %v4350_v55, %v1809_v59, %v4370_v11  ;;  %v1817_v32 = vmul.u32 %v4350_v55, %v1801_v1  ;;  %vm1650_vm7 = vcmp.eq.s32.totalorder %v1648_v57, 0 }
 0x1e5   : > { %v1737_v28 = vor.u32 4788187, %v1736_v62  ;;  %v1740_v12 = vcvt.s32.f32 %v1733_v36  ;;  %v1820_v6 = vadd.s32 1, %v4367_v41  ;;  %vm1649_vm8 = vcmp.lt.s32.totalorder %v1648_v57, 2 }
 0x1e6   : > { %vm1819_vm9 = vc.u32 %v4371_v5, %v4366_v37  ;;  %v1744_v24 = vsub.s32 4, %v4308_v18  ;;  %vm4382_vm12 = vcmp.le.f32.partialorder %v1658_v51, 0.7853982  ;;  %v1818_v54 = vadd.s32 %v4366_v37, %v4371_v5 }
 0x1e7   : > { %v1738_v26 = vand.u32 2147483647, %v1737_v28  ;;  %v1821_v9 = vsel %vm1819_vm9, %v1820_v6, %v4367_v41  ;;  %vm1750_vm0 = vweird.f32 %v4129_v21  ;;  %vm1764_vm1 = vcmp.lt.s32.totalorder %v4296_v35, 0 }
 0x1e8   : > { %v1822_v63 = vadd.s32 %v1821_v9, %v1817_v32  ;;  %v1745_v29 = vsel %vm1660_vm10, %v1744_v24, %v4308_v18  ;;  %vm1763_vm2 = vcmp.le.f32.partialorder %v1762_v56, 0.7853982 }
 0x1e9   : > { %v1741_v27 = vmul.f32 %v1740_v12, %v1738_v26  ;;  %v1747_v18 = vsel %vm4382_vm12, 0, %v1745_v29 }
 0x1ea   : > { %v2601_v17 = vpop.eup %2600  ;;  %v1823_v34 = vadd.s32 536870912, %v1822_v63  ;;  %v1751_v16 = vadd.s32 3, %v1747_v18 }
 0x1eb   : > { %v2603_v45 = vpop.eup %2602  ;;  %v1654_v43 = vxor.u32 2147483648, %v2601_v17  ;;  %v1742_v42 = vxor.u32 2147483648, %v1741_v27 }
 0x1ec   : > { %v1651_v14 = vxor.u32 2147483648, %v2603_v45  ;;  %v1824_v2 = vshrl.u32 %v1823_v34, 30  ;;  %v1752_v58 = vand.u32 3, %v1751_v16 }
 0x1ed   : > { %v1655_v30 = vsel %vm1653_vm4, %v1654_v43, %v2603_v45  ;;  %v1743_v55 = vsel %vm1660_vm10, %v1742_v42, %v1741_v27 }
 0x1ee   : > { %v1652_v8 = vsel %vm1650_vm7, %v2601_v17, %v1651_v14  ;;  %v1746_v51 = vsel %vm4382_vm12, %v4129_v21, %v1743_v55  ;;  %v1825_v7 = vshll.u32 %v1824_v2, 30  ;;  %vm1757_vm13 = vcmp.eq.s32.totalorder %v1752_v58, 2 }
 0x1ef   : > { %v1656_v4 = vsel %vm1649_vm8, %v1652_v8, %v1655_v30  ;;  %2604 = vcosq.f32 %v1746_v51  ;;  %vm1754_vm11 = vcmp.eq.s32.totalorder %v1752_v58, 0  ;;  %vm1753_vm15 = vcmp.lt.s32.totalorder %v1752_v58, 2 }
 0x1f0   : > { %v1657_v44 = vsel %vm1646_vm5, nan, %v1656_v4  ;;  %2606 = vsinq.f32 %v1746_v51  ;;  %v1826_v50 = vsub.s32 %v1822_v63, %v1825_v7  ;;  %v1848_v17 = vsub.s32 4, %v1824_v2 }
 0x1f1   : > { %v2144_v48 = vrot.slane %v1657_v44, %v2820_v3  ;;  %vm1854_vm7 = vweird.f32 %v4296_v35 }
 0x1f2   : > { %v1828_v46 = vsub.s32 0, %v1826_v50  ;;  %v1849_v45 = vsel %vm1764_vm1, %v1848_v17, %v1824_v2 }
 0x1f3   : > { %v2181_v47 = vsel %vm2088_vm6, %v2144_v48, %v3186_v23  ;;  %v2182_v60 = vsel %vm2088_vm6, %v2144_v48, %v3260_v19  ;;  %v1851_v6 = vsel %vm1763_vm2, 0, %v1849_v45 }
 0x1f4   : > { %2213 = vst [vmem:[%s3196_s29 + $0xd0] sm:$0xff] %v2181_v47  ;;  %2214 = vst [vmem:[%s3196_s29 + $0xd8] sm:$0xff] %v2182_v60  ;;  %v2377_v49 = vmin.u32 %v1828_v46, %v1826_v50  ;;  %v1855_v14 = vadd.s32 3, %v1851_v6 }
 0x1f6   : > { %v1830_v13 = vclz %v2377_v49  ;;  %v1856_v27 = vand.u32 3, %v1855_v14 }
 0x1f8   : > { %v2378_v25 = vadd.s32 4294967294, %v1830_v13  ;;  %vm1861_vm3 = vcmp.eq.s32.totalorder %v1856_v27, 2  ;;  %vm1858_vm4 = vcmp.eq.s32.totalorder %v1856_v27, 0  ;;  %vm1857_vm5 = vcmp.lt.s32.totalorder %v1856_v27, 2 }
 0x1fa   : > { %vm2379_vm14 = vcmp.lt.s32.totalorder %v2378_v25, 0 }
 0x1fb   : > { %v1833_v22 = vsel %vm2379_vm14, 0, %v2378_v25 }
 0x1fc   : > { %v2605_v52 = vpop.eup %2604  ;;  %v1834_v38 = vsub.s32 32, %v1833_v22  ;;  %v1835_v10 = vshll.u32 %v1826_v50, %v1833_v22  ;;  %v1838_v53 = vsub.s32 4294967266, %v1833_v22 }
 0x1fd   : > { %v2607_v20 = vpop.eup %2606  ;;  %v1758_v33 = vxor.u32 2147483648, %v2605_v52 }
 0x1fe   : > { %v1755_v61 = vxor.u32 2147483648, %v2607_v20  ;;  %v1836_v36 = vshrl.u32 %v1818_v54, %v1834_v38  ;;  %v1839_v62 = vadd.s32 127, %v1838_v53 }
 0x1ff   : > { %v1759_v40 = vsel %vm1757_vm13, %v1758_v33, %v2607_v20 }
 0x200   : > { %v1756_v0 = vsel %vm1754_vm11, %v2605_v52, %v1755_v61  ;;  %v1837_v59 = vor.u32 %v1836_v36, %v1835_v10  ;;  %v1840_v37 = vshll.u32 %v1839_v62, 23 }
 0x201   : > { %v1760_v57 = vsel %vm1753_vm15, %v1756_v0, %v1759_v40 }
 0x202   : > { %v1761_v39 = vsel %vm1750_vm0, nan, %v1760_v57  ;;  %v1841_v28 = vor.u32 4788187, %v1840_v37  ;;  %v1844_v12 = vcvt.s32.f32 %v1837_v59 }
 0x203   : > { %v2148_v1 = vrot.slane %v1761_v39, %v2820_v3 }
 0x204   : > { %v1842_v11 = vand.u32 2147483647, %v1841_v28 }
 0x205   : > { %v2183_v21 = vsel %vm2088_vm6, %v2148_v1, %v3186_v23  ;;  %v2184_v41 = vsel %vm2088_vm6, %v2148_v1, %v3260_v19 }
 0x206   : > { %2215 = vst [vmem:[%s3196_s29 + $0xe0] sm:$0xff] %v2183_v21  ;;  %2216 = vst [vmem:[%s3196_s29 + $0xe8] sm:$0xff] %v2184_v41  ;;  %v1845_v5 = vmul.f32 %v1844_v12, %v1842_v11 }
 0x208   : > { %v1846_v26 = vxor.u32 2147483648, %v1845_v5 }
 0x20a   : > { %v1847_v32 = vsel %vm1764_vm1, %v1846_v26, %v1845_v5 }
 0x20b   : > { %v1850_v43 = vsel %vm1763_vm2, %v4296_v35, %v1847_v32 }
 0x20c   : > { %2608 = vcosq.f32 %v1850_v43 }
 0x20d   : > { %2610 = vsinq.f32 %v1850_v43 }
 0x219   : > { %v2609_v30 = vpop.eup %2608 }
 0x21a   : > { %v2611_v24 = vpop.eup %2610  ;;  %v1862_v9 = vxor.u32 2147483648, %v2609_v30 }
 0x21b   : > { %v1859_v56 = vxor.u32 2147483648, %v2611_v24 }
 0x21c   : > { %v1863_v8 = vsel %vm1861_vm3, %v1862_v9, %v2611_v24 }
 0x21d   : > { %v1860_v15 = vsel %vm1858_vm4, %v2609_v30, %v1859_v56 }
 0x21e   : > { %v1864_v42 = vsel %vm1857_vm5, %v1860_v15, %v1863_v8 }
 0x21f   : > { %v1865_v63 = vsel %vm1854_vm7, nan, %v1864_v42 }
 0x220   : > { %v2152_v4 = vrot.slane %v1865_v63, %v2820_v3 }
 0x222   : > { %v2185_v35 = vsel %vm2088_vm6, %v2152_v4, %v3186_v23  ;;  %v2186_v44 = vsel %vm2088_vm6, %v2152_v4, %v3260_v19 }
 0x223   : > { %2217 = vst [vmem:[%s3196_s29 + $0xf0] sm:$0xff] %v2185_v35  ;;  %2218 = vst [vmem:[%s3196_s29 + $0xf8] sm:$0xff] %v2186_v44 }
 0x224   : > { %2654 = shalt.err (!%p2651_p2)
}
 0x225   : > { %s2655_s20 = scalar_lea.hbm %s4425_s5, 4096  ;;  %s2659_s23 = scalar_lea.hbm %s4485_s1, 8192 }
 0x226   : > { %p2656_p3 = scmp.ne.s32.totalorder %s4425_s5, %s2655_s20  ;;  %p2660_p7 = scmp.lt.s32.totalorder %s4425_s5, %s4485_s1 }
 0x227   : > { %p2661_p9 = scmp.lt.s32.totalorder %s2659_s23, %s2655_s20 }
 0x228   : > { %p2657_p5 = pnand %p2656_p3, %p2783_p4 }
 0x229   : > { %p2662_p10 = por %p2661_p9, %p2660_p7 }
 0x22a   : > { %p2658_p6 = pneg %p2657_p5 }
 0x22c   : > { %p2663_p11 = pnand %p2662_p10, %p2658_p6 }
 0x22e   : > { %2666 = shalt.err (!%p2663_p11)
}
 0x22f   : > { %s2731_s26 = smov 128   ;;  %s2732_s27 = smov 8  }
 0x230   : > { %2470 = dma.vmem_to_hbm [thread:$0]  (%p2783_p4), %s4427_s2, 4096, %s4425_s5, %s4439_s9, %s2731_s26, %s2731_s26, %s2732_s27  }
 0x231 PF: > { %p2482_p12 = scmp.ge.s32.totalorder %s2721_s11, 2  ;;  %s2251_s28 = sand.u32 1, %s2701_s6  }
 0x232   : > { %s2252_s29 = scalar_lea.sflag [#allocation4], %s2251_s28 }
 0x233   : > { %p2477_p13 = pnand %p2482_p12, %p2790_p8 }
 0x235   : > { %p2478_p0 = pneg %p2477_p13 }
 0x237   : > { %2696 = dma.done.wait (%p2478_p0), %s2252_s29, 4096  }
 0x238   : > { %2698 = vsyncadd (%p2478_p0), %s2252_s29, 4294963200  ;;  %s15_s11 = sadd.s32 1, %s2721_s11   ;;  %s4524_s6 = smov %s2705_s7 }
 0x239   : > { %p12_p1 = scmp.ge.s32.totalorder %s15_s11, 4   ;;  %s4525_s7 = smov %s2709_s8 }
 0x23a   : > { %s4526_s8 = smov %s2796_s19  ;;  %s4527_s9 = smov %s2717_s10 }
 0x23b   : > { %s4528_s10 = smov %s4530_s14  ;;  %14 = sbr.rel (!%p12_p1) target bundleno = 5 (0x5), region = 61 }
 0x240   :  { %2257 = vsyncpa [#allocation3], 1 }
 0x241   :  { %2259 = vsyncpa [#allocation3 + $0x1], 1 }
 0x242   :  { %2260 = vsyncpa [#allocation4], 1 }
 0x243   :  { %2262 = vsyncpa [#allocation4 + $0x1], 1 }

</bundles_post_ra>
